<compile_context>
chip_gen: v5e
topology: v5e:2x2
jax: 0.10.0
libtpu: 0.0.40
codegen_flags: <defaults>
</compile_context>

<pallas_src>
import functools

import jax
import jax.numpy as jnp
import numpy as np
from jax import lax
from jax.experimental import pallas as pl
from jax.experimental.pallas import tpu as pltpu

BN_EPS = 1e-5
_LANE = 128


def _round_up(x, m):
    return (x + m - 1) // m * m


@functools.lru_cache(maxsize=1)
def _tm_hint():
    """Pick the M tile per TPU generation (bigger VMEM -> bigger tile)."""
    try:
        vmem = getattr(pltpu.get_tpu_info(), "vmem_capacity_bytes", 0)
        return 1024 if vmem and vmem >= (96 << 20) else 512
    except Exception:
        return 512


def _pick_tm(m, hint):
    # Multiple of 8, no larger than the (row-padded) problem.
    return min(hint, _round_up(max(m, 1), 8))


# ------------------------------ Pallas kernels -------------------------------
def _gemm_stats_kernel(x_ref, w_ref, y_ref, st_ref):
    """Tiled GEMM (bf16 x bf16, f32 accumulate) + per-tile column sum/sumsq."""
    acc = jnp.dot(x_ref[...], w_ref[...], preferred_element_type=jnp.float32)
    y_ref[...] = acc.astype(y_ref.dtype)
    s = jnp.sum(acc, axis=0, keepdims=True)           # (1, C)
    ss = jnp.sum(acc * acc, axis=0, keepdims=True)    # (1, C)
    st_ref[...] = jnp.concatenate([s, ss], axis=0).reshape(st_ref.shape)


def _gemm_tanh_kernel(x_ref, w_ref, o_ref):
    acc = jnp.dot(x_ref[...], w_ref[...], preferred_element_type=jnp.float32)
    o_ref[...] = jnp.tanh(acc)


def _scale_bias_relu_kernel(y_ref, s_ref, b_ref, o_ref):
    y = y_ref[...].astype(jnp.float32)
    o_ref[...] = jnp.maximum(y * s_ref[...] + b_ref[...], 0.0).astype(o_ref.dtype)


# ------------------------------ kernel wrappers -------------------------------
def _gemm_stats(xs, ws, *, tm):
    """xs (P, Mp, K) bf16, ws (P, K, C) bf16 -> (Y (P,Mp,C) bf16, st (P,MT,2,C) f32)."""
    p, mp, k = xs.shape
    c = ws.shape[2]
    mt = mp // tm
    flops = 2 * p * mp * k * c
    bytes_acc = xs.size * 2 + ws.size * 2 + p * mp * c * 2 + p * mt * 2 * c * 4
    return pl.pallas_call(
        _gemm_stats_kernel,
        grid=(p, mt),
        in_specs=[
            pl.BlockSpec((None, tm, k), lambda pi, mi: (pi, mi, 0)),
            pl.BlockSpec((None, k, c), lambda pi, mi: (pi, 0, 0)),
        ],
        out_specs=[
            pl.BlockSpec((None, tm, c), lambda pi, mi: (pi, mi, 0)),
            pl.BlockSpec((None, 1, 2, c), lambda pi, mi: (pi, mi, 0, 0)),
        ],
        out_shape=[
            jax.ShapeDtypeStruct((p, mp, c), jnp.bfloat16),
            jax.ShapeDtypeStruct((p, mt, 2, c), jnp.float32),
        ],
        compiler_params=pltpu.CompilerParams(
            dimension_semantics=("parallel", "parallel")),
        cost_estimate=pl.CostEstimate(flops=flops, transcendentals=0,
                                      bytes_accessed=bytes_acc),
    )(xs, ws)


def _gemm_tanh(xs, ws, *, tm):
    p, mp, k = xs.shape
    c = ws.shape[2]
    mt = mp // tm
    flops = 2 * p * mp * k * c
    bytes_acc = xs.size * 2 + ws.size * 2 + p * mp * c * 4
    return pl.pallas_call(
        _gemm_tanh_kernel,
        grid=(p, mt),
        in_specs=[
            pl.BlockSpec((None, tm, k), lambda pi, mi: (pi, mi, 0)),
            pl.BlockSpec((None, k, c), lambda pi, mi: (pi, 0, 0)),
        ],
        out_specs=pl.BlockSpec((None, tm, c), lambda pi, mi: (pi, mi, 0)),
        out_shape=jax.ShapeDtypeStruct((p, mp, c), jnp.float32),
        compiler_params=pltpu.CompilerParams(
            dimension_semantics=("parallel", "parallel")),
        cost_estimate=pl.CostEstimate(flops=flops, transcendentals=p * mp * c,
                                      bytes_accessed=bytes_acc),
    )(xs, ws)


def _scale_bias_relu(y, scale, bias, *, tm):
    p, mp, c = y.shape
    mt = mp // tm
    bytes_acc = y.size * 2 + p * mp * c * 2 + 2 * c * 4
    return pl.pallas_call(
        _scale_bias_relu_kernel,
        grid=(p, mt),
        in_specs=[
            pl.BlockSpec((None, tm, c), lambda pi, mi: (pi, mi, 0)),
            pl.BlockSpec((1, c), lambda pi, mi: (0, 0)),
            pl.BlockSpec((1, c), lambda pi, mi: (0, 0)),
        ],
        out_specs=pl.BlockSpec((None, tm, c), lambda pi, mi: (pi, mi, 0)),
        out_shape=jax.ShapeDtypeStruct((p, mp, c), jnp.bfloat16),
        compiler_params=pltpu.CompilerParams(
            dimension_semantics=("parallel", "parallel")),
        cost_estimate=pl.CostEstimate(flops=2 * p * mp * c, transcendentals=0,
                                      bytes_accessed=bytes_acc),
    )(y, scale, bias)


# ------------------------------- layer glue -----------------------------------
def _bn_scale_bias(s_sum, s_sq, count, gamma, beta):
    """Fold train-mode BN (biased var) into a single per-channel scale/bias."""
    cpad = s_sum.shape[0]
    mean = s_sum / count
    var = jnp.maximum(s_sq / count - mean * mean, 0.0)
    inv = lax.rsqrt(var + BN_EPS)
    g = jnp.zeros((cpad,), jnp.float32).at[:gamma.shape[0]].set(gamma)
    b = jnp.zeros((cpad,), jnp.float32).at[:beta.shape[0]].set(beta)
    scale = g * inv
    bias = b - mean * scale
    return scale.reshape(1, cpad), bias.reshape(1, cpad)


def _parity_patches_and_weights(x_nhwc, weight, cout_pad):
    """Decompose ConvTranspose2d(k=4, s=2, p=1) by output-pixel parity.

    out[2a+hp, 2b+wp, :] = sum_{dh,dw in {0,1}} x[a±dh, b±dw, :] @ w[:, :, kh, kw]
    Returns Xs (4, N*IH*IW, 4*Cin) bf16 and Ws (4, 4*Cin, cout_pad) bf16, so
    Xs[p] @ Ws[p] produces the output pixels of parity p (row-major (hp, wp)).
    """
    x = x_nhwc.astype(jnp.bfloat16)
    n, ih, iw, cin = x.shape
    cout = weight.shape[1]
    xp = jnp.pad(x, ((0, 0), (1, 1), (1, 1), (0, 0)))
    xs, ws = [], []
    for hp in (0, 1):
        for wp in (0, 1):
            pats, wrows = [], []
            for dh in (0, 1):
                for dw in (0, 1):
                    r0 = (1 - dh) if hp == 0 else (1 + dh)
                    c0 = (1 - dw) if wp == 0 else (1 + dw)
                    kh = (1 + 2 * dh) if hp == 0 else (2 - 2 * dh)
                    kw = (1 + 2 * dw) if wp == 0 else (2 - 2 * dw)
                    pats.append(xp[:, r0:r0 + ih, c0:c0 + iw, :])
                    wrows.append(weight[:, :, kh, kw])            # (Cin, Cout)
            xs.append(jnp.concatenate(pats, axis=-1).reshape(n * ih * iw, 4 * cin))
            ws.append(jnp.concatenate(wrows, axis=0))             # (4*Cin, Cout)
    xs = jnp.stack(xs, axis=0)
    ws = jnp.stack(ws, axis=0)
    ws = jnp.pad(ws, ((0, 0), (0, 0), (0, cout_pad - cout)))
    return xs, ws.astype(jnp.bfloat16)


def _interleave_parity(y4, n, ih, iw, c):
    """(4, N*IH*IW, C) parity-ordered -> (N, 2*IH, 2*IW, C)."""
    y = y4.reshape(2, 2, n, ih, iw, c)
    y = jnp.transpose(y, (2, 3, 0, 4, 1, 5))       # (N, IH, hp, IW, wp, C)
    return y.reshape(n, 2 * ih, 2 * iw, c)


def _convt_s2_bn_relu(x_nhwc, weight, gamma, beta, tm_hint):
    n, ih, iw, _ = x_nhwc.shape
    cout = weight.shape[1]
    cpad = _round_up(cout, _LANE)
    xs, ws = _parity_patches_and_weights(x_nhwc, weight, cpad)
    m = n * ih * iw
    tm = _pick_tm(m, tm_hint)
    mp = _round_up(m, tm)
    xs = jnp.pad(xs, ((0, 0), (0, mp - m), (0, 0)))
    y, st = _gemm_stats(xs, ws, tm=tm)
    s_sum = jnp.sum(st[:, :, 0], axis=(0, 1))                 # zero-padded rows/cols add 0
    s_sq = jnp.sum(st[:, :, 1], axis=(0, 1))
    scale, bias = _bn_scale_bias(s_sum, s_sq, float(4 * m), gamma, beta)
    out = _scale_bias_relu(y, scale, bias, tm=tm)[:, :m, :cout]
    return _interleave_parity(out, n, ih, iw, cout)


def _convt_s2_tanh(x_nhwc, weight, tm_hint):
    n, ih, iw, _ = x_nhwc.shape
    cout = weight.shape[1]
    cpad = _round_up(cout, _LANE)
    xs, ws = _parity_patches_and_weights(x_nhwc, weight, cpad)
    m = n * ih * iw
    tm = _pick_tm(m, tm_hint)
    mp = _round_up(m, tm)
    xs = jnp.pad(xs, ((0, 0), (0, mp - m), (0, 0)))
    y = _gemm_tanh(xs, ws, tm=tm)[:, :m, :cout]
    return _interleave_parity(y, n, ih, iw, cout)


def _convt_1x1_bn_relu(x_nchw, weight, gamma, beta, tm_hint):
    """Layer 0: ConvTranspose2d(rd, C, 4, 1, 0) on a (N, rd, 1, 1) input.

    out[n, kh, kw, c] = x[n, :] @ w[:, c, kh, kw]  --  a dense matmul.
    """
    n = x_nchw.shape[0]
    cin, cout, k, _ = weight.shape
    cpad = _round_up(cout, _LANE)
    x2d = x_nchw.reshape(n, cin).astype(jnp.bfloat16)
    w0 = jnp.transpose(weight, (0, 2, 3, 1))                    # (Cin, K, K, Cout)
    w0 = jnp.pad(w0, ((0, 0), (0, 0), (0, 0), (0, cpad - cout)))
    w0 = w0.reshape(cin, k * k * cpad).astype(jnp.bfloat16)
    tm = _pick_tm(n, tm_hint)
    mp = _round_up(n, tm)
    x2d = jnp.pad(x2d, ((0, mp - n), (0, 0)))
    y, st = _gemm_stats(x2d[None], w0[None], tm=tm)             # cols = (kh, kw, c)
    st = st.reshape(1, -1, 2, k * k, cpad)
    s_sum = jnp.sum(st[:, :, 0], axis=(0, 1, 2))
    s_sq = jnp.sum(st[:, :, 1], axis=(0, 1, 2))
    scale, bias = _bn_scale_bias(s_sum, s_sq, float(k * k * n), gamma, beta)
    y2 = y[0, :n].reshape(n * k * k, cpad)
    m2 = n * k * k
    tm2 = _pick_tm(m2, tm_hint)
    m2p = _round_up(m2, tm2)
    y2 = jnp.pad(y2, ((0, m2p - m2), (0, 0)))
    out = _scale_bias_relu(y2[None], scale, bias, tm=tm2)[0, :m2, :cout]
    return out.reshape(n, k, k, cout)


# ------------------------------ full generator --------------------------------
def init_generator_params(key, random_dim, gen_dim, num_channels):
    chans = [random_dim, gen_dim * 8, gen_dim * 4, gen_dim * 2, gen_dim,
             num_channels]
    params = []
    for li in range(5):
        key, wk = jax.random.split(key)
        cin, cout = chans[li], chans[li + 1]
        # Deterministic synthetic init (DCGAN-style N(0, 0.02)).
        w = 0.02 * jax.random.normal(wk, (cin, cout, 4, 4), jnp.float32)
        if li < 4:
            gamma = jnp.ones((cout,), jnp.float32)     # BatchNorm2d defaults
            beta = jnp.zeros((cout,), jnp.float32)
        else:
            gamma = beta = None
        params.append((w, gamma, beta))
    return params


def generator_forward(params, x_nchw):
    tm_hint = _tm_hint()
    w0, g0, b0 = params[0]
    x = _convt_1x1_bn_relu(x_nchw, w0, g0, b0, tm_hint)        # (N, 4, 4, 8g) NHWC
    for li in range(1, 4):
        w, g, b = params[li]
        x = _convt_s2_bn_relu(x, w, g, b, tm_hint)
    w4, _, _ = params[4]
    x = _convt_s2_tanh(x, w4, tm_hint)                          # (N, 64, 64, C)
    return jnp.transpose(x, (0, 3, 1, 2)).astype(jnp.float32)   # NHWC -> NCHW


# ---------------------------- pure-JAX reference -------------------------------
_STRIDES = [1, 2, 2, 2, 2]
_PADDINGS = [0, 1, 1, 1, 1]


def _reference_forward(params, x_nchw):
    x = x_nchw
    for li, (w, gamma, beta) in enumerate(params):
        k = w.shape[-1]
        s, p = _STRIDES[li], _PADDINGS[li]
        w_conv = jnp.transpose(w, (1, 0, 2, 3))[:, :, ::-1, ::-1]   # OIHW
        x = lax.conv_general_dilated(
            x, w_conv, window_strides=(1, 1),
            padding=[(k - 1 - p, k - 1 - p)] * 2,
            lhs_dilation=(s, s),
            dimension_numbers=("NCHW", "OIHW", "NCHW"),
            precision=lax.Precision.HIGHEST)
        if li < 4:
            mean = jnp.mean(x, axis=(0, 2, 3), keepdims=True)
            var = jnp.mean(jnp.square(x - mean), axis=(0, 2, 3), keepdims=True)
            x = (x - mean) * lax.rsqrt(var + BN_EPS)
            x = x * gamma.reshape(1, -1, 1, 1) + beta.reshape(1, -1, 1, 1)
            x = jnp.maximum(x, 0.0)
        else:
            x = jnp.tanh(x)
    return x


if __name__ == "__main__":
    random_dim, gen_dim, num_channels = 16, 8, 3
    batch = 2

    key = jax.random.PRNGKey(0)
    key, xk = jax.random.split(key)
    x = jax.random.normal(xk, (batch, random_dim, 1, 1), jnp.float32)
    params = init_generator_params(key, random_dim, gen_dim, num_channels)

    fwd = jax.jit(functools.partial(generator_forward, params))
    out = jax.block_until_ready(fwd(x))
    assert out.shape == (batch, num_channels, 64, 64), out.shape
    assert bool(jnp.all(jnp.isfinite(out)))

    ref = _reference_forward(params, x)
    np.testing.assert_allclose(np.asarray(out), np.asarray(ref),
                               atol=4e-2, rtol=0)
    print("KERNEL_OK")
</pallas_src>

<mosaic_0001>
module attributes {stable_mosaic.version = 11 : i64} {
  func.func @_gemm_stats_kernel(%arg0: i32, %arg1: i32, %arg2: memref<1x8x16xbf16, #tpu.memory_space<vmem>>, %arg3: memref<1x16x2048xbf16, #tpu.memory_space<vmem>>, %arg4: memref<1x8x2048xbf16, #tpu.memory_space<vmem>>, %arg5: memref<1x1x2x2048xf32, #tpu.memory_space<vmem>>) attributes {dimension_semantics = [#tpu.dimension_semantics<parallel>, #tpu.dimension_semantics<parallel>], iteration_bounds = array<i64: 1, 1>, scalar_prefetch = 0 : i64, scratch_operands = 0 : i64, tpu.core_type = #tpu.core_type<tc>, window_params = [{transform_indices = @transform_0, window_bounds = array<i64: 1, 8, 16>}, {transform_indices = @transform_1, window_bounds = array<i64: 1, 16, 2048>}, {transform_indices = @transform_2, window_bounds = array<i64: 1, 8, 2048>}, {transform_indices = @transform_3, window_bounds = array<i64: 1, 1, 2, 2048>}]} {
    %c0 = arith.constant 0 : index
    %c0_0 = arith.constant 0 : index
    %c0_1 = arith.constant 0 : index
    %0 = vector.load %arg2[%c0, %c0_0, %c0_1] : memref<1x8x16xbf16, #tpu.memory_space<vmem>>, vector<1x8x16xbf16>
    %1 = vector.shape_cast %0 : vector<1x8x16xbf16> to vector<8x16xbf16>
    %c0_2 = arith.constant 0 : index
    %c0_3 = arith.constant 0 : index
    %c0_4 = arith.constant 0 : index
    %2 = vector.load %arg3[%c0_2, %c0_3, %c0_4] : memref<1x16x2048xbf16, #tpu.memory_space<vmem>>, vector<1x16x2048xbf16>
    %3 = vector.shape_cast %2 : vector<1x16x2048xbf16> to vector<16x2048xbf16>
    %cst = arith.constant dense<0.000000e+00> : vector<8x2048xf32>
    %4 = tpu.matmul %1, %3, %cst {dimension_numbers = #tpu.dot_dimension_numbers<[1], [0], [0], [1], [0, 0, 1, 1], [], []>} : vector<8x16xbf16>, vector<16x2048xbf16>, vector<8x2048xf32> -> vector<8x2048xf32>
    %5 = arith.truncf %4 : vector<8x2048xf32> to vector<8x2048xbf16>
    %c0_5 = arith.constant 0 : index
    %c0_6 = arith.constant 0 : index
    %c0_7 = arith.constant 0 : index
    %6 = vector.load %arg4[%c0_5, %c0_6, %c0_7] : memref<1x8x2048xbf16, #tpu.memory_space<vmem>>, vector<1x8x2048xbf16>
    %7 = vector.shape_cast %6 : vector<1x8x2048xbf16> to vector<8x2048xbf16>
    %8 = vector.shape_cast %5 : vector<8x2048xbf16> to vector<1x8x2048xbf16>
    tpu.vector_store %arg4[%c0_5, %c0_6, %c0_7], %8 {strides = array<i32>} : memref<1x8x2048xbf16, #tpu.memory_space<vmem>>, vector<1x8x2048xbf16>,
    %cst_8 = arith.constant dense<0.000000e+00> : vector<2048xf32>
    %9 = vector.multi_reduction <add>, %4, %cst_8 [0] : vector<8x2048xf32> to vector<2048xf32>
    %10 = vector.shape_cast %9 : vector<2048xf32> to vector<1x2048xf32>
    %11 = arith.mulf %4, %4 : vector<8x2048xf32>
    %cst_9 = arith.constant dense<0.000000e+00> : vector<2048xf32>
    %12 = vector.multi_reduction <add>, %11, %cst_9 [0] : vector<8x2048xf32> to vector<2048xf32>
    %13 = vector.shape_cast %12 : vector<2048xf32> to vector<1x2048xf32>
    %14 = tpu.concatenate %10, %13 in 0 : vector<1x2048xf32>, vector<1x2048xf32> -> vector<2x2048xf32>
    %15 = vector.shape_cast %14 : vector<2x2048xf32> to vector<1x2x2048xf32>
    %c0_10 = arith.constant 0 : index
    %c0_11 = arith.constant 0 : index
    %c0_12 = arith.constant 0 : index
    %c0_13 = arith.constant 0 : index
    %16 = vector.load %arg5[%c0_10, %c0_11, %c0_12, %c0_13] : memref<1x1x2x2048xf32, #tpu.memory_space<vmem>>, vector<1x1x2x2048xf32>
    %17 = vector.shape_cast %16 : vector<1x1x2x2048xf32> to vector<1x2x2048xf32>
    %18 = vector.shape_cast %15 : vector<1x2x2048xf32> to vector<1x1x2x2048xf32>
    tpu.vector_store %arg5[%c0_10, %c0_11, %c0_12, %c0_13], %18 {strides = array<i32>} : memref<1x1x2x2048xf32, #tpu.memory_space<vmem>>, vector<1x1x2x2048xf32>,
    return
  }
  func.func @transform_0(%arg0: i32, %arg1: i32) -> (i32, i32, i32) {
    %c0_i32 = arith.constant 0 : i32
    %c0_i32_0 = arith.constant 0 : i32
    return %arg0, %arg1, %c0_i32 : i32, i32, i32
  }
  func.func @transform_1(%arg0: i32, %arg1: i32) -> (i32, i32, i32) {
    %c0_i32 = arith.constant 0 : i32
    %c0_i32_0 = arith.constant 0 : i32
    %c0_i32_1 = arith.constant 0 : i32
    return %arg0, %c0_i32, %c0_i32_0 : i32, i32, i32
  }
  func.func @transform_2(%arg0: i32, %arg1: i32) -> (i32, i32, i32) {
    %c0_i32 = arith.constant 0 : i32
    %c0_i32_0 = arith.constant 0 : i32
    return %arg0, %arg1, %c0_i32 : i32, i32, i32
  }
  func.func @transform_3(%arg0: i32, %arg1: i32) -> (i32, i32, i32, i32) {
    %c0_i32 = arith.constant 0 : i32
    %c0_i32_0 = arith.constant 0 : i32
    %c0_i32_1 = arith.constant 0 : i32
    return %arg0, %arg1, %c0_i32, %c0_i32_0 : i32, i32, i32, i32
  }
}

module attributes {stable_mosaic.version = 11 : i64} {
  func.func @_scale_bias_relu_kernel(%arg0: i32, %arg1: i32, %arg2: memref<1x32x128xbf16, #tpu.memory_space<vmem>>, %arg3: memref<1x128xf32, #tpu.memory_space<vmem>>, %arg4: memref<1x128xf32, #tpu.memory_space<vmem>>, %arg5: memref<1x32x128xbf16, #tpu.memory_space<vmem>>) attributes {dimension_semantics = [#tpu.dimension_semantics<parallel>, #tpu.dimension_semantics<parallel>], iteration_bounds = array<i64: 1, 1>, scalar_prefetch = 0 : i64, scratch_operands = 0 : i64, tpu.core_type = #tpu.core_type<tc>, window_params = [{transform_indices = @transform_0, window_bounds = array<i64: 1, 32, 128>}, {pipeline_mode = #tpu.pipeline_mode<synchronous>, transform_indices = @transform_1, window_bounds = array<i64: 1, 128>}, {pipeline_mode = #tpu.pipeline_mode<synchronous>, transform_indices = @transform_2, window_bounds = array<i64: 1, 128>}, {transform_indices = @transform_3, window_bounds = array<i64: 1, 32, 128>}]} {
    %c0 = arith.constant 0 : index
    %c0_0 = arith.constant 0 : index
    %c0_1 = arith.constant 0 : index
    %0 = vector.load %arg2[%c0, %c0_0, %c0_1] : memref<1x32x128xbf16, #tpu.memory_space<vmem>>, vector<1x32x128xbf16>
    %1 = vector.shape_cast %0 : vector<1x32x128xbf16> to vector<32x128xbf16>
    %2 = arith.extf %1 : vector<32x128xbf16> to vector<32x128xf32>
    %c0_2 = arith.constant 0 : index
    %c0_3 = arith.constant 0 : index
    %3 = vector.load %arg3[%c0_2, %c0_3] : memref<1x128xf32, #tpu.memory_space<vmem>>, vector<1x128xf32>
    %4 = vector.broadcast %3 : vector<1x128xf32> to vector<32x128xf32>
    %5 = arith.mulf %2, %4 : vector<32x128xf32>
    %c0_4 = arith.constant 0 : index
    %c0_5 = arith.constant 0 : index
    %6 = vector.load %arg4[%c0_4, %c0_5] : memref<1x128xf32, #tpu.memory_space<vmem>>, vector<1x128xf32>
    %7 = vector.broadcast %6 : vector<1x128xf32> to vector<32x128xf32>
    %8 = arith.addf %5, %7 : vector<32x128xf32>
    %cst = arith.constant 0.000000e+00 : f32
    %9 = vector.broadcast %cst : f32 to vector<32x128xf32>
    %10 = arith.maximumf %8, %9 : vector<32x128xf32>
    %11 = arith.truncf %10 : vector<32x128xf32> to vector<32x128xbf16>
    %c0_6 = arith.constant 0 : index
    %c0_7 = arith.constant 0 : index
    %c0_8 = arith.constant 0 : index
    %12 = vector.load %arg5[%c0_6, %c0_7, %c0_8] : memref<1x32x128xbf16, #tpu.memory_space<vmem>>, vector<1x32x128xbf16>
    %13 = vector.shape_cast %12 : vector<1x32x128xbf16> to vector<32x128xbf16>
    %14 = vector.shape_cast %11 : vector<32x128xbf16> to vector<1x32x128xbf16>
    tpu.vector_store %arg5[%c0_6, %c0_7, %c0_8], %14 {strides = array<i32>} : memref<1x32x128xbf16, #tpu.memory_space<vmem>>, vector<1x32x128xbf16>,
    return
  }
  func.func @transform_0(%arg0: i32, %arg1: i32) -> (i32, i32, i32) {
    %c0_i32 = arith.constant 0 : i32
    %c0_i32_0 = arith.constant 0 : i32
    return %arg0, %arg1, %c0_i32 : i32, i32, i32
  }
  func.func @transform_1(%arg0: i32, %arg1: i32) -> (i32, i32) {
    %c0_i32 = arith.constant 0 : i32
    %c0_i32_0 = arith.constant 0 : i32
    %c0_i32_1 = arith.constant 0 : i32
    return %c0_i32, %c0_i32_0 : i32, i32
  }
  func.func @transform_2(%arg0: i32, %arg1: i32) -> (i32, i32) {
    %c0_i32 = arith.constant 0 : i32
    %c0_i32_0 = arith.constant 0 : i32
    %c0_i32_1 = arith.constant 0 : i32
    return %c0_i32, %c0_i32_0 : i32, i32
  }
  func.func @transform_3(%arg0: i32, %arg1: i32) -> (i32, i32, i32) {
    %c0_i32 = arith.constant 0 : i32
    %c0_i32_0 = arith.constant 0 : i32
    return %arg0, %arg1, %c0_i32 : i32, i32, i32
  }
}

module attributes {stable_mosaic.version = 11 : i64} {
  func.func @_gemm_stats_kernel(%arg0: i32, %arg1: i32, %arg2: memref<1x32x256xbf16, #tpu.memory_space<vmem>>, %arg3: memref<1x256x128xbf16, #tpu.memory_space<vmem>>, %arg4: memref<1x32x128xbf16, #tpu.memory_space<vmem>>, %arg5: memref<1x1x2x128xf32, #tpu.memory_space<vmem>>) attributes {dimension_semantics = [#tpu.dimension_semantics<parallel>, #tpu.dimension_semantics<parallel>], iteration_bounds = array<i64: 4, 1>, scalar_prefetch = 0 : i64, scratch_operands = 0 : i64, tpu.core_type = #tpu.core_type<tc>, window_params = [{transform_indices = @transform_0, window_bounds = array<i64: 1, 32, 256>}, {transform_indices = @transform_1, window_bounds = array<i64: 1, 256, 128>}, {transform_indices = @transform_2, window_bounds = array<i64: 1, 32, 128>}, {transform_indices = @transform_3, window_bounds = array<i64: 1, 1, 2, 128>}]} {
    %c0 = arith.constant 0 : index
    %c0_0 = arith.constant 0 : index
    %c0_1 = arith.constant 0 : index
    %0 = vector.load %arg2[%c0, %c0_0, %c0_1] : memref<1x32x256xbf16, #tpu.memory_space<vmem>>, vector<1x32x256xbf16>
    %1 = vector.shape_cast %0 : vector<1x32x256xbf16> to vector<32x256xbf16>
    %c0_2 = arith.constant 0 : index
    %c0_3 = arith.constant 0 : index
    %c0_4 = arith.constant 0 : index
    %2 = vector.load %arg3[%c0_2, %c0_3, %c0_4] : memref<1x256x128xbf16, #tpu.memory_space<vmem>>, vector<1x256x128xbf16>
    %3 = vector.shape_cast %2 : vector<1x256x128xbf16> to vector<256x128xbf16>
    %cst = arith.constant dense<0.000000e+00> : vector<32x128xf32>
    %4 = tpu.matmul %1, %3, %cst {dimension_numbers = #tpu.dot_dimension_numbers<[1], [0], [0], [1], [0, 0, 1, 1], [], []>} : vector<32x256xbf16>, vector<256x128xbf16>, vector<32x128xf32> -> vector<32x128xf32>
    %5 = arith.truncf %4 : vector<32x128xf32> to vector<32x128xbf16>
    %c0_5 = arith.constant 0 : index
    %c0_6 = arith.constant 0 : index
    %c0_7 = arith.constant 0 : index
    %6 = vector.load %arg4[%c0_5, %c0_6, %c0_7] : memref<1x32x128xbf16, #tpu.memory_space<vmem>>, vector<1x32x128xbf16>
    %7 = vector.shape_cast %6 : vector<1x32x128xbf16> to vector<32x128xbf16>
    %8 = vector.shape_cast %5 : vector<32x128xbf16> to vector<1x32x128xbf16>
    tpu.vector_store %arg4[%c0_5, %c0_6, %c0_7], %8 {strides = array<i32>} : memref<1x32x128xbf16, #tpu.memory_space<vmem>>, vector<1x32x128xbf16>,
    %cst_8 = arith.constant dense<0.000000e+00> : vector<128xf32>
    %9 = vector.multi_reduction <add>, %4, %cst_8 [0] : vector<32x128xf32> to vector<128xf32>
    %10 = vector.shape_cast %9 : vector<128xf32> to vector<1x128xf32>
    %11 = arith.mulf %4, %4 : vector<32x128xf32>
    %cst_9 = arith.constant dense<0.000000e+00> : vector<128xf32>
    %12 = vector.multi_reduction <add>, %11, %cst_9 [0] : vector<32x128xf32> to vector<128xf32>
    %13 = vector.shape_cast %12 : vector<128xf32> to vector<1x128xf32>
    %14 = tpu.concatenate %10, %13 in 0 : vector<1x128xf32>, vector<1x128xf32> -> vector<2x128xf32>
    %15 = vector.shape_cast %14 : vector<2x128xf32> to vector<1x2x128xf32>
    %c0_10 = arith.constant 0 : index
    %c0_11 = arith.constant 0 : index
    %c0_12 = arith.constant 0 : index
    %c0_13 = arith.constant 0 : index
    %16 = vector.load %arg5[%c0_10, %c0_11, %c0_12, %c0_13] : memref<1x1x2x128xf32, #tpu.memory_space<vmem>>, vector<1x1x2x128xf32>
    %17 = vector.shape_cast %16 : vector<1x1x2x128xf32> to vector<1x2x128xf32>
    %18 = vector.shape_cast %15 : vector<1x2x128xf32> to vector<1x1x2x128xf32>
    tpu.vector_store %arg5[%c0_10, %c0_11, %c0_12, %c0_13], %18 {strides = array<i32>} : memref<1x1x2x128xf32, #tpu.memory_space<vmem>>, vector<1x1x2x128xf32>,
    return
  }
  func.func @transform_0(%arg0: i32, %arg1: i32) -> (i32, i32, i32) {
    %c0_i32 = arith.constant 0 : i32
    %c0_i32_0 = arith.constant 0 : i32
    return %arg0, %arg1, %c0_i32 : i32, i32, i32
  }
  func.func @transform_1(%arg0: i32, %arg1: i32) -> (i32, i32, i32) {
    %c0_i32 = arith.constant 0 : i32
    %c0_i32_0 = arith.constant 0 : i32
    %c0_i32_1 = arith.constant 0 : i32
    return %arg0, %c0_i32, %c0_i32_0 : i32, i32, i32
  }
  func.func @transform_2(%arg0: i32, %arg1: i32) -> (i32, i32, i32) {
    %c0_i32 = arith.constant 0 : i32
    %c0_i32_0 = arith.constant 0 : i32
    return %arg0, %arg1, %c0_i32 : i32, i32, i32
  }
  func.func @transform_3(%arg0: i32, %arg1: i32) -> (i32, i32, i32, i32) {
    %c0_i32 = arith.constant 0 : i32
    %c0_i32_0 = arith.constant 0 : i32
    %c0_i32_1 = arith.constant 0 : i32
    return %arg0, %arg1, %c0_i32, %c0_i32_0 : i32, i32, i32, i32
  }
}

module attributes {stable_mosaic.version = 11 : i64} {
  func.func @_scale_bias_relu_kernel(%arg0: i32, %arg1: i32, %arg2: memref<1x32x128xbf16, #tpu.memory_space<vmem>>, %arg3: memref<1x128xf32, #tpu.memory_space<vmem>>, %arg4: memref<1x128xf32, #tpu.memory_space<vmem>>, %arg5: memref<1x32x128xbf16, #tpu.memory_space<vmem>>) attributes {dimension_semantics = [#tpu.dimension_semantics<parallel>, #tpu.dimension_semantics<parallel>], iteration_bounds = array<i64: 4, 1>, scalar_prefetch = 0 : i64, scratch_operands = 0 : i64, tpu.core_type = #tpu.core_type<tc>, window_params = [{transform_indices = @transform_0, window_bounds = array<i64: 1, 32, 128>}, {pipeline_mode = #tpu.pipeline_mode<synchronous>, transform_indices = @transform_1, window_bounds = array<i64: 1, 128>}, {pipeline_mode = #tpu.pipeline_mode<synchronous>, transform_indices = @transform_2, window_bounds = array<i64: 1, 128>}, {transform_indices = @transform_3, window_bounds = array<i64: 1, 32, 128>}]} {
    %c0 = arith.constant 0 : index
    %c0_0 = arith.constant 0 : index
    %c0_1 = arith.constant 0 : index
    %0 = vector.load %arg2[%c0, %c0_0, %c0_1] : memref<1x32x128xbf16, #tpu.memory_space<vmem>>, vector<1x32x128xbf16>
    %1 = vector.shape_cast %0 : vector<1x32x128xbf16> to vector<32x128xbf16>
    %2 = arith.extf %1 : vector<32x128xbf16> to vector<32x128xf32>
    %c0_2 = arith.constant 0 : index
    %c0_3 = arith.constant 0 : index
    %3 = vector.load %arg3[%c0_2, %c0_3] : memref<1x128xf32, #tpu.memory_space<vmem>>, vector<1x128xf32>
    %4 = vector.broadcast %3 : vector<1x128xf32> to vector<32x128xf32>
    %5 = arith.mulf %2, %4 : vector<32x128xf32>
    %c0_4 = arith.constant 0 : index
    %c0_5 = arith.constant 0 : index
    %6 = vector.load %arg4[%c0_4, %c0_5] : memref<1x128xf32, #tpu.memory_space<vmem>>, vector<1x128xf32>
    %7 = vector.broadcast %6 : vector<1x128xf32> to vector<32x128xf32>
    %8 = arith.addf %5, %7 : vector<32x128xf32>
    %cst = arith.constant 0.000000e+00 : f32
    %9 = vector.broadcast %cst : f32 to vector<32x128xf32>
    %10 = arith.maximumf %8, %9 : vector<32x128xf32>
    %11 = arith.truncf %10 : vector<32x128xf32> to vector<32x128xbf16>
    %c0_6 = arith.constant 0 : index
    %c0_7 = arith.constant 0 : index
    %c0_8 = arith.constant 0 : index
    %12 = vector.load %arg5[%c0_6, %c0_7, %c0_8] : memref<1x32x128xbf16, #tpu.memory_space<vmem>>, vector<1x32x128xbf16>
    %13 = vector.shape_cast %12 : vector<1x32x128xbf16> to vector<32x128xbf16>
    %14 = vector.shape_cast %11 : vector<32x128xbf16> to vector<1x32x128xbf16>
    tpu.vector_store %arg5[%c0_6, %c0_7, %c0_8], %14 {strides = array<i32>} : memref<1x32x128xbf16, #tpu.memory_space<vmem>>, vector<1x32x128xbf16>,
    return
  }
  func.func @transform_0(%arg0: i32, %arg1: i32) -> (i32, i32, i32) {
    %c0_i32 = arith.constant 0 : i32
    %c0_i32_0 = arith.constant 0 : i32
    return %arg0, %arg1, %c0_i32 : i32, i32, i32
  }
  func.func @transform_1(%arg0: i32, %arg1: i32) -> (i32, i32) {
    %c0_i32 = arith.constant 0 : i32
    %c0_i32_0 = arith.constant 0 : i32
    %c0_i32_1 = arith.constant 0 : i32
    return %c0_i32, %c0_i32_0 : i32, i32
  }
  func.func @transform_2(%arg0: i32, %arg1: i32) -> (i32, i32) {
    %c0_i32 = arith.constant 0 : i32
    %c0_i32_0 = arith.constant 0 : i32
    %c0_i32_1 = arith.constant 0 : i32
    return %c0_i32, %c0_i32_0 : i32, i32
  }
  func.func @transform_3(%arg0: i32, %arg1: i32) -> (i32, i32, i32) {
    %c0_i32 = arith.constant 0 : i32
    %c0_i32_0 = arith.constant 0 : i32
    return %arg0, %arg1, %c0_i32 : i32, i32, i32
  }
}

module attributes {stable_mosaic.version = 11 : i64} {
  func.func @_gemm_stats_kernel(%arg0: i32, %arg1: i32, %arg2: memref<1x128x128xbf16, #tpu.memory_space<vmem>>, %arg3: memref<1x128x128xbf16, #tpu.memory_space<vmem>>, %arg4: memref<1x128x128xbf16, #tpu.memory_space<vmem>>, %arg5: memref<1x1x2x128xf32, #tpu.memory_space<vmem>>) attributes {dimension_semantics = [#tpu.dimension_semantics<parallel>, #tpu.dimension_semantics<parallel>], iteration_bounds = array<i64: 4, 1>, scalar_prefetch = 0 : i64, scratch_operands = 0 : i64, tpu.core_type = #tpu.core_type<tc>, window_params = [{transform_indices = @transform_0, window_bounds = array<i64: 1, 128, 128>}, {transform_indices = @transform_1, window_bounds = array<i64: 1, 128, 128>}, {transform_indices = @transform_2, window_bounds = array<i64: 1, 128, 128>}, {transform_indices = @transform_3, window_bounds = array<i64: 1, 1, 2, 128>}]} {
    %c0 = arith.constant 0 : index
    %c0_0 = arith.constant 0 : index
    %c0_1 = arith.constant 0 : index
    %0 = vector.load %arg2[%c0, %c0_0, %c0_1] : memref<1x128x128xbf16, #tpu.memory_space<vmem>>, vector<1x128x128xbf16>
    %1 = vector.shape_cast %0 : vector<1x128x128xbf16> to vector<128x128xbf16>
    %c0_2 = arith.constant 0 : index
    %c0_3 = arith.constant 0 : index
    %c0_4 = arith.constant 0 : index
    %2 = vector.load %arg3[%c0_2, %c0_3, %c0_4] : memref<1x128x128xbf16, #tpu.memory_space<vmem>>, vector<1x128x128xbf16>
    %3 = vector.shape_cast %2 : vector<1x128x128xbf16> to vector<128x128xbf16>
    %cst = arith.constant dense<0.000000e+00> : vector<128x128xf32>
    %4 = tpu.matmul %1, %3, %cst {dimension_numbers = #tpu.dot_dimension_numbers<[1], [0], [0], [1], [0, 0, 1, 1], [], []>} : vector<128x128xbf16>, vector<128x128xbf16>, vector<128x128xf32> -> vector<128x128xf32>
    %5 = arith.truncf %4 : vector<128x128xf32> to vector<128x128xbf16>
    %c0_5 = arith.constant 0 : index
    %c0_6 = arith.constant 0 : index
    %c0_7 = arith.constant 0 : index
    %6 = vector.load %arg4[%c0_5, %c0_6, %c0_7] : memref<1x128x128xbf16, #tpu.memory_space<vmem>>, vector<1x128x128xbf16>
    %7 = vector.shape_cast %6 : vector<1x128x128xbf16> to vector<128x128xbf16>
    %8 = vector.shape_cast %5 : vector<128x128xbf16> to vector<1x128x128xbf16>
    tpu.vector_store %arg4[%c0_5, %c0_6, %c0_7], %8 {strides = array<i32>} : memref<1x128x128xbf16, #tpu.memory_space<vmem>>, vector<1x128x128xbf16>,
    %cst_8 = arith.constant dense<0.000000e+00> : vector<128xf32>
    %9 = vector.multi_reduction <add>, %4, %cst_8 [0] : vector<128x128xf32> to vector<128xf32>
    %10 = vector.shape_cast %9 : vector<128xf32> to vector<1x128xf32>
    %11 = arith.mulf %4, %4 : vector<128x128xf32>
    %cst_9 = arith.constant dense<0.000000e+00> : vector<128xf32>
    %12 = vector.multi_reduction <add>, %11, %cst_9 [0] : vector<128x128xf32> to vector<128xf32>
    %13 = vector.shape_cast %12 : vector<128xf32> to vector<1x128xf32>
    %14 = tpu.concatenate %10, %13 in 0 : vector<1x128xf32>, vector<1x128xf32> -> vector<2x128xf32>
    %15 = vector.shape_cast %14 : vector<2x128xf32> to vector<1x2x128xf32>
    %c0_10 = arith.constant 0 : index
    %c0_11 = arith.constant 0 : index
    %c0_12 = arith.constant 0 : index
    %c0_13 = arith.constant 0 : index
    %16 = vector.load %arg5[%c0_10, %c0_11, %c0_12, %c0_13] : memref<1x1x2x128xf32, #tpu.memory_space<vmem>>, vector<1x1x2x128xf32>
    %17 = vector.shape_cast %16 : vector<1x1x2x128xf32> to vector<1x2x128xf32>
    %18 = vector.shape_cast %15 : vector<1x2x128xf32> to vector<1x1x2x128xf32>
    tpu.vector_store %arg5[%c0_10, %c0_11, %c0_12, %c0_13], %18 {strides = array<i32>} : memref<1x1x2x128xf32, #tpu.memory_space<vmem>>, vector<1x1x2x128xf32>,
    return
  }
  func.func @transform_0(%arg0: i32, %arg1: i32) -> (i32, i32, i32) {
    %c0_i32 = arith.constant 0 : i32
    %c0_i32_0 = arith.constant 0 : i32
    return %arg0, %arg1, %c0_i32 : i32, i32, i32
  }
  func.func @transform_1(%arg0: i32, %arg1: i32) -> (i32, i32, i32) {
    %c0_i32 = arith.constant 0 : i32
    %c0_i32_0 = arith.constant 0 : i32
    %c0_i32_1 = arith.constant 0 : i32
    return %arg0, %c0_i32, %c0_i32_0 : i32, i32, i32
  }
  func.func @transform_2(%arg0: i32, %arg1: i32) -> (i32, i32, i32) {
    %c0_i32 = arith.constant 0 : i32
    %c0_i32_0 = arith.constant 0 : i32
    return %arg0, %arg1, %c0_i32 : i32, i32, i32
  }
  func.func @transform_3(%arg0: i32, %arg1: i32) -> (i32, i32, i32, i32) {
    %c0_i32 = arith.constant 0 : i32
    %c0_i32_0 = arith.constant 0 : i32
    %c0_i32_1 = arith.constant 0 : i32
    return %arg0, %arg1, %c0_i32, %c0_i32_0 : i32, i32, i32, i32
  }
}

module attributes {stable_mosaic.version = 11 : i64} {
  func.func @_scale_bias_relu_kernel(%arg0: i32, %arg1: i32, %arg2: memref<1x128x128xbf16, #tpu.memory_space<vmem>>, %arg3: memref<1x128xf32, #tpu.memory_space<vmem>>, %arg4: memref<1x128xf32, #tpu.memory_space<vmem>>, %arg5: memref<1x128x128xbf16, #tpu.memory_space<vmem>>) attributes {dimension_semantics = [#tpu.dimension_semantics<parallel>, #tpu.dimension_semantics<parallel>], iteration_bounds = array<i64: 4, 1>, scalar_prefetch = 0 : i64, scratch_operands = 0 : i64, tpu.core_type = #tpu.core_type<tc>, window_params = [{transform_indices = @transform_0, window_bounds = array<i64: 1, 128, 128>}, {pipeline_mode = #tpu.pipeline_mode<synchronous>, transform_indices = @transform_1, window_bounds = array<i64: 1, 128>}, {pipeline_mode = #tpu.pipeline_mode<synchronous>, transform_indices = @transform_2, window_bounds = array<i64: 1, 128>}, {transform_indices = @transform_3, window_bounds = array<i64: 1, 128, 128>}]} {
    %c0 = arith.constant 0 : index
    %c0_0 = arith.constant 0 : index
    %c0_1 = arith.constant 0 : index
    %0 = vector.load %arg2[%c0, %c0_0, %c0_1] : memref<1x128x128xbf16, #tpu.memory_space<vmem>>, vector<1x128x128xbf16>
    %1 = vector.shape_cast %0 : vector<1x128x128xbf16> to vector<128x128xbf16>
    %2 = arith.extf %1 : vector<128x128xbf16> to vector<128x128xf32>
    %c0_2 = arith.constant 0 : index
    %c0_3 = arith.constant 0 : index
    %3 = vector.load %arg3[%c0_2, %c0_3] : memref<1x128xf32, #tpu.memory_space<vmem>>, vector<1x128xf32>
    %4 = vector.broadcast %3 : vector<1x128xf32> to vector<128x128xf32>
    %5 = arith.mulf %2, %4 : vector<128x128xf32>
    %c0_4 = arith.constant 0 : index
    %c0_5 = arith.constant 0 : index
    %6 = vector.load %arg4[%c0_4, %c0_5] : memref<1x128xf32, #tpu.memory_space<vmem>>, vector<1x128xf32>
    %7 = vector.broadcast %6 : vector<1x128xf32> to vector<128x128xf32>
    %8 = arith.addf %5, %7 : vector<128x128xf32>
    %cst = arith.constant 0.000000e+00 : f32
    %9 = vector.broadcast %cst : f32 to vector<128x128xf32>
    %10 = arith.maximumf %8, %9 : vector<128x128xf32>
    %11 = arith.truncf %10 : vector<128x128xf32> to vector<128x128xbf16>
    %c0_6 = arith.constant 0 : index
    %c0_7 = arith.constant 0 : index
    %c0_8 = arith.constant 0 : index
    %12 = vector.load %arg5[%c0_6, %c0_7, %c0_8] : memref<1x128x128xbf16, #tpu.memory_space<vmem>>, vector<1x128x128xbf16>
    %13 = vector.shape_cast %12 : vector<1x128x128xbf16> to vector<128x128xbf16>
    %14 = vector.shape_cast %11 : vector<128x128xbf16> to vector<1x128x128xbf16>
    tpu.vector_store %arg5[%c0_6, %c0_7, %c0_8], %14 {strides = array<i32>} : memref<1x128x128xbf16, #tpu.memory_space<vmem>>, vector<1x128x128xbf16>,
    return
  }
  func.func @transform_0(%arg0: i32, %arg1: i32) -> (i32, i32, i32) {
    %c0_i32 = arith.constant 0 : i32
    %c0_i32_0 = arith.constant 0 : i32
    return %arg0, %arg1, %c0_i32 : i32, i32, i32
  }
  func.func @transform_1(%arg0: i32, %arg1: i32) -> (i32, i32) {
    %c0_i32 = arith.constant 0 : i32
    %c0_i32_0 = arith.constant 0 : i32
    %c0_i32_1 = arith.constant 0 : i32
    return %c0_i32, %c0_i32_0 : i32, i32
  }
  func.func @transform_2(%arg0: i32, %arg1: i32) -> (i32, i32) {
    %c0_i32 = arith.constant 0 : i32
    %c0_i32_0 = arith.constant 0 : i32
    %c0_i32_1 = arith.constant 0 : i32
    return %c0_i32, %c0_i32_0 : i32, i32
  }
  func.func @transform_3(%arg0: i32, %arg1: i32) -> (i32, i32, i32) {
    %c0_i32 = arith.constant 0 : i32
    %c0_i32_0 = arith.constant 0 : i32
    return %arg0, %arg1, %c0_i32 : i32, i32, i32
  }
}

module attributes {stable_mosaic.version = 11 : i64} {
  func.func @_gemm_stats_kernel(%arg0: i32, %arg1: i32, %arg2: memref<1x512x64xbf16, #tpu.memory_space<vmem>>, %arg3: memref<1x64x128xbf16, #tpu.memory_space<vmem>>, %arg4: memref<1x512x128xbf16, #tpu.memory_space<vmem>>, %arg5: memref<1x1x2x128xf32, #tpu.memory_space<vmem>>) attributes {dimension_semantics = [#tpu.dimension_semantics<parallel>, #tpu.dimension_semantics<parallel>], iteration_bounds = array<i64: 4, 1>, scalar_prefetch = 0 : i64, scratch_operands = 0 : i64, tpu.core_type = #tpu.core_type<tc>, window_params = [{transform_indices = @transform_0, window_bounds = array<i64: 1, 512, 64>}, {transform_indices = @transform_1, window_bounds = array<i64: 1, 64, 128>}, {transform_indices = @transform_2, window_bounds = array<i64: 1, 512, 128>}, {transform_indices = @transform_3, window_bounds = array<i64: 1, 1, 2, 128>}]} {
    %c0 = arith.constant 0 : index
    %c0_0 = arith.constant 0 : index
    %c0_1 = arith.constant 0 : index
    %0 = vector.load %arg2[%c0, %c0_0, %c0_1] : memref<1x512x64xbf16, #tpu.memory_space<vmem>>, vector<1x512x64xbf16>
    %1 = vector.shape_cast %0 : vector<1x512x64xbf16> to vector<512x64xbf16>
    %c0_2 = arith.constant 0 : index
    %c0_3 = arith.constant 0 : index
    %c0_4 = arith.constant 0 : index
    %2 = vector.load %arg3[%c0_2, %c0_3, %c0_4] : memref<1x64x128xbf16, #tpu.memory_space<vmem>>, vector<1x64x128xbf16>
    %3 = vector.shape_cast %2 : vector<1x64x128xbf16> to vector<64x128xbf16>
    %cst = arith.constant dense<0.000000e+00> : vector<512x128xf32>
    %4 = tpu.matmul %1, %3, %cst {dimension_numbers = #tpu.dot_dimension_numbers<[1], [0], [0], [1], [0, 0, 1, 1], [], []>} : vector<512x64xbf16>, vector<64x128xbf16>, vector<512x128xf32> -> vector<512x128xf32>
    %5 = arith.truncf %4 : vector<512x128xf32> to vector<512x128xbf16>
    %c0_5 = arith.constant 0 : index
    %c0_6 = arith.constant 0 : index
    %c0_7 = arith.constant 0 : index
    %6 = vector.load %arg4[%c0_5, %c0_6, %c0_7] : memref<1x512x128xbf16, #tpu.memory_space<vmem>>, vector<1x512x128xbf16>
    %7 = vector.shape_cast %6 : vector<1x512x128xbf16> to vector<512x128xbf16>
    %8 = vector.shape_cast %5 : vector<512x128xbf16> to vector<1x512x128xbf16>
    tpu.vector_store %arg4[%c0_5, %c0_6, %c0_7], %8 {strides = array<i32>} : memref<1x512x128xbf16, #tpu.memory_space<vmem>>, vector<1x512x128xbf16>,
    %cst_8 = arith.constant dense<0.000000e+00> : vector<128xf32>
    %9 = vector.multi_reduction <add>, %4, %cst_8 [0] : vector<512x128xf32> to vector<128xf32>
    %10 = vector.shape_cast %9 : vector<128xf32> to vector<1x128xf32>
    %11 = arith.mulf %4, %4 : vector<512x128xf32>
    %cst_9 = arith.constant dense<0.000000e+00> : vector<128xf32>
    %12 = vector.multi_reduction <add>, %11, %cst_9 [0] : vector<512x128xf32> to vector<128xf32>
    %13 = vector.shape_cast %12 : vector<128xf32> to vector<1x128xf32>
    %14 = tpu.concatenate %10, %13 in 0 : vector<1x128xf32>, vector<1x128xf32> -> vector<2x128xf32>
    %15 = vector.shape_cast %14 : vector<2x128xf32> to vector<1x2x128xf32>
    %c0_10 = arith.constant 0 : index
    %c0_11 = arith.constant 0 : index
    %c0_12 = arith.constant 0 : index
    %c0_13 = arith.constant 0 : index
    %16 = vector.load %arg5[%c0_10, %c0_11, %c0_12, %c0_13] : memref<1x1x2x128xf32, #tpu.memory_space<vmem>>, vector<1x1x2x128xf32>
    %17 = vector.shape_cast %16 : vector<1x1x2x128xf32> to vector<1x2x128xf32>
    %18 = vector.shape_cast %15 : vector<1x2x128xf32> to vector<1x1x2x128xf32>
    tpu.vector_store %arg5[%c0_10, %c0_11, %c0_12, %c0_13], %18 {strides = array<i32>} : memref<1x1x2x128xf32, #tpu.memory_space<vmem>>, vector<1x1x2x128xf32>,
    return
  }
  func.func @transform_0(%arg0: i32, %arg1: i32) -> (i32, i32, i32) {
    %c0_i32 = arith.constant 0 : i32
    %c0_i32_0 = arith.constant 0 : i32
    return %arg0, %arg1, %c0_i32 : i32, i32, i32
  }
  func.func @transform_1(%arg0: i32, %arg1: i32) -> (i32, i32, i32) {
    %c0_i32 = arith.constant 0 : i32
    %c0_i32_0 = arith.constant 0 : i32
    %c0_i32_1 = arith.constant 0 : i32
    return %arg0, %c0_i32, %c0_i32_0 : i32, i32, i32
  }
  func.func @transform_2(%arg0: i32, %arg1: i32) -> (i32, i32, i32) {
    %c0_i32 = arith.constant 0 : i32
    %c0_i32_0 = arith.constant 0 : i32
    return %arg0, %arg1, %c0_i32 : i32, i32, i32
  }
  func.func @transform_3(%arg0: i32, %arg1: i32) -> (i32, i32, i32, i32) {
    %c0_i32 = arith.constant 0 : i32
    %c0_i32_0 = arith.constant 0 : i32
    %c0_i32_1 = arith.constant 0 : i32
    return %arg0, %arg1, %c0_i32, %c0_i32_0 : i32, i32, i32, i32
  }
}

module attributes {stable_mosaic.version = 11 : i64} {
  func.func @_scale_bias_relu_kernel(%arg0: i32, %arg1: i32, %arg2: memref<1x512x128xbf16, #tpu.memory_space<vmem>>, %arg3: memref<1x128xf32, #tpu.memory_space<vmem>>, %arg4: memref<1x128xf32, #tpu.memory_space<vmem>>, %arg5: memref<1x512x128xbf16, #tpu.memory_space<vmem>>) attributes {dimension_semantics = [#tpu.dimension_semantics<parallel>, #tpu.dimension_semantics<parallel>], iteration_bounds = array<i64: 4, 1>, scalar_prefetch = 0 : i64, scratch_operands = 0 : i64, tpu.core_type = #tpu.core_type<tc>, window_params = [{transform_indices = @transform_0, window_bounds = array<i64: 1, 512, 128>}, {pipeline_mode = #tpu.pipeline_mode<synchronous>, transform_indices = @transform_1, window_bounds = array<i64: 1, 128>}, {pipeline_mode = #tpu.pipeline_mode<synchronous>, transform_indices = @transform_2, window_bounds = array<i64: 1, 128>}, {transform_indices = @transform_3, window_bounds = array<i64: 1, 512, 128>}]} {
    %c0 = arith.constant 0 : index
    %c0_0 = arith.constant 0 : index
    %c0_1 = arith.constant 0 : index
    %0 = vector.load %arg2[%c0, %c0_0, %c0_1] : memref<1x512x128xbf16, #tpu.memory_space<vmem>>, vector<1x512x128xbf16>
    %1 = vector.shape_cast %0 : vector<1x512x128xbf16> to vector<512x128xbf16>
    %2 = arith.extf %1 : vector<512x128xbf16> to vector<512x128xf32>
    %c0_2 = arith.constant 0 : index
    %c0_3 = arith.constant 0 : index
    %3 = vector.load %arg3[%c0_2, %c0_3] : memref<1x128xf32, #tpu.memory_space<vmem>>, vector<1x128xf32>
    %4 = vector.broadcast %3 : vector<1x128xf32> to vector<512x128xf32>
    %5 = arith.mulf %2, %4 : vector<512x128xf32>
    %c0_4 = arith.constant 0 : index
    %c0_5 = arith.constant 0 : index
    %6 = vector.load %arg4[%c0_4, %c0_5] : memref<1x128xf32, #tpu.memory_space<vmem>>, vector<1x128xf32>
    %7 = vector.broadcast %6 : vector<1x128xf32> to vector<512x128xf32>
    %8 = arith.addf %5, %7 : vector<512x128xf32>
    %cst = arith.constant 0.000000e+00 : f32
    %9 = vector.broadcast %cst : f32 to vector<512x128xf32>
    %10 = arith.maximumf %8, %9 : vector<512x128xf32>
    %11 = arith.truncf %10 : vector<512x128xf32> to vector<512x128xbf16>
    %c0_6 = arith.constant 0 : index
    %c0_7 = arith.constant 0 : index
    %c0_8 = arith.constant 0 : index
    %12 = vector.load %arg5[%c0_6, %c0_7, %c0_8] : memref<1x512x128xbf16, #tpu.memory_space<vmem>>, vector<1x512x128xbf16>
    %13 = vector.shape_cast %12 : vector<1x512x128xbf16> to vector<512x128xbf16>
    %14 = vector.shape_cast %11 : vector<512x128xbf16> to vector<1x512x128xbf16>
    tpu.vector_store %arg5[%c0_6, %c0_7, %c0_8], %14 {strides = array<i32>} : memref<1x512x128xbf16, #tpu.memory_space<vmem>>, vector<1x512x128xbf16>,
    return
  }
  func.func @transform_0(%arg0: i32, %arg1: i32) -> (i32, i32, i32) {
    %c0_i32 = arith.constant 0 : i32
    %c0_i32_0 = arith.constant 0 : i32
    return %arg0, %arg1, %c0_i32 : i32, i32, i32
  }
  func.func @transform_1(%arg0: i32, %arg1: i32) -> (i32, i32) {
    %c0_i32 = arith.constant 0 : i32
    %c0_i32_0 = arith.constant 0 : i32
    %c0_i32_1 = arith.constant 0 : i32
    return %c0_i32, %c0_i32_0 : i32, i32
  }
  func.func @transform_2(%arg0: i32, %arg1: i32) -> (i32, i32) {
    %c0_i32 = arith.constant 0 : i32
    %c0_i32_0 = arith.constant 0 : i32
    %c0_i32_1 = arith.constant 0 : i32
    return %c0_i32, %c0_i32_0 : i32, i32
  }
  func.func @transform_3(%arg0: i32, %arg1: i32) -> (i32, i32, i32) {
    %c0_i32 = arith.constant 0 : i32
    %c0_i32_0 = arith.constant 0 : i32
    return %arg0, %arg1, %c0_i32 : i32, i32, i32
  }
}

module attributes {stable_mosaic.version = 11 : i64} {
  func.func @_gemm_tanh_kernel(%arg0: i32, %arg1: i32, %arg2: memref<1x512x32xbf16, #tpu.memory_space<vmem>>, %arg3: memref<1x32x128xbf16, #tpu.memory_space<vmem>>, %arg4: memref<1x512x128xf32, #tpu.memory_space<vmem>>) attributes {dimension_semantics = [#tpu.dimension_semantics<parallel>, #tpu.dimension_semantics<parallel>], iteration_bounds = array<i64: 4, 4>, scalar_prefetch = 0 : i64, scratch_operands = 0 : i64, tpu.core_type = #tpu.core_type<tc>, window_params = [{transform_indices = @transform_0, window_bounds = array<i64: 1, 512, 32>}, {transform_indices = @transform_1, window_bounds = array<i64: 1, 32, 128>}, {transform_indices = @transform_2, window_bounds = array<i64: 1, 512, 128>}]} {
    %c0 = arith.constant 0 : index
    %c0_0 = arith.constant 0 : index
    %c0_1 = arith.constant 0 : index
    %0 = vector.load %arg2[%c0, %c0_0, %c0_1] : memref<1x512x32xbf16, #tpu.memory_space<vmem>>, vector<1x512x32xbf16>
    %1 = vector.shape_cast %0 : vector<1x512x32xbf16> to vector<512x32xbf16>
    %c0_2 = arith.constant 0 : index
    %c0_3 = arith.constant 0 : index
    %c0_4 = arith.constant 0 : index
    %2 = vector.load %arg3[%c0_2, %c0_3, %c0_4] : memref<1x32x128xbf16, #tpu.memory_space<vmem>>, vector<1x32x128xbf16>
    %3 = vector.shape_cast %2 : vector<1x32x128xbf16> to vector<32x128xbf16>
    %cst = arith.constant dense<0.000000e+00> : vector<512x128xf32>
    %4 = tpu.matmul %1, %3, %cst {dimension_numbers = #tpu.dot_dimension_numbers<[1], [0], [0], [1], [0, 0, 1, 1], [], []>} : vector<512x32xbf16>, vector<32x128xbf16>, vector<512x128xf32> -> vector<512x128xf32>
    %5 = math.tanh %4 : vector<512x128xf32>
    %c0_5 = arith.constant 0 : index
    %c0_6 = arith.constant 0 : index
    %c0_7 = arith.constant 0 : index
    %6 = vector.load %arg4[%c0_5, %c0_6, %c0_7] : memref<1x512x128xf32, #tpu.memory_space<vmem>>, vector<1x512x128xf32>
    %7 = vector.shape_cast %6 : vector<1x512x128xf32> to vector<512x128xf32>
    %8 = vector.shape_cast %5 : vector<512x128xf32> to vector<1x512x128xf32>
    tpu.vector_store %arg4[%c0_5, %c0_6, %c0_7], %8 {strides = array<i32>} : memref<1x512x128xf32, #tpu.memory_space<vmem>>, vector<1x512x128xf32>,
    return
  }
  func.func @transform_0(%arg0: i32, %arg1: i32) -> (i32, i32, i32) {
    %c0_i32 = arith.constant 0 : i32
    %c0_i32_0 = arith.constant 0 : i32
    return %arg0, %arg1, %c0_i32 : i32, i32, i32
  }
  func.func @transform_1(%arg0: i32, %arg1: i32) -> (i32, i32, i32) {
    %c0_i32 = arith.constant 0 : i32
    %c0_i32_0 = arith.constant 0 : i32
    %c0_i32_1 = arith.constant 0 : i32
    return %arg0, %c0_i32, %c0_i32_0 : i32, i32, i32
  }
  func.func @transform_2(%arg0: i32, %arg1: i32) -> (i32, i32, i32) {
    %c0_i32 = arith.constant 0 : i32
    %c0_i32_0 = arith.constant 0 : i32
    return %arg0, %arg1, %c0_i32 : i32, i32, i32
  }
}

</mosaic_0001>

<bundles_post_ra>
// kernel: generator_forward.10
= control target key start
LH: loop header
LB: loop body
LE: loop exit
PB: predicated region body
PF: predicated region fallthrough
CT: control target
= control target key end

     0   :  { %s114_s0 = inlined_call_operand.vmem [shape: bf16[1,32,128], index: 0, kind: input, shape index: {}]   ;;  %s115_s1 = inlined_call_operand.vmem [shape: f32[1,128], index: 1, kind: input, shape index: {}]   ;;  %s116_s2 = inlined_call_operand.vmem [shape: f32[1,128], index: 2, kind: input, shape index: {}]   ;;  %s117_s3 = inlined_call_operand.vmem [shape: bf16[1,32,128], index: 3, kind: output, shape index: {}]  }
   0x1   :  { %v55_v0 = vld [vmem:[%s114_s0] sm:$0xff]   ;;  %v72_v5 = vld [vmem:[%s114_s0 + $0x8] sm:$0xff]  }
   0x2   :  { %v74_v1 = vld [vmem:[%s115_s1] ss:$0 sm:$0xff]  ;;  %v56_v2 = vunpack.c.l.bf16 %v55_v0  ;;  %v57_v3 = vunpack.c.h.bf16 %v55_v0  ;;  %v60_v6 = vunpack.c.l.bf16 %v72_v5  ;;  %v61_v7 = vunpack.c.h.bf16 %v72_v5 }
   0x3   :  { %v75_v4 = vld [vmem:[%s116_s2] ss:$0 sm:$0xff] }
   0x4   :  { %v26_v8 = vmul.f32 %v74_v1, %v56_v2  ;;  %v27_v9 = vmul.f32 %v74_v1, %v57_v3  ;;  %v28_v10 = vmul.f32 %v74_v1, %v60_v6  ;;  %v29_v11 = vmul.f32 %v74_v1, %v61_v7 }
   0x6   :  { %v34_v12 = vadd.f32 %v75_v4, %v26_v8  ;;  %v35_v13 = vadd.f32 %v75_v4, %v27_v9  ;;  %v36_v14 = vadd.f32 %v75_v4, %v28_v10  ;;  %v37_v15 = vadd.f32 %v75_v4, %v29_v11 }
   0x8   :  { %v38_v16 = vmax.f32 %v34_v12, 0.0  ;;  %v39_v17 = vmax.f32 %v35_v13, 0.0  ;;  %v40_v18 = vmax.f32 %v36_v14, 0.0  ;;  %v41_v19 = vmax.f32 %v37_v15, 0.0 }
   0xa   :  { %v65_v20 = vpack.c.bf16 %v39_v17, %v38_v16  ;;  %v70_v21 = vpack.c.bf16 %v41_v19, %v40_v18 }
   0xc   :  { %66 = vst [vmem:[%s117_s3] sm:$0xff] %v65_v20  }
   0xd   :  { %73 = vst [vmem:[%s117_s3 + $0x8] sm:$0xff] %v70_v21  }

// kernel: generator_forward.9
= control target key start
LH: loop header
LB: loop body
LE: loop exit
PB: predicated region body
PF: predicated region fallthrough
CT: control target
= control target key end

     0   :  { %9 = vsyncpa [#allocation3], 0  ;;  %s765_s15 = smov [#allocation2]   ;;  %s766_s17 = smov 1024   ;;  %s892_s0 = inlined_call_operand.vmem [shape: bf16[1,8,16], index: 0, kind: input, shape index: {}]   ;;  %s893_s1 = inlined_call_operand.hbm [shape: bf16[1,16,2048], index: 1, kind: input, shape index: {}]   ;;  %s894_s2 = inlined_call_operand.vmem [shape: bf16[1,8,2048], index: 2, kind: output, shape index: {0}]   ;;  %s895_s3 = inlined_call_operand.vmem [shape: f32[1,1,2,2048], index: 3, kind: output, shape index: {1}]  }
   0x1   :  { %s16_s14 = sshll.u32 %s893_s1, 4  ;;  %s18_s16 = sshll.u32 %s765_s15, 4  ;;  %s17_s14 = int_to_ptr.hbm [resolvable:$true] %s16_s14  ;;  %s19_s16 = int_to_ptr.vmem [resolvable:$true] %s18_s16 }
   0x2   :  { %s767_s18 = smov 64  }
   0x3   :  { %24 = dma.hbm_to_vmem [thread:$0]  %s17_s14, 2048, %s19_s16, [#allocation3], %s766_s17, %s766_s17, %s767_s18  }
   0x4   :  { %763 = dma.done.wait [#allocation3], 2048  }
   0x5   :  { %764 = vsyncadd [#allocation3], 4294965248  ;;  %vm127_vm0 = vcmask 130048   ;;  %v642_v0 = vld [vmem:[#allocation2] sm:$0xf]  ;;  %vm563_vm1 = vcmask 1040384  }
   0x6   :  { %v728_v1 = vld [vmem:[#allocation2 + $0x3c] sm:$0xf0]  ;;  %v720_v2 = vld [vmem:[#allocation2 + $0x4] sm:$0xf]  ;;  %v650_v5 = vld [vmem:[#allocation2 + $0x8] sm:$0xf] }
   0x7   :  { %v643_v3 = vor.u32 %v728_v1, %v642_v0  ;;  %v644_v4 = vld [vmem:[#allocation2 + $0x40] sm:$0xf0]  ;;  %v729_v6 = vld [vmem:[#allocation2 + $0x44] sm:$0xf0]  ;;  %v721_v9 = vld [vmem:[#allocation2 + $0xc] sm:$0xf] }
   0x8   :  { %v647_v7 = vor.u32 %v720_v2, %v644_v4  ;;  %v651_v8 = vor.u32 %v729_v6, %v650_v5  ;;  %v652_v10 = vld [vmem:[#allocation2 + $0x48] sm:$0xf0]  ;;  %v794_v11 = vld [vmem:[%s892_s0] sm:$0xf]  ;;  %v666_v13 = vld [vmem:[#allocation2 + $0x18] sm:$0xf] }
   0x9   :  { %138 = vmatpush.bf16.msra.mxu0 %v643_v3  ;;  %v655_v12 = vor.u32 %v721_v9, %v652_v10  ;;  %v731_v14 = vld [vmem:[#allocation2 + $0x54] sm:$0xf0]  ;;  %v723_v15 = vld [vmem:[#allocation2 + $0x1c] sm:$0xf]  ;;  %v722_v18 = vld [vmem:[#allocation2 + $0x14] sm:$0xf] }
   0xa   :  { %151 = vmatpush.bf16.msra.mxu1 %v647_v7  ;;  %164 = vmatpush.bf16.msra.mxu2 %v651_v8  ;;  %v667_v16 = vor.u32 %v731_v14, %v666_v13  ;;  %v668_v17 = vld [vmem:[#allocation2 + $0x58] sm:$0xf0]  ;;  %v660_v19 = vld [vmem:[#allocation2 + $0x50] sm:$0xf0]  ;;  %v658_v22 = vld [vmem:[#allocation2 + $0x10] sm:$0xf] }
   0xb   :  { %177 = vmatpush.bf16.msra.mxu3 %v655_v12  ;;  %v671_v20 = vor.u32 %v723_v15, %v668_v17  ;;  %v663_v21 = vor.u32 %v722_v18, %v660_v19  ;;  %v730_v23 = vld [vmem:[#allocation2 + $0x4c] sm:$0xf0]  ;;  %v682_v24 = vld [vmem:[#allocation2 + $0x28] sm:$0xf]  ;;  %v725_v27 = vld [vmem:[#allocation2 + $0x2c] sm:$0xf] }
   0xc   :  { %704 = vmatmul.msk.bf16.vlgmr.msra.gmra.mxu0 %vm127_vm0, %v794_v11  ;;  %v659_v25 = vor.u32 %v730_v23, %v658_v22  ;;  %v733_v26 = vld [vmem:[#allocation2 + $0x64] sm:$0xf0]  ;;  %v684_v28 = vld [vmem:[#allocation2 + $0x68] sm:$0xf0]  ;;  %v724_v31 = vld [vmem:[#allocation2 + $0x24] sm:$0xf] }
   0xd   :  { %705 = vmatmul.msk.bf16.vlgmr.msra.gmra.mxu1 %vm127_vm0, %v794_v11  ;;  %706 = vmatmul.msk.bf16.vlgmr.msra.gmra.mxu2 %vm127_vm0, %v794_v11  ;;  %v683_v29 = vor.u32 %v733_v26, %v682_v24  ;;  %v687_v30 = vor.u32 %v725_v27, %v684_v28  ;;  %v676_v32 = vld [vmem:[#allocation2 + $0x60] sm:$0xf0]  ;;  %v674_v33 = vld [vmem:[#allocation2 + $0x20] sm:$0xf]  ;;  %v698_v37 = vld [vmem:[#allocation2 + $0x38] sm:$0xf] }
   0xe   :  { %216 = vmatpush.bf16.msrb.mxu2 %v667_v16  ;;  %707 = vmatmul.msk.bf16.vlgmr.msra.gmra.mxu3 %vm127_vm0, %v794_v11  ;;  %v679_v34 = vor.u32 %v724_v31, %v676_v32  ;;  %v732_v35 = vld [vmem:[#allocation2 + $0x5c] sm:$0xf0]  ;;  %v735_v38 = vld [vmem:[#allocation2 + $0x74] sm:$0xf0]  ;;  %v727_v39 = vld [vmem:[#allocation2 + $0x3c] sm:$0xf] }
   0xf   :  { %203 = vmatpush.bf16.msrb.mxu1 %v663_v21  ;;  %229 = vmatpush.bf16.msrb.mxu3 %v671_v20  ;;  %v675_v36 = vor.u32 %v732_v35, %v674_v33  ;;  %v700_v40 = vld [vmem:[#allocation2 + $0x78] sm:$0xf0]  ;;  %v726_v41 = vld [vmem:[#allocation2 + $0x34] sm:$0xf]  ;;  %v690_v43 = vld [vmem:[#allocation2 + $0x30] sm:$0xf]  ;;  %v699_v45 = vor.u32 %v735_v38, %v698_v37 }
  0x10   :  { %190 = vmatpush.bf16.msrb.mxu0 %v659_v25  ;;  %v692_v42 = vld [vmem:[#allocation2 + $0x70] sm:$0xf0]  ;;  %v734_v44 = vld [vmem:[#allocation2 + $0x6c] sm:$0xf0]  ;;  %v703_v46 = vor.u32 %v727_v39, %v700_v40  ;;  %vm608_vm2 = vcmask 1041408   ;;  %vm610_vm3 = vcmask 1045508  }
  0x11   :  { %v695_v47 = vor.u32 %v726_v41, %v692_v42  ;;  %v691_v48 = vor.u32 %v734_v44, %v690_v43  ;;  %vm612_vm4 = vcmask 1043456  }
  0x12   :  { %268 = vmatpush.bf16.msra.mxu2 %v683_v29 }
  0x13   :  { %281 = vmatpush.bf16.msra.mxu3 %v687_v30  ;;  %255 = vmatpush.bf16.msra.mxu1 %v679_v34 }
  0x14   :  { %242 = vmatpush.bf16.msra.mxu0 %v675_v36 }
  0x1c   :  { %708 = vmatmul.msk.bf16.vlgmr.msrb.gmra.mxu0 %vm127_vm0, %v794_v11 }
  0x1d   :  { %709 = vmatmul.msk.bf16.vlgmr.msrb.gmra.mxu1 %vm127_vm0, %v794_v11  ;;  %710 = vmatmul.msk.bf16.vlgmr.msrb.gmra.mxu2 %vm127_vm0, %v794_v11 }
  0x1e   :  { %711 = vmatmul.msk.bf16.vlgmr.msrb.gmra.mxu3 %vm127_vm0, %v794_v11  ;;  %320 = vmatpush.bf16.msrb.mxu2 %v699_v45 }
  0x1f   :  { %333 = vmatpush.bf16.msrb.mxu3 %v703_v46  ;;  %307 = vmatpush.bf16.msrb.mxu1 %v695_v47 }
  0x20   :  { %294 = vmatpush.bf16.msrb.mxu0 %v691_v48 }
  0x2c   :  { %712 = vmatmul.msk.bf16.vlgmr.msra.gmra.mxu0 %vm127_vm0, %v794_v11 }
  0x2d   :  { %713 = vmatmul.msk.bf16.vlgmr.msra.gmra.mxu1 %vm127_vm0, %v794_v11  ;;  %714 = vmatmul.msk.bf16.vlgmr.msra.gmra.mxu2 %vm127_vm0, %v794_v11 }
  0x2e   :  { %715 = vmatmul.msk.bf16.vlgmr.msra.gmra.mxu3 %vm127_vm0, %v794_v11 }
  0x3c   :  { %716 = vmatmul.msk.bf16.vlgmr.msrb.gmra.mxu0 %vm127_vm0, %v794_v11 }
  0x3d   :  { %717 = vmatmul.msk.bf16.vlgmr.msrb.gmra.mxu1 %vm127_vm0, %v794_v11  ;;  %718 = vmatmul.msk.bf16.vlgmr.msrb.gmra.mxu2 %vm127_vm0, %v794_v11 }
  0x3e   :  { %719 = vmatmul.msk.bf16.vlgmr.msrb.gmra.mxu3 %vm127_vm0, %v794_v11 }
  0x89   :  { %v140_v49 = vpop.f32.mrf.mxu0 }
  0x8a   :  { %v355_v50 = vrot.slane %v140_v49, 4  ;;  %v451_v51 = vmul.f32 %v140_v49, %v140_v49  ;;  %v153_v52 = vpop.f32.mrf.mxu1 }
  0x8b   :  { %v339_v53 = vpack.c.bf16 %v153_v52, %v140_v49  ;;  %v361_v54 = vrot.slane %v153_v52, 4  ;;  %v452_v55 = vmul.f32 %v153_v52, %v153_v52 }
  0x8c   :  { %v467_v56 = vrot.slane %v451_v51, 4  ;;  %v356_v57 = vadd.f32 %v355_v50, %v140_v49 }
  0x8d   :  { %347 = vst [vmem:[%s894_s2] sm:$0xff] %v339_v53  ;;  %v362_v58 = vadd.f32 %v361_v54, %v153_v52  ;;  %v473_v59 = vrot.slane %v452_v55, 4 }
  0x8e   :  { %v468_v60 = vadd.f32 %v467_v56, %v451_v51  ;;  %v357_v0 = vrot.slane %v356_v57, 2 }
  0x8f   :  { %v363_v61 = vrot.slane %v362_v58, 2  ;;  %v474_v62 = vadd.f32 %v473_v59, %v452_v55 }
  0x90   :  { %v166_v63 = vpop.f32.mrf.mxu2  ;;  %v469_v6 = vrot.slane %v468_v60, 2  ;;  %v358_v16 = vadd.f32 %v357_v0, %v356_v57 }
  0x91   :  { %v475_v1 = vrot.slane %v474_v62, 2  ;;  %v367_v2 = vrot.slane %v166_v63, 4  ;;  %v453_v3 = vmul.f32 %v166_v63, %v166_v63  ;;  %v179_v4 = vpop.f32.mrf.mxu3  ;;  %v142_v5 = vpop.f32.mrf.mxu0  ;;  %v364_v7 = vadd.f32 %v363_v61, %v362_v58 }
  0x92   :  { %v340_v8 = vpack.c.bf16 %v179_v4, %v166_v63  ;;  %v373_v9 = vrot.slane %v179_v4, 4  ;;  %v155_v10 = vpop.f32.mrf.mxu1  ;;  %v454_v15 = vmul.f32 %v179_v4, %v179_v4  ;;  %v470_v20 = vadd.f32 %v469_v6, %v468_v60 }
  0x93   :  { %v476_v11 = vadd.f32 %v475_v1, %v474_v62  ;;  %v368_v12 = vadd.f32 %v367_v2, %v166_v63  ;;  %v479_v13 = vrot.slane %v453_v3, 4  ;;  %v365_v21 = vrot.slane %v364_v7, 1 }
  0x94   :  { %348 = vst [vmem:[%s894_s2 + $0x8] sm:$0xff] %v340_v8  ;;  %v374_v14 = vadd.f32 %v373_v9, %v179_v4  ;;  %v485_v23 = vrot.slane %v454_v15, 4  ;;  %v359_v30 = vrot.slane %v358_v16, 1  ;;  %v471_v35 = vrot.slane %v470_v20, 1 }
  0x95   :  { %v477_v17 = vrot.slane %v476_v11, 1  ;;  %v369_v18 = vrot.slane %v368_v12, 2  ;;  %v480_v19 = vadd.f32 %v479_v13, %v453_v3  ;;  %v366_v36 = vadd.f32 %v365_v21, %v364_v7 }
  0x96   :  { %v375_v22 = vrot.slane %v374_v14, 2  ;;  %v486_v28 = vadd.f32 %v485_v23, %v454_v15  ;;  %v360_v51 = vadd.f32 %v359_v30, %v358_v16  ;;  %v472_v52 = vadd.f32 %v471_v35, %v470_v20 }
  0x97   :  { %v370_v24 = vadd.f32 %v369_v18, %v368_v12  ;;  %v481_v25 = vrot.slane %v480_v19, 2  ;;  %v478_v26 = vadd.f32 %v477_v17, %v476_v11 }
  0x98   :  { %v376_v27 = vadd.f32 %v375_v22, %v374_v14  ;;  %v168_v29 = vpop.f32.mrf.mxu2  ;;  %v487_v37 = vrot.slane %v486_v28, 2  ;;  %v564_v5 = vsel %vm563_vm1, %v360_v51, %v472_v52 }
  0x99   :  { %v371_v31 = vrot.slane %v370_v24, 1  ;;  %v482_v32 = vadd.f32 %v481_v25, %v480_v19  ;;  %v181_v33 = vpop.f32.mrf.mxu3  ;;  %v192_v34 = vpop.f32.mrf.mxu0  ;;  %v565_v43 = vsel %vm563_vm1, %v366_v36, %v478_v26 }
  0x9a   :  { %v379_v38 = vrot.slane %v192_v34, 4  ;;  %v205_v39 = vpop.f32.mrf.mxu1  ;;  %v455_v41 = vmul.f32 %v192_v34, %v192_v34  ;;  %v377_v45 = vrot.slane %v376_v27, 1  ;;  %v488_v46 = vadd.f32 %v487_v37, %v486_v28 }
  0x9b   :  { %v483_v40 = vrot.slane %v482_v32, 1  ;;  %v341_v42 = vpack.c.bf16 %v205_v39, %v192_v34  ;;  %v372_v44 = vadd.f32 %v371_v31, %v370_v24  ;;  %v385_v49 = vrot.slane %v205_v39, 4 }
  0x9c   :  { %v491_v48 = vrot.slane %v455_v41, 4  ;;  %v456_v50 = vmul.f32 %v205_v39, %v205_v39  ;;  %v489_v53 = vrot.slane %v488_v46, 1  ;;  %v380_v54 = vadd.f32 %v379_v38, %v192_v34 }
  0x9d   :  { %v484_v47 = vadd.f32 %v483_v40, %v482_v32  ;;  %349 = vst [vmem:[%s894_s2 + $0x10] sm:$0xff] %v341_v42  ;;  %v386_v57 = vadd.f32 %v385_v49, %v205_v39  ;;  %v596_v59 = vrot.slane %v565_v43, 6  ;;  %v378_v60 = vadd.f32 %v377_v45, %v376_v27 }
  0x9e   :  { %v492_v56 = vadd.f32 %v491_v48, %v455_v41  ;;  %v497_v58 = vrot.slane %v456_v50, 4  ;;  %v490_v61 = vadd.f32 %v489_v53, %v488_v46  ;;  %v381_v11 = vrot.slane %v380_v54, 2 }
  0x9f   :  { %v566_v55 = vsel %vm563_vm1, %v372_v44, %v484_v47  ;;  %v387_v0 = vrot.slane %v386_v57, 2  ;;  %v609_v18 = vsel %vm608_vm2, %v564_v5, %v596_v59 }
  0xa0   :  { %v218_v62 = vpop.f32.mrf.mxu2  ;;  %v597_v63 = vrot.slane %v566_v55, 4  ;;  %v498_v1 = vadd.f32 %v497_v58, %v456_v50  ;;  %v567_v6 = vsel %vm563_vm1, %v378_v60, %v490_v61  ;;  %v493_v12 = vrot.slane %v492_v56, 2 }
  0xa1   :  { %v391_v2 = vrot.slane %v218_v62, 4  ;;  %v231_v3 = vpop.f32.mrf.mxu3  ;;  %v194_v4 = vpop.f32.mrf.mxu0  ;;  %v457_v7 = vmul.f32 %v218_v62, %v218_v62  ;;  %v598_v10 = vrot.slane %v567_v6, 2  ;;  %v388_v14 = vadd.f32 %v387_v0, %v386_v57 }
  0xa2   :  { %v342_v8 = vpack.c.bf16 %v231_v3, %v218_v62  ;;  %v207_v9 = vpop.f32.mrf.mxu1  ;;  %v499_v13 = vrot.slane %v498_v1, 2  ;;  %v397_v17 = vrot.slane %v231_v3, 4  ;;  %v382_v25 = vadd.f32 %v381_v11, %v380_v54 }
  0xa3   :  { %v392_v15 = vadd.f32 %v391_v2, %v218_v62  ;;  %v503_v16 = vrot.slane %v457_v7, 4  ;;  %v611_v19 = vsel %vm610_vm3, %v597_v63, %v598_v10  ;;  %v494_v26 = vadd.f32 %v493_v12, %v492_v56 }
  0xa4   :  { %350 = vst [vmem:[%s894_s2 + $0x18] sm:$0xff] %v342_v8  ;;  %v500_v20 = vadd.f32 %v499_v13, %v498_v1  ;;  %v613_v21 = vsel %vm612_vm4, %v609_v18, %v611_v19  ;;  %v398_v24 = vadd.f32 %v397_v17, %v231_v3  ;;  %v458_v28 = vmul.f32 %v231_v3, %v231_v3 }
  0xa5   :  { %v393_v22 = vrot.slane %v392_v15, 2  ;;  %v504_v23 = vadd.f32 %v503_v16, %v457_v7  ;;  %627 = vst [vmem:[%s895_s3] sm:$0xff] %v613_v21  ;;  %v389_v29 = vrot.slane %v388_v14, 1  ;;  %v383_v43 = vrot.slane %v382_v25, 1 }
  0xa6   :  { %v501_v27 = vrot.slane %v500_v20, 1  ;;  %v399_v32 = vrot.slane %v398_v24, 2  ;;  %v509_v35 = vrot.slane %v458_v28, 4  ;;  %v495_v47 = vrot.slane %v494_v26, 1 }
  0xa7   :  { %v394_v30 = vadd.f32 %v393_v22, %v392_v15  ;;  %v505_v31 = vrot.slane %v504_v23, 2  ;;  %v390_v48 = vadd.f32 %v389_v29, %v388_v14  ;;  %v384_v63 = vadd.f32 %v383_v43, %v382_v25 }
  0xa8   :  { %v220_v33 = vpop.f32.mrf.mxu2  ;;  %v502_v34 = vadd.f32 %v501_v27, %v500_v20  ;;  %v400_v40 = vadd.f32 %v399_v32, %v398_v24  ;;  %v510_v44 = vadd.f32 %v509_v35, %v458_v28  ;;  %v496_v0 = vadd.f32 %v495_v47, %v494_v26 }
  0xa9   :  { %v233_v36 = vpop.f32.mrf.mxu3  ;;  %v244_v37 = vpop.f32.mrf.mxu0  ;;  %v395_v38 = vrot.slane %v394_v30, 1  ;;  %v506_v39 = vadd.f32 %v505_v31, %v504_v23 }
  0xaa   :  { %v403_v41 = vrot.slane %v244_v37, 4  ;;  %v257_v42 = vpop.f32.mrf.mxu1  ;;  %v459_v45 = vmul.f32 %v244_v37, %v244_v37  ;;  %v401_v50 = vrot.slane %v400_v40, 1  ;;  %v511_v51 = vrot.slane %v510_v44, 2 }
  0xab   :  { %v343_v46 = vpack.c.bf16 %v257_v42, %v244_v37  ;;  %v507_v49 = vrot.slane %v506_v39, 1  ;;  %v409_v54 = vrot.slane %v257_v42, 4  ;;  %v569_v55 = vsel %vm563_vm1, %v390_v48, %v502_v34 }
  0xac   :  { %v404_v52 = vadd.f32 %v403_v41, %v244_v37  ;;  %v515_v53 = vrot.slane %v459_v45, 4  ;;  %v396_v56 = vadd.f32 %v395_v38, %v394_v30  ;;  %v460_v58 = vmul.f32 %v257_v42, %v257_v42 }
  0xad   :  { %351 = vst [vmem:[%s894_s2 + $0x20] sm:$0xff] %v343_v46  ;;  %v508_v57 = vadd.f32 %v507_v49, %v506_v39  ;;  %v512_v59 = vadd.f32 %v511_v51, %v510_v44  ;;  %v410_v62 = vadd.f32 %v409_v54, %v257_v42  ;;  %v599_v4 = vrot.slane %v569_v55, 6 }
  0xae   :  { %v405_v60 = vrot.slane %v404_v52, 2  ;;  %v516_v61 = vadd.f32 %v515_v53, %v459_v45  ;;  %v521_v2 = vrot.slane %v460_v58, 4  ;;  %v402_v5 = vadd.f32 %v401_v50, %v400_v40 }
  0xaf   :  { %v570_v1 = vsel %vm563_vm1, %v396_v56, %v508_v57  ;;  %v513_v6 = vrot.slane %v512_v59, 1  ;;  %v411_v10 = vrot.slane %v410_v62, 2  ;;  %v568_v23 = vsel %vm563_vm1, %v384_v63, %v496_v0 }
  0xb0   :  { %v270_v3 = vpop.f32.mrf.mxu2  ;;  %v517_v7 = vrot.slane %v516_v61, 2  ;;  %v522_v11 = vadd.f32 %v521_v2, %v460_v58  ;;  %v600_v15 = vrot.slane %v570_v1, 4  ;;  %v406_v17 = vadd.f32 %v405_v60, %v404_v52 }
  0xb1   :  { %v283_v8 = vpop.f32.mrf.mxu3  ;;  %v246_v9 = vpop.f32.mrf.mxu0  ;;  %v415_v12 = vrot.slane %v270_v3, 4  ;;  %v461_v13 = vmul.f32 %v270_v3, %v270_v3  ;;  %v514_v16 = vadd.f32 %v513_v6, %v512_v59  ;;  %v412_v25 = vadd.f32 %v411_v10, %v410_v62 }
  0xb2   :  { %v259_v14 = vpop.f32.mrf.mxu1  ;;  %v344_v18 = vpack.c.bf16 %v283_v8, %v270_v3  ;;  %v518_v19 = vadd.f32 %v517_v7, %v516_v61  ;;  %v523_v20 = vrot.slane %v522_v11, 2  ;;  %v421_v26 = vrot.slane %v283_v8, 4 }
  0xb3   :  { %v416_v21 = vadd.f32 %v415_v12, %v270_v3  ;;  %v527_v22 = vrot.slane %v461_v13, 4  ;;  %v571_v24 = vsel %vm563_vm1, %v402_v5, %v514_v16  ;;  %v614_v27 = vsel %vm608_vm2, %v568_v23, %v599_v4 }
  0xb4   :  { %352 = vst [vmem:[%s894_s2 + $0x28] sm:$0xff] %v344_v18  ;;  %v601_v28 = vrot.slane %v571_v24, 2  ;;  %v524_v29 = vadd.f32 %v523_v20, %v522_v11  ;;  %v407_v31 = vrot.slane %v406_v17, 1  ;;  %v422_v33 = vadd.f32 %v421_v26, %v283_v8 }
  0xb5   :  { %v417_v30 = vrot.slane %v416_v21, 2  ;;  %v528_v32 = vadd.f32 %v527_v22, %v461_v13  ;;  %v462_v34 = vmul.f32 %v283_v8, %v283_v8  ;;  %v519_v36 = vrot.slane %v518_v19, 1 }
  0xb6   :  { %v615_v35 = vsel %vm610_vm3, %v600_v15, %v601_v28  ;;  %v525_v37 = vrot.slane %v524_v29, 1  ;;  %v413_v41 = vrot.slane %v412_v25, 1  ;;  %v423_v43 = vrot.slane %v422_v33, 2 }
  0xb7   :  { %v418_v38 = vadd.f32 %v417_v30, %v416_v21  ;;  %v616_v40 = vsel %vm612_vm4, %v614_v27, %v615_v35  ;;  %v529_v42 = vrot.slane %v528_v32, 2  ;;  %v533_v48 = vrot.slane %v462_v34, 4 }
  0xb8   :  { %v272_v39 = vpop.f32.mrf.mxu2  ;;  %628 = vst [vmem:[%s895_s3 + $0x8] sm:$0xff] %v616_v40  ;;  %v526_v46 = vadd.f32 %v525_v37, %v524_v29  ;;  %v424_v52 = vadd.f32 %v423_v43, %v422_v33  ;;  %v408_v55 = vadd.f32 %v407_v31, %v406_v17  ;;  %v520_v57 = vadd.f32 %v519_v36, %v518_v19 }
  0xb9   :  { %v285_v44 = vpop.f32.mrf.mxu3  ;;  %v296_v45 = vpop.f32.mrf.mxu0  ;;  %v419_v47 = vrot.slane %v418_v38, 1  ;;  %v530_v51 = vadd.f32 %v529_v42, %v528_v32  ;;  %v534_v56 = vadd.f32 %v533_v48, %v462_v34  ;;  %v414_v58 = vadd.f32 %v413_v41, %v412_v25 }
  0xba   :  { %v427_v49 = vrot.slane %v296_v45, 4  ;;  %v309_v50 = vpop.f32.mrf.mxu1  ;;  %v463_v53 = vmul.f32 %v296_v45, %v296_v45  ;;  %v425_v4 = vrot.slane %v424_v52, 1  ;;  %v572_v10 = vsel %vm563_vm1, %v408_v55, %v520_v57 }
  0xbb   :  { %v345_v54 = vpack.c.bf16 %v309_v50, %v296_v45  ;;  %v531_v59 = vrot.slane %v530_v51, 1  ;;  %v535_v61 = vrot.slane %v534_v56, 2  ;;  %v433_v63 = vrot.slane %v309_v50, 4 }
  0xbc   :  { %v539_v60 = vrot.slane %v463_v53, 4  ;;  %v428_v62 = vadd.f32 %v427_v49, %v296_v45  ;;  %v464_v0 = vmul.f32 %v309_v50, %v309_v50  ;;  %v573_v1 = vsel %vm563_vm1, %v414_v58, %v526_v46 }
  0xbd   :  { %353 = vst [vmem:[%s894_s2 + $0x30] sm:$0xff] %v345_v54  ;;  %v420_v2 = vadd.f32 %v419_v47, %v418_v38  ;;  %v532_v3 = vadd.f32 %v531_v59, %v530_v51  ;;  %v536_v5 = vadd.f32 %v535_v61, %v534_v56  ;;  %v434_v7 = vadd.f32 %v433_v63, %v309_v50 }
  0xbe   :  { %v540_v6 = vadd.f32 %v539_v60, %v463_v53  ;;  %v545_v8 = vrot.slane %v464_v0, 4  ;;  %v602_v16 = vrot.slane %v573_v1, 6  ;;  %v429_v18 = vrot.slane %v428_v62, 2 }
  0xbf   :  { %v574_v11 = vsel %vm563_vm1, %v420_v2, %v532_v3  ;;  %v537_v17 = vrot.slane %v536_v5, 1  ;;  %v435_v19 = vrot.slane %v434_v7, 2  ;;  %v426_v21 = vadd.f32 %v425_v4, %v424_v52 }
  0xc0   :  { %v322_v9 = vpop.f32.mrf.mxu2  ;;  %v546_v22 = vadd.f32 %v545_v8, %v464_v0  ;;  %v603_v25 = vrot.slane %v574_v11, 4  ;;  %v541_v27 = vrot.slane %v540_v6, 2  ;;  %v617_v33 = vsel %vm608_vm2, %v572_v10, %v602_v16 }
  0xc1   :  { %v439_v12 = vrot.slane %v322_v9, 4  ;;  %v465_v13 = vmul.f32 %v322_v9, %v322_v9  ;;  %v335_v14 = vpop.f32.mrf.mxu3  ;;  %v298_v15 = vpop.f32.mrf.mxu0  ;;  %v538_v26 = vadd.f32 %v537_v17, %v536_v5  ;;  %v436_v29 = vadd.f32 %v435_v19, %v434_v7 }
  0xc2   :  { %v311_v20 = vpop.f32.mrf.mxu1  ;;  %v346_v28 = vpack.c.bf16 %v335_v14, %v322_v9  ;;  %v547_v30 = vrot.slane %v546_v22, 2  ;;  %v445_v35 = vrot.slane %v335_v14, 4  ;;  %v466_v36 = vmul.f32 %v335_v14, %v335_v14 }
  0xc3   :  { %v440_v23 = vadd.f32 %v439_v12, %v322_v9  ;;  %v551_v24 = vrot.slane %v465_v13, 4  ;;  %v575_v34 = vsel %vm563_vm1, %v426_v21, %v538_v26  ;;  %v430_v38 = vadd.f32 %v429_v18, %v428_v62 }
  0xc4   :  { %354 = vst [vmem:[%s894_s2 + $0x38] sm:$0xff] %v346_v28  ;;  %v604_v37 = vrot.slane %v575_v34, 2  ;;  %v548_v39 = vadd.f32 %v547_v30, %v546_v22  ;;  %v542_v41 = vadd.f32 %v541_v27, %v540_v6  ;;  %v446_v43 = vadd.f32 %v445_v35, %v335_v14 }
  0xc5   :  { %v441_v31 = vrot.slane %v440_v23, 2  ;;  %v552_v32 = vadd.f32 %v551_v24, %v465_v13  ;;  %v557_v44 = vrot.slane %v466_v36, 4  ;;  %v437_v47 = vrot.slane %v436_v29, 1 }
  0xc6   :  { %v618_v46 = vsel %vm610_vm3, %v603_v25, %v604_v37  ;;  %v549_v48 = vrot.slane %v548_v39, 1  ;;  %v447_v53 = vrot.slane %v446_v43, 2  ;;  %v431_v59 = vrot.slane %v430_v38, 1 }
  0xc7   :  { %v442_v40 = vadd.f32 %v441_v31, %v440_v23  ;;  %v553_v42 = vrot.slane %v552_v32, 2  ;;  %v619_v51 = vsel %vm612_vm4, %v617_v33, %v618_v46  ;;  %v558_v54 = vadd.f32 %v557_v44, %v466_v36 }
  0xc8   :  { %v324_v45 = vpop.f32.mrf.mxu2  ;;  %629 = vst [vmem:[%s895_s3 + $0x10] sm:$0xff] %v619_v51  ;;  %v550_v55 = vadd.f32 %v549_v48, %v548_v39  ;;  %v448_v57 = vadd.f32 %v447_v53, %v446_v43  ;;  %v543_v60 = vrot.slane %v542_v41, 1  ;;  %v438_v61 = vadd.f32 %v437_v47, %v436_v29 }
  0xc9   :  { %v443_v49 = vrot.slane %v442_v40, 1  ;;  %v337_v50 = vpop.f32.mrf.mxu3  ;;  %v554_v52 = vadd.f32 %v553_v42, %v552_v32  ;;  %v559_v58 = vrot.slane %v558_v54, 2  ;;  %v432_v5 = vadd.f32 %v431_v59, %v430_v38 }
  0xca   :  { %v449_v0 = vrot.slane %v448_v57, 1  ;;  %v577_v2 = vsel %vm563_vm1, %v438_v61, %v550_v55  ;;  %v544_v6 = vadd.f32 %v543_v60, %v542_v41 }
  0xcb   :  { %v555_v56 = vrot.slane %v554_v52, 1  ;;  %v444_v62 = vadd.f32 %v443_v49, %v442_v40  ;;  %v560_v1 = vadd.f32 %v559_v58, %v558_v54  ;;  %v605_v9 = vrot.slane %v577_v2, 6 }
  0xcc   :  { %v450_v7 = vadd.f32 %v449_v0, %v448_v57  ;;  %v576_v13 = vsel %vm563_vm1, %v432_v5, %v544_v6 }
  0xcd   :  { %v556_v63 = vadd.f32 %v555_v56, %v554_v52  ;;  %v561_v4 = vrot.slane %v560_v1, 1  ;;  %v620_v14 = vsel %vm608_vm2, %v576_v13, %v605_v9 }
  0xcf   :  { %v578_v3 = vsel %vm563_vm1, %v444_v62, %v556_v63  ;;  %v562_v8 = vadd.f32 %v561_v4, %v560_v1 }
  0xd0   :  { %v606_v10 = vrot.slane %v578_v3, 4 }
  0xd1   :  { %v579_v11 = vsel %vm563_vm1, %v450_v7, %v562_v8 }
  0xd2   :  { %v607_v12 = vrot.slane %v579_v11, 2 }
  0xd4   :  { %v621_v15 = vsel %vm610_vm3, %v606_v10, %v607_v12 }
  0xd5   :  { %v622_v16 = vsel %vm612_vm4, %v620_v14, %v621_v15 }
  0xd6   :  { %630 = vst [vmem:[%s895_s3 + $0x18] sm:$0xff] %v622_v16 }
  0xd7   :  { %639 = vsyncpa [#allocation3], 1 }

// kernel: generator_forward.11
= control target key start
LH: loop header
LB: loop body
LE: loop exit
PB: predicated region body
PF: predicated region fallthrough
CT: control target
= control target key end

     0   :  { %9 = vsyncpa [#allocation3], 0  ;;  %s1075_s0 = inlined_call_operand.vmem [shape: bf16[4,32,256], index: 0, kind: input, shape index: {}]   ;;  %s1076_s1 = inlined_call_operand.hbm [shape: bf16[4,256,128], index: 1, kind: input, shape index: {}]   ;;  %s1077_s2 = inlined_call_operand.vmem [shape: bf16[4,32,128], index: 2, kind: output, shape index: {0}]   ;;  %s1078_s3 = inlined_call_operand.vmem [shape: f32[4,1,2,128], index: 3, kind: output, shape index: {1}]  }
   0x1   :  { %11 = vsyncpa [#allocation3 + $0x1], 0  ;;  %s958_s12 = smov 0   ;;  %s960_s13 = smov 0  }
   0x2   :  { %s962_s14 = smov 0   ;;  %s964_s15 = smov 0  }
   0x3   :  { %s966_s16 = smov 0   ;;  %s968_s17 = smov 0  }
   0x4 LB: > { %s651_s18 = sadd.s32 4294967295, %s934_s17   ;;  %s29_s19 = sadd.s32 1, %s930_s16  ;;  %s934_s17 = sphi %s968_s17, %s17_s17   ;;  %s930_s16 = sphi %s966_s16, %s1085_s16   ;;  %s926_s15 = sphi %s964_s15, %s1084_s15   ;;  %s922_s14 = sphi %s962_s14, %s1083_s14   ;;  %s918_s13 = sphi %s960_s13, %s1082_s13   ;;  %s914_s12 = sphi %s958_s12, %s1081_s12  }
   0x5   : > { %p31_p0 = scmp.ge.s32.totalorder %s29_s19, 4  ;;  %s64_s20 = sadd.s32 1, %s922_s14 }
   0x6   : > { %p71_p1 = scmp.ne.s32.totalorder %s922_s14, %s918_s13  ;;  %p72_p2 = scmp.eq.s32.totalorder %s934_s17, 0 }
   0x7   : > { %s1087_s19 = smov (%p31_p0, %s29_s19), 0  ;;  %p77_p4 = scmp.ne.s32.totalorder %s918_s13, %s914_s12 }
   0x8   : > { %p994_p3 = por %p72_p2, %p71_p1  ;;  %s61_s22 = ssub.s32 %s930_s16, %s1087_s19 }
   0x9   : > { %p78_p5 = scmp.eq.s32.totalorder %s651_s18, 0  ;;  %p62_p6 = scmp.eq.s32.totalorder %s61_s22, 0 }
   0xa   : > { %p803_p8 = scmp.lt.s32.totalorder %s934_s17, 4  ;;  %s171_s25 = sand.u32 1, %s922_s14  }
   0xb   : > { %p1001_p7 = por %p78_p5, %p77_p4  ;;  %s747_s26 = sshll.u32 %s930_s16, 7 }
   0xc   : > { %s1007_s24 = scalar_select %p62_p6, %s922_s14, %s64_s20  }
   0xd   : > { %s655_s27 = sshll.u32 %s171_s25, 7  ;;  %s180_s30 = scalar_lea.hbm %s1076_s1, %s747_s26 }
   0xe   : > { %s181_s4 = sshll.u32 %s180_s30, 4  ;;  %s175_s5 = scalar_lea.vmem [#allocation2], %s655_s27  ;;  %s182_s4 = int_to_ptr.hbm [resolvable:$true] %s181_s4 }
   0xf   : > { %s183_s6 = sshll.u32 %s175_s5, 4  ;;  %p800_p9 = pnand %p803_p8, %p994_p3  ;;  %s184_s6 = int_to_ptr.vmem [resolvable:$true] %s183_s6 }
  0x10   : > { %p658_p10 = scmp.ge.s32.totalorder %s934_s17, 1  ;;  %p191_p11 = scmp.lt.s32.totalorder %s934_s17, 5 }
  0x11   : > { %s172_s7 = scalar_lea.sflag [#allocation3], %s171_s25  ;;  %s936_s8 = smov 64  }
  0x12   : > { %s937_s9 = smov 4   ;;  %p192_p12 = pnand %p658_p10, %p191_p11 }
  0x13   : > { %802 = dma.hbm_to_vmem [thread:$0]  (!%p800_p9), %s182_s4, 2048, %s184_s6, %s172_s7, %s936_s8, %s936_s8, %s937_s9  }
  0x14   : > { %195 = sbr.rel (%p192_p12) target bundleno = 219 (0xdb), region = 28  ;;  %s197_s10 = sand.u32 (!%p192_p12), 1, %s918_s13  }
  0x15   : > { %s659_s11 = sshll.u32 (!%p192_p12), %s197_s10, 7  ;;  %s198_s12 = scalar_lea.sflag (!%p192_p12), [#allocation3], %s197_s10 }
  0x16   : > { %s1019_s18 = scalar_lea.vmem (!%p192_p12), [#allocation2], %s659_s11 }
  0x19   : > { %909 = dma.done.wait (%p1001_p7), %s198_s12, 2048  }
  0x1a   : > { %911 = vsyncadd (%p1001_p7), %s198_s12, 4294965248  ;;  %v761_v0 = vld [vmem:[%s1019_s18 + $0x38] sm:$0xff]  ;;  %v760_v2 = vld [vmem:[%s1019_s18 + $0x30] sm:$0xff]  ;;  %p247_p13 = scmp.lt.s32.totalorder %s926_s15, 3  ;;  %vm494_vm0 = vcmask 1040384  }
  0x1b   : > { %v769_v1 = vld [vmem:[%s1019_s18 + $0x78] sm:$0xff]  ;;  %426 = vmatpush.bf16.msra.mxu0 %v761_v0  ;;  %781 = vmatpush.bf16.msra.mxu2 %v761_v0  ;;  %v768_v3 = vld [vmem:[%s1019_s18 + $0x70] sm:$0xff]  ;;  %v759_v4 = vld [vmem:[%s1019_s18 + $0x28] sm:$0xff] }
  0x1c   : > { %445 = vmatpush.bf16.msra.mxu1 %v769_v1  ;;  %789 = vmatpush.bf16.msra.mxu3 %v769_v1  ;;  %v767_v5 = vld [vmem:[%s1019_s18 + $0x68] sm:$0xff]  ;;  %v758_v6 = vld [vmem:[%s1019_s18 + $0x20] sm:$0xff]  ;;  %v757_v8 = vld [vmem:[%s1019_s18 + $0x18] sm:$0xff]  ;;  %s1089_s15 = smov (!%p247_p13, %s926_s15), 3 }
  0x1d   : > { %v766_v7 = vld [vmem:[%s1019_s18 + $0x60] sm:$0xff]  ;;  %v765_v9 = vld [vmem:[%s1019_s18 + $0x58] sm:$0xff]  ;;  %v756_v10 = vld [vmem:[%s1019_s18 + $0x10] sm:$0xff]  ;;  %s748_s20 = sshll.u32 %s1089_s15, 5  ;;  %s749_s25 = sshll.u32 %s1089_s15, 4 }
  0x1e   : > { %v764_v11 = vld [vmem:[%s1019_s18 + $0x50] sm:$0xff]  ;;  %v755_v12 = vld [vmem:[%s1019_s18 + $0x8] sm:$0xff]  ;;  %s255_s23 = scalar_lea.vmem %s1075_s0, %s748_s20  ;;  %v754_v14 = vld [vmem:[%s1019_s18] sm:$0xff]  ;;  %s265_s28 = scalar_lea.vmem %s1077_s2, %s749_s25 }
  0x1f   : > { %427 = vmatpush.bf16.msra.mxu0 %v760_v2  ;;  %782 = vmatpush.bf16.msra.mxu2 %v760_v2  ;;  %v763_v13 = vld [vmem:[%s1019_s18 + $0x48] sm:$0xff]  ;;  %v762_v15 = vld [vmem:[%s1019_s18 + $0x40] sm:$0xff]  ;;  %v675_v18 = vld [vmem:[%s255_s23 + $0x10] sm:$0xf]  ;;  %s664_s29 = sshll.u32 %s1089_s15, 1 }
  0x20   : > { %446 = vmatpush.bf16.msra.mxu1 %v768_v3  ;;  %790 = vmatpush.bf16.msra.mxu3 %v768_v3  ;;  %v667_v16 = vld [vmem:[%s255_s23] sm:$0xf]  ;;  %v751_v17 = vld [vmem:[%s255_s23 + $0x4] sm:$0xf0]  ;;  %v753_v19 = vld [vmem:[%s255_s23 + $0x14] sm:$0xf0]  ;;  %s273_s5 = scalar_lea.vmem %s1078_s3, %s664_s29 }
  0x21   : > { %v750_v20 = vld [vmem:[%s255_s23 + $0x4] sm:$0xf]  ;;  %v669_v21 = vld [vmem:[%s255_s23 + $0x8] sm:$0xf0]  ;;  %v752_v22 = vld [vmem:[%s255_s23 + $0x14] sm:$0xf]  ;;  %v668_v24 = vor.u32 %v751_v17, %v667_v16  ;;  %v676_v25 = vor.u32 %v753_v19, %v675_v18 }
  0x22   : > { %v677_v23 = vld [vmem:[%s255_s23 + $0x18] sm:$0xf0]  ;;  %v672_v26 = vor.u32 %v750_v20, %v669_v21 }
  0x23   : > { %428 = vmatpush.bf16.msra.mxu0 %v759_v4  ;;  %783 = vmatpush.bf16.msra.mxu2 %v759_v4  ;;  %v680_v27 = vor.u32 %v752_v22, %v677_v23 }
  0x24   : > { %447 = vmatpush.bf16.msra.mxu1 %v767_v5  ;;  %791 = vmatpush.bf16.msra.mxu3 %v767_v5 }
  0x27   : > { %429 = vmatpush.bf16.msra.mxu0 %v758_v6  ;;  %784 = vmatpush.bf16.msra.mxu2 %v758_v6 }
  0x28   : > { %448 = vmatpush.bf16.msra.mxu1 %v766_v7  ;;  %792 = vmatpush.bf16.msra.mxu3 %v766_v7 }
  0x2b   : > { %430 = vmatpush.bf16.msra.mxu0 %v757_v8  ;;  %785 = vmatpush.bf16.msra.mxu2 %v757_v8 }
  0x2c   : > { %449 = vmatpush.bf16.msra.mxu1 %v765_v9  ;;  %793 = vmatpush.bf16.msra.mxu3 %v765_v9 }
  0x2f   : > { %431 = vmatpush.bf16.msra.mxu0 %v756_v10  ;;  %786 = vmatpush.bf16.msra.mxu2 %v756_v10 }
  0x30   : > { %450 = vmatpush.bf16.msra.mxu1 %v764_v11  ;;  %794 = vmatpush.bf16.msra.mxu3 %v764_v11 }
  0x33   : > { %432 = vmatpush.bf16.msra.mxu0 %v755_v12  ;;  %787 = vmatpush.bf16.msra.mxu2 %v755_v12 }
  0x34   : > { %451 = vmatpush.bf16.msra.mxu1 %v763_v13  ;;  %795 = vmatpush.bf16.msra.mxu3 %v763_v13 }
  0x37   : > { %433 = vmatpush.bf16.msra.mxu0 %v754_v14  ;;  %788 = vmatpush.bf16.msra.mxu2 %v754_v14 }
  0x38   : > { %452 = vmatpush.bf16.msra.mxu1 %v762_v15  ;;  %796 = vmatpush.bf16.msra.mxu3 %v762_v15 }
  0x3a   : > { %434 = vmatmul.bf16.vlgmr.msra.gmra.mxu0 %v668_v24  ;;  %439 = vmatmul.bf16.vlgmr.msra.gmra.mxu2 %v676_v25 }
  0x3b   : > { %453 = vmatmul.bf16.vlgmr.msra.gmra.mxu1 %v672_v26  ;;  %458 = vmatmul.bf16.vlgmr.msra.gmra.mxu3 %v680_v27 }
  0xb7   : > { %v435_v28 = vpop.f32.mrf.mxu0 }
  0xb8   : > { %v454_v29 = vpop.f32.mrf.mxu1 }
  0xb9   : > { %v455_v31 = vadd.f32 %v454_v29, %v435_v28 }
  0xbb   : > { %v481_v36 = vmul.f32 %v455_v31, %v455_v31 }
  0xbd   : > { %v440_v30 = vpop.f32.mrf.mxu2 }
  0xbe   : > { %v459_v32 = vpop.f32.mrf.mxu3 }
  0xbf   : > { %v437_v33 = vpop.f32.mrf.mxu0  ;;  %v460_v37 = vadd.f32 %v459_v32, %v440_v30 }
  0xc0   : > { %v456_v34 = vpop.f32.mrf.mxu1 }
  0xc1   : > { %v457_v35 = vadd.f32 %v456_v34, %v437_v33  ;;  %v483_v44 = vmul.f32 %v460_v37, %v460_v37 }
  0xc3   : > { %v773_v38 = vpack.c.bf16 %v457_v35, %v455_v31  ;;  %v472_v39 = vadd.f32 %v457_v35, %v455_v31  ;;  %v482_v40 = vmul.f32 %v457_v35, %v457_v35 }
  0xc5   : > { %774 = vst [vmem:[%s265_s28] sm:$0xff] %v773_v38   ;;  %v485_v41 = vadd.f32 %v482_v40, %v481_v36  ;;  %v442_v42 = vpop.f32.mrf.mxu2  ;;  %v473_v46 = vadd.f32 %v472_v39, %v460_v37 }
  0xc6   : > { %v461_v43 = vpop.f32.mrf.mxu3 }
  0xc7   : > { %v462_v45 = vadd.f32 %v461_v43, %v442_v42  ;;  %v486_v50 = vadd.f32 %v485_v41, %v483_v44 }
  0xc9   : > { %v778_v47 = vpack.c.bf16 %v462_v45, %v460_v37  ;;  %v474_v48 = vadd.f32 %v473_v46, %v462_v45  ;;  %v484_v49 = vmul.f32 %v462_v45, %v462_v45 }
  0xcb   : > { %780 = vst [vmem:[%s265_s28 + $0x8] sm:$0xff] %v778_v47   ;;  %v475_v51 = vrot.slane %v474_v48, 4  ;;  %v487_v52 = vadd.f32 %v486_v50, %v484_v49 }
  0xcd   : > { %v476_v53 = vadd.f32 %v475_v51, %v474_v48  ;;  %v488_v54 = vrot.slane %v487_v52, 4 }
  0xcf   : > { %v477_v55 = vrot.slane %v476_v53, 2  ;;  %v489_v56 = vadd.f32 %v488_v54, %v487_v52 }
  0xd1   : > { %v478_v57 = vadd.f32 %v477_v55, %v476_v53  ;;  %v490_v58 = vrot.slane %v489_v56, 2 }
  0xd3   : > { %v479_v59 = vrot.slane %v478_v57, 1  ;;  %v491_v60 = vadd.f32 %v490_v58, %v489_v56 }
  0xd5   : > { %v492_v61 = vrot.slane %v491_v60, 1  ;;  %v480_v62 = vadd.f32 %v479_v59, %v478_v57 }
  0xd7   : > { %v493_v63 = vadd.f32 %v492_v61, %v491_v60 }
  0xd9   : > { %v495_v0 = vsel %vm494_vm0, %v480_v62, %v493_v63 }
  0xda   : > { %496 = vst [vmem:[%s273_s5] sm:$0x3] %v495_v0 }
  0xdb PF: > { %s17_s17 = sadd.s32 1, %s934_s17   ;;  %s1081_s12 = smov %s918_s13 }
  0xdc   : > { %p14_p0 = scmp.ge.s32.totalorder %s17_s17, 6   ;;  %s1082_s13 = smov %s922_s14 }
  0xdd   : > { %s1083_s14 = smov %s1007_s24  ;;  %s1084_s15 = smov %s930_s16 }
  0xde   : > { %s1085_s16 = smov %s1087_s19  ;;  %16 = sbr.rel (!%p14_p0) target bundleno = 4 (0x4), region = 83 }
  0xe3   :  { %547 = vsyncpa [#allocation3], 1 }
  0xe4   :  { %549 = vsyncpa [#allocation3 + $0x1], 1 }

// kernel: generator_forward.12
= control target key start
LH: loop header
LB: loop body
LE: loop exit
PB: predicated region body
PF: predicated region fallthrough
CT: control target
= control target key end

     0   :  { %s436_s12 = smov 0   ;;  %s438_s13 = smov 0   ;;  %s475_s0 = inlined_call_operand.vmem [shape: bf16[4,32,128], index: 0, kind: input, shape index: {}]   ;;  %s476_s1 = inlined_call_operand.vmem [shape: f32[1,128], index: 1, kind: input, shape index: {}]   ;;  %s477_s2 = inlined_call_operand.vmem [shape: f32[1,128], index: 2, kind: input, shape index: {}]   ;;  %s478_s3 = inlined_call_operand.vmem [shape: bf16[4,32,128], index: 3, kind: output, shape index: {}]  }
   0x1   :  { %s440_s14 = smov 0  }
   0x2 LB: > { %s25_s15 = sadd.s32 1, %s410_s13  ;;  %p337_p0 = scmp.ge.s32.totalorder %s414_s14, 1  ;;  %s414_s14 = sphi %s440_s14, %s13_s14   ;;  %s410_s13 = sphi %s438_s13, %s480_s13   ;;  %s406_s12 = sphi %s436_s12, %s479_s12  }
   0x3   : > { %p27_p1 = scmp.ge.s32.totalorder %s25_s15, 4  ;;  %p158_p2 = scmp.lt.s32.totalorder %s414_s14, 5 }
   0x5   : > { %s482_s15 = smov (%p27_p1, %s25_s15), 0  ;;  %p159_p3 = pnand %p337_p0, %p158_p2 }
   0x6   : > { %p191_p4 = scmp.lt.s32.totalorder (!%p159_p3), %s406_s12, 3 }
   0x7   : > { %162 = sbr.rel (%p159_p3) target bundleno = 28 (0x1c), region = 32 }
   0xc   : > { %s484_s12 = smov (!%p191_p4, %s406_s12), 3  ;;  %v390_v0 = vld [vmem:[%s476_s1] ss:$0 sm:$0xff] }
   0xd   : > { %s344_s16 = sshll.u32 %s484_s12, 4  ;;  %v391_v7 = vld [vmem:[%s477_s2] ss:$0 sm:$0xff] }
   0xe   : > { %s198_s19 = scalar_lea.vmem %s475_s0, %s344_s16  ;;  %s208_s26 = scalar_lea.vmem %s478_s3, %s344_s16 }
   0xf   : > { %v347_v1 = vld [vmem:[%s198_s19] sm:$0xff]   ;;  %v364_v2 = vld [vmem:[%s198_s19 + $0x8] sm:$0xff]  }
  0x10   : > { %v348_v3 = vunpack.c.l.bf16 %v347_v1  ;;  %v349_v4 = vunpack.c.h.bf16 %v347_v1  ;;  %v352_v5 = vunpack.c.l.bf16 %v364_v2  ;;  %v353_v6 = vunpack.c.h.bf16 %v364_v2 }
  0x12   : > { %v222_v8 = vmul.f32 %v390_v0, %v348_v3  ;;  %v223_v9 = vmul.f32 %v390_v0, %v349_v4  ;;  %v224_v10 = vmul.f32 %v390_v0, %v352_v5  ;;  %v225_v11 = vmul.f32 %v390_v0, %v353_v6 }
  0x14   : > { %v230_v12 = vadd.f32 %v391_v7, %v222_v8  ;;  %v231_v13 = vadd.f32 %v391_v7, %v223_v9  ;;  %v232_v14 = vadd.f32 %v391_v7, %v224_v10  ;;  %v233_v15 = vadd.f32 %v391_v7, %v225_v11 }
  0x16   : > { %v234_v16 = vmax.f32 %v230_v12, 0.0  ;;  %v235_v17 = vmax.f32 %v231_v13, 0.0  ;;  %v236_v18 = vmax.f32 %v232_v14, 0.0  ;;  %v237_v19 = vmax.f32 %v233_v15, 0.0 }
  0x18   : > { %v357_v20 = vpack.c.bf16 %v235_v17, %v234_v16  ;;  %v362_v21 = vpack.c.bf16 %v237_v19, %v236_v18 }
  0x1a   : > { %358 = vst [vmem:[%s208_s26] sm:$0xff] %v357_v20  }
  0x1b   : > { %365 = vst [vmem:[%s208_s26 + $0x8] sm:$0xff] %v362_v21  }
  0x1c PF: > { %s13_s14 = sadd.s32 1, %s414_s14   ;;  %s479_s12 = smov %s410_s13 }
  0x1d   : > { %p10_p5 = scmp.ge.s32.totalorder %s13_s14, 6   ;;  %s480_s13 = smov %s482_s15 }
  0x1f   :  { %12 = sbr.rel (!%p10_p5) target bundleno = 2 (0x2), region = 62 }

// kernel: generator_forward.14
= control target key start
LH: loop header
LB: loop body
LE: loop exit
PB: predicated region body
PF: predicated region fallthrough
CT: control target
= control target key end

     0   :  { %s586_s12 = smov 0   ;;  %s588_s13 = smov 0   ;;  %s688_s0 = inlined_call_operand.vmem [shape: bf16[4,128,128], index: 0, kind: input, shape index: {}]   ;;  %s689_s1 = inlined_call_operand.vmem [shape: f32[1,128], index: 1, kind: input, shape index: {}]   ;;  %s690_s2 = inlined_call_operand.vmem [shape: f32[1,128], index: 2, kind: input, shape index: {}]   ;;  %s691_s3 = inlined_call_operand.vmem [shape: bf16[4,128,128], index: 3, kind: output, shape index: {}]  }
   0x1   :  { %s590_s14 = smov 0  }
   0x2 LB: > { %s25_s15 = sadd.s32 1, %s560_s13  ;;  %p421_p0 = scmp.ge.s32.totalorder %s564_s14, 1  ;;  %s564_s14 = sphi %s590_s14, %s13_s14   ;;  %s560_s13 = sphi %s588_s13, %s693_s13   ;;  %s556_s12 = sphi %s586_s12, %s692_s12  }
   0x3   : > { %p27_p1 = scmp.ge.s32.totalorder %s25_s15, 4  ;;  %p158_p2 = scmp.lt.s32.totalorder %s564_s14, 5 }
   0x5   : > { %s695_s15 = smov (%p27_p1, %s25_s15), 0  ;;  %p159_p3 = pnand %p421_p0, %p158_p2 }
   0x6   : > { %p191_p4 = scmp.lt.s32.totalorder (!%p159_p3), %s556_s12, 3 }
   0x7   : > { %162 = sbr.rel (%p159_p3) target bundleno = 38 (0x26), region = 32 }
   0xc   : > { %s697_s12 = smov (!%p191_p4, %s556_s12), 3  ;;  %v617_v0 = vld [vmem:[%s689_s1] ss:$0 sm:$0xff] }
   0xd   : > { %s428_s16 = sshll.u32 %s697_s12, 6  ;;  %v625_v6 = vld [vmem:[%s690_s2] ss:$0 sm:$0xff] }
   0xe   : > { %s612_s19 = scalar_lea.vmem %s688_s0, %s428_s16  ;;  %s651_s26 = scalar_lea.vmem %s691_s3, %s428_s16 }
   0xf   : > { %v431_v1 = vld [vmem:[%s612_s19] sm:$0xff]   ;;  %v502_v2 = vld [vmem:[%s612_s19 + $0x8] sm:$0xff]   ;;  %v503_v3 = vld [vmem:[%s612_s19 + $0x10] sm:$0xff]  }
  0x10   : > { %v432_v4 = vunpack.c.l.bf16 %v431_v1  ;;  %v433_v5 = vunpack.c.h.bf16 %v431_v1  ;;  %v436_v7 = vunpack.c.l.bf16 %v502_v2  ;;  %v437_v8 = vunpack.c.h.bf16 %v502_v2  ;;  %v504_v9 = vld [vmem:[%s612_s19 + $0x18] sm:$0xff]   ;;  %v505_v30 = vld [vmem:[%s612_s19 + $0x20] sm:$0xff]   ;;  %v506_v35 = vld [vmem:[%s612_s19 + $0x28] sm:$0xff]  }
  0x11   : > { %v440_v10 = vunpack.c.l.bf16 %v503_v3  ;;  %v441_v11 = vunpack.c.h.bf16 %v503_v3  ;;  %v444_v12 = vunpack.c.l.bf16 %v504_v9  ;;  %v445_v13 = vunpack.c.h.bf16 %v504_v9  ;;  %v507_v40 = vld [vmem:[%s612_s19 + $0x30] sm:$0xff]   ;;  %v508_v45 = vld [vmem:[%s612_s19 + $0x38] sm:$0xff]  }
  0x12   : > { %v246_v14 = vmul.f32 %v617_v0, %v432_v4  ;;  %v247_v15 = vmul.f32 %v617_v0, %v433_v5  ;;  %v248_v16 = vmul.f32 %v617_v0, %v436_v7  ;;  %v249_v17 = vmul.f32 %v617_v0, %v437_v8 }
  0x13   : > { %v250_v18 = vmul.f32 %v617_v0, %v440_v10  ;;  %v251_v19 = vmul.f32 %v617_v0, %v441_v11  ;;  %v252_v20 = vmul.f32 %v617_v0, %v444_v12  ;;  %v253_v21 = vmul.f32 %v617_v0, %v445_v13 }
  0x14   : > { %v266_v22 = vadd.f32 %v625_v6, %v246_v14  ;;  %v267_v23 = vadd.f32 %v625_v6, %v247_v15  ;;  %v268_v24 = vadd.f32 %v625_v6, %v248_v16  ;;  %v269_v25 = vadd.f32 %v625_v6, %v249_v17 }
  0x15   : > { %v270_v26 = vadd.f32 %v625_v6, %v250_v18  ;;  %v271_v27 = vadd.f32 %v625_v6, %v251_v19  ;;  %v272_v28 = vadd.f32 %v625_v6, %v252_v20  ;;  %v273_v29 = vadd.f32 %v625_v6, %v253_v21 }
  0x16   : > { %v282_v31 = vmax.f32 %v266_v22, 0.0  ;;  %v283_v32 = vmax.f32 %v267_v23, 0.0  ;;  %v284_v33 = vmax.f32 %v268_v24, 0.0  ;;  %v285_v34 = vmax.f32 %v269_v25, 0.0 }
  0x17   : > { %v286_v36 = vmax.f32 %v270_v26, 0.0  ;;  %v287_v37 = vmax.f32 %v271_v27, 0.0  ;;  %v288_v38 = vmax.f32 %v272_v28, 0.0  ;;  %v289_v39 = vmax.f32 %v273_v29, 0.0 }
  0x18   : > { %v465_v41 = vpack.c.bf16 %v283_v32, %v282_v31  ;;  %v470_v42 = vpack.c.bf16 %v285_v34, %v284_v33  ;;  %v448_v43 = vunpack.c.l.bf16 %v505_v30  ;;  %v449_v44 = vunpack.c.h.bf16 %v505_v30 }
  0x19   : > { %v475_v46 = vpack.c.bf16 %v287_v37, %v286_v36  ;;  %v480_v47 = vpack.c.bf16 %v289_v39, %v288_v38  ;;  %v452_v48 = vunpack.c.l.bf16 %v506_v35  ;;  %v453_v49 = vunpack.c.h.bf16 %v506_v35 }
  0x1a   : > { %466 = vst [vmem:[%s651_s26] sm:$0xff] %v465_v41   ;;  %v254_v50 = vmul.f32 %v617_v0, %v448_v43  ;;  %v255_v51 = vmul.f32 %v617_v0, %v449_v44  ;;  %v456_v52 = vunpack.c.l.bf16 %v507_v40  ;;  %v457_v53 = vunpack.c.h.bf16 %v507_v40 }
  0x1b   : > { %509 = vst [vmem:[%s651_s26 + $0x8] sm:$0xff] %v470_v42   ;;  %v256_v54 = vmul.f32 %v617_v0, %v452_v48  ;;  %v257_v55 = vmul.f32 %v617_v0, %v453_v49  ;;  %v460_v56 = vunpack.c.l.bf16 %v508_v45  ;;  %v461_v57 = vunpack.c.h.bf16 %v508_v45 }
  0x1c   : > { %510 = vst [vmem:[%s651_s26 + $0x10] sm:$0xff] %v475_v46   ;;  %v274_v58 = vadd.f32 %v625_v6, %v254_v50  ;;  %v275_v59 = vadd.f32 %v625_v6, %v255_v51  ;;  %v258_v60 = vmul.f32 %v617_v0, %v456_v52  ;;  %v259_v61 = vmul.f32 %v617_v0, %v457_v53 }
  0x1d   : > { %511 = vst [vmem:[%s651_s26 + $0x18] sm:$0xff] %v480_v47   ;;  %v276_v62 = vadd.f32 %v625_v6, %v256_v54  ;;  %v277_v63 = vadd.f32 %v625_v6, %v257_v55  ;;  %v260_v1 = vmul.f32 %v617_v0, %v460_v56  ;;  %v261_v2 = vmul.f32 %v617_v0, %v461_v57 }
  0x1e   : > { %v290_v3 = vmax.f32 %v274_v58, 0.0  ;;  %v291_v4 = vmax.f32 %v275_v59, 0.0  ;;  %v278_v5 = vadd.f32 %v625_v6, %v258_v60  ;;  %v279_v7 = vadd.f32 %v625_v6, %v259_v61 }
  0x1f   : > { %v292_v8 = vmax.f32 %v276_v62, 0.0  ;;  %v293_v9 = vmax.f32 %v277_v63, 0.0  ;;  %v280_v10 = vadd.f32 %v625_v6, %v260_v1  ;;  %v281_v11 = vadd.f32 %v625_v6, %v261_v2 }
  0x20   : > { %v485_v12 = vpack.c.bf16 %v291_v4, %v290_v3  ;;  %v294_v13 = vmax.f32 %v278_v5, 0.0  ;;  %v295_v14 = vmax.f32 %v279_v7, 0.0 }
  0x21   : > { %v490_v15 = vpack.c.bf16 %v293_v9, %v292_v8  ;;  %v296_v0 = vmax.f32 %v280_v10, 0.0  ;;  %v297_v16 = vmax.f32 %v281_v11, 0.0 }
  0x22   : > { %512 = vst [vmem:[%s651_s26 + $0x20] sm:$0xff] %v485_v12   ;;  %v495_v17 = vpack.c.bf16 %v295_v14, %v294_v13 }
  0x23   : > { %513 = vst [vmem:[%s651_s26 + $0x28] sm:$0xff] %v490_v15   ;;  %v500_v18 = vpack.c.bf16 %v297_v16, %v296_v0 }
  0x24   : > { %514 = vst [vmem:[%s651_s26 + $0x30] sm:$0xff] %v495_v17  }
  0x25   : > { %515 = vst [vmem:[%s651_s26 + $0x38] sm:$0xff] %v500_v18  }
  0x26 PF: > { %s13_s14 = sadd.s32 1, %s564_s14   ;;  %s692_s12 = smov %s560_s13 }
  0x27   : > { %p10_p5 = scmp.ge.s32.totalorder %s13_s14, 6   ;;  %s693_s13 = smov %s695_s15 }
  0x29   :  { %12 = sbr.rel (!%p10_p5) target bundleno = 2 (0x2), region = 62 }

// kernel: generator_forward.13
= control target key start
LH: loop header
LB: loop body
LE: loop exit
PB: predicated region body
PF: predicated region fallthrough
CT: control target
= control target key end

     0   :  { %9 = vsyncpa [#allocation3], 0  ;;  %s1151_s0 = inlined_call_operand.vmem [shape: bf16[4,128,128], index: 0, kind: input, shape index: {}]   ;;  %s1152_s1 = inlined_call_operand.hbm [shape: bf16[4,128,128], index: 1, kind: input, shape index: {}]   ;;  %s1153_s2 = inlined_call_operand.vmem [shape: bf16[4,128,128], index: 2, kind: output, shape index: {0}]   ;;  %s1154_s3 = inlined_call_operand.vmem [shape: f32[4,1,2,128], index: 3, kind: output, shape index: {1}]  }
   0x1   :  { %11 = vsyncpa [#allocation3 + $0x1], 0  ;;  %s1023_s12 = smov 0   ;;  %s1025_s13 = smov 0  }
   0x2   :  { %s1027_s14 = smov 0   ;;  %s1029_s15 = smov 0  }
   0x3   :  { %s1031_s16 = smov 0   ;;  %s1033_s17 = smov 0  }
   0x4 LB: > { %s692_s18 = sadd.s32 4294967295, %s999_s17   ;;  %s29_s19 = sadd.s32 1, %s995_s16  ;;  %s999_s17 = sphi %s1033_s17, %s17_s17   ;;  %s995_s16 = sphi %s1031_s16, %s1161_s16   ;;  %s991_s15 = sphi %s1029_s15, %s1160_s15   ;;  %s987_s14 = sphi %s1027_s14, %s1159_s14   ;;  %s983_s13 = sphi %s1025_s13, %s1158_s13   ;;  %s979_s12 = sphi %s1023_s12, %s1157_s12  }
   0x5   : > { %p31_p0 = scmp.ge.s32.totalorder %s29_s19, 4  ;;  %s64_s20 = sadd.s32 1, %s987_s14 }
   0x6   : > { %p71_p1 = scmp.ne.s32.totalorder %s987_s14, %s983_s13  ;;  %p72_p2 = scmp.eq.s32.totalorder %s999_s17, 0 }
   0x7   : > { %s1163_s19 = smov (%p31_p0, %s29_s19), 0  ;;  %p77_p4 = scmp.ne.s32.totalorder %s983_s13, %s979_s12 }
   0x8   : > { %p1059_p3 = por %p72_p2, %p71_p1  ;;  %s61_s22 = ssub.s32 %s995_s16, %s1163_s19 }
   0x9   : > { %p78_p5 = scmp.eq.s32.totalorder %s692_s18, 0  ;;  %p62_p6 = scmp.eq.s32.totalorder %s61_s22, 0 }
   0xa   : > { %p868_p8 = scmp.lt.s32.totalorder %s999_s17, 4  ;;  %s170_s25 = sand.u32 1, %s987_s14  }
   0xb   : > { %p1066_p7 = por %p78_p5, %p77_p4  ;;  %s772_s26 = sshll.u32 %s995_s16, 6 }
   0xc   : > { %s1072_s24 = scalar_select %p62_p6, %s987_s14, %s64_s20  }
   0xd   : > { %s696_s27 = sshll.u32 %s170_s25, 6  ;;  %s179_s30 = scalar_lea.hbm %s1152_s1, %s772_s26 }
   0xe   : > { %s180_s4 = sshll.u32 %s179_s30, 4  ;;  %s174_s5 = scalar_lea.vmem [#allocation2], %s696_s27  ;;  %s181_s4 = int_to_ptr.hbm [resolvable:$true] %s180_s4 }
   0xf   : > { %s182_s6 = sshll.u32 %s174_s5, 4  ;;  %p865_p9 = pnand %p868_p8, %p1059_p3  ;;  %s183_s6 = int_to_ptr.vmem [resolvable:$true] %s182_s6 }
  0x10   : > { %p699_p10 = scmp.ge.s32.totalorder %s999_s17, 1  ;;  %p190_p11 = scmp.lt.s32.totalorder %s999_s17, 5 }
  0x11   : > { %s171_s7 = scalar_lea.sflag [#allocation3], %s170_s25  ;;  %s1001_s8 = smov 64  }
  0x12   : > { %s1002_s9 = smov 4   ;;  %p191_p12 = pnand %p699_p10, %p190_p11 }
  0x13   : > { %867 = dma.hbm_to_vmem [thread:$0]  (!%p865_p9), %s181_s4, 1024, %s183_s6, %s171_s7, %s1001_s8, %s1001_s8, %s1002_s9  }
  0x14   : > { %194 = sbr.rel (%p191_p12) target bundleno = 250 (0xfa), region = 28  ;;  %s196_s10 = sand.u32 (!%p191_p12), 1, %s983_s13  }
  0x15   : > { %s700_s11 = sshll.u32 (!%p191_p12), %s196_s10, 6  ;;  %s197_s12 = scalar_lea.sflag (!%p191_p12), [#allocation3], %s196_s10 }
  0x16   : > { %s1084_s18 = scalar_lea.vmem (!%p191_p12), [#allocation2], %s700_s11 }
  0x19   : > { %974 = dma.done.wait (%p1066_p7), %s197_s12, 1024  }
  0x1a   : > { %976 = vsyncadd (%p1066_p7), %s197_s12, 4294966272  ;;  %v790_v0 = vld [vmem:[%s1084_s18 + $0x38] sm:$0xff]  ;;  %v789_v1 = vld [vmem:[%s1084_s18 + $0x30] sm:$0xff]  ;;  %p245_p13 = scmp.lt.s32.totalorder %s991_s15, 3  ;;  %vm538_vm0 = vcmask 1040384  }
  0x1b   : > { %399 = vmatpush.bf16.msra.mxu0 %v790_v0  ;;  %838 = vmatpush.bf16.msra.mxu1 %v790_v0  ;;  %v788_v2 = vld [vmem:[%s1084_s18 + $0x28] sm:$0xff]  ;;  %v787_v3 = vld [vmem:[%s1084_s18 + $0x20] sm:$0xff]  ;;  %v786_v4 = vld [vmem:[%s1084_s18 + $0x18] sm:$0xff] }
  0x1c   : > { %839 = vmatpush.bf16.msra.mxu2 %v790_v0  ;;  %840 = vmatpush.bf16.msra.mxu3 %v790_v0  ;;  %v785_v5 = vld [vmem:[%s1084_s18 + $0x10] sm:$0xff]  ;;  %s1165_s15 = smov (!%p245_p13, %s991_s15), 3  ;;  %v784_v6 = vld [vmem:[%s1084_s18 + $0x8] sm:$0xff]  ;;  %v783_v7 = vld [vmem:[%s1084_s18] sm:$0xff] }
  0x1d   : > { %s773_s20 = sshll.u32 %s1165_s15, 6  ;;  %s705_s28 = sshll.u32 %s1165_s15, 1 }
  0x1e   : > { %s252_s23 = scalar_lea.vmem %s1151_s0, %s773_s20  ;;  %s1115_s27 = scalar_lea.vmem %s1153_s2, %s773_s20 }
  0x1f   : > { %400 = vmatpush.bf16.msra.mxu0 %v789_v1  ;;  %841 = vmatpush.bf16.msra.mxu1 %v789_v1  ;;  %v775_v8 = vld [vmem:[%s252_s23] sm:$0xff]  ;;  %v777_v9 = vld [vmem:[%s252_s23 + $0x10] sm:$0xff]  ;;  %v776_v12 = vld [vmem:[%s252_s23 + $0x8] sm:$0xff]  ;;  %s270_s4 = scalar_lea.vmem %s1154_s3, %s705_s28 }
  0x20   : > { %842 = vmatpush.bf16.msra.mxu2 %v789_v1  ;;  %843 = vmatpush.bf16.msra.mxu3 %v789_v1  ;;  %v779_v10 = vld [vmem:[%s252_s23 + $0x20] sm:$0xff]  ;;  %v781_v11 = vld [vmem:[%s252_s23 + $0x30] sm:$0xff]  ;;  %v778_v13 = vld [vmem:[%s252_s23 + $0x18] sm:$0xff] }
  0x21   : > { %v780_v14 = vld [vmem:[%s252_s23 + $0x28] sm:$0xff]  ;;  %v782_v15 = vld [vmem:[%s252_s23 + $0x38] sm:$0xff] }
  0x23   : > { %401 = vmatpush.bf16.msra.mxu0 %v788_v2  ;;  %844 = vmatpush.bf16.msra.mxu1 %v788_v2 }
  0x24   : > { %845 = vmatpush.bf16.msra.mxu2 %v788_v2  ;;  %846 = vmatpush.bf16.msra.mxu3 %v788_v2 }
  0x27   : > { %402 = vmatpush.bf16.msra.mxu0 %v787_v3  ;;  %847 = vmatpush.bf16.msra.mxu1 %v787_v3 }
  0x28   : > { %848 = vmatpush.bf16.msra.mxu2 %v787_v3  ;;  %849 = vmatpush.bf16.msra.mxu3 %v787_v3 }
  0x2b   : > { %403 = vmatpush.bf16.msra.mxu0 %v786_v4  ;;  %850 = vmatpush.bf16.msra.mxu1 %v786_v4 }
  0x2c   : > { %851 = vmatpush.bf16.msra.mxu2 %v786_v4  ;;  %852 = vmatpush.bf16.msra.mxu3 %v786_v4 }
  0x2f   : > { %404 = vmatpush.bf16.msra.mxu0 %v785_v5  ;;  %853 = vmatpush.bf16.msra.mxu1 %v785_v5 }
  0x30   : > { %854 = vmatpush.bf16.msra.mxu2 %v785_v5  ;;  %855 = vmatpush.bf16.msra.mxu3 %v785_v5 }
  0x33   : > { %405 = vmatpush.bf16.msra.mxu0 %v784_v6  ;;  %856 = vmatpush.bf16.msra.mxu1 %v784_v6 }
  0x34   : > { %857 = vmatpush.bf16.msra.mxu2 %v784_v6  ;;  %858 = vmatpush.bf16.msra.mxu3 %v784_v6 }
  0x37   : > { %406 = vmatpush.bf16.msra.mxu0 %v783_v7  ;;  %859 = vmatpush.bf16.msra.mxu1 %v783_v7 }
  0x38   : > { %860 = vmatpush.bf16.msra.mxu2 %v783_v7  ;;  %861 = vmatpush.bf16.msra.mxu3 %v783_v7 }
  0x3a   : > { %407 = vmatmul.bf16.vlgmr.msra.gmra.mxu0 %v775_v8  ;;  %417 = vmatmul.bf16.vlgmr.msra.gmra.mxu1 %v777_v9 }
  0x3b   : > { %427 = vmatmul.bf16.vlgmr.msra.gmra.mxu2 %v779_v10  ;;  %437 = vmatmul.bf16.vlgmr.msra.gmra.mxu3 %v781_v11 }
  0x4a   : > { %412 = vmatmul.bf16.gmra.mxu0 %v776_v12  ;;  %422 = vmatmul.bf16.gmra.mxu1 %v778_v13 }
  0x4b   : > { %432 = vmatmul.bf16.gmra.mxu2 %v780_v14  ;;  %442 = vmatmul.bf16.gmra.mxu3 %v782_v15 }
  0xb7   : > { %v408_v16 = vpop.f32.mrf.mxu0  ;;  %v418_v17 = vpop.f32.mrf.mxu1 }
  0xb8   : > { %v501_v31 = vmul.f32 %v408_v16, %v408_v16  ;;  %v505_v45 = vmul.f32 %v418_v17, %v418_v17 }
  0xbe   : > { %v428_v18 = vpop.f32.mrf.mxu2  ;;  %v1108_v19 = vpop.f32.mrf.mxu3 }
  0xbf   : > { %v410_v20 = vpop.f32.mrf.mxu0  ;;  %v420_v21 = vpop.f32.mrf.mxu1  ;;  %v509_v61 = vmul.f32 %v428_v18, %v428_v18  ;;  %v513_v9 = vmul.f32 %v1108_v19, %v1108_v19 }
  0xc0   : > { %v794_v22 = vpack.c.bf16 %v410_v20, %v408_v16  ;;  %v804_v23 = vpack.c.bf16 %v420_v21, %v418_v17  ;;  %v502_v30 = vmul.f32 %v410_v20, %v410_v20  ;;  %v480_v33 = vadd.f32 %v410_v20, %v408_v16 }
  0xc1   : > { %v506_v48 = vmul.f32 %v420_v21, %v420_v21 }
  0xc2   : > { %795 = vst [vmem:[%s1115_s27] sm:$0xff] %v794_v22   ;;  %v517_v34 = vadd.f32 %v502_v30, %v501_v31 }
  0xc3   : > { %832 = vst [vmem:[%s1115_s27 + $0x10] sm:$0xff] %v804_v23  }
  0xc6   : > { %v430_v24 = vpop.f32.mrf.mxu2  ;;  %v440_v25 = vpop.f32.mrf.mxu3 }
  0xc7   : > { %v413_v26 = vpop.f32.mrf.mxu0  ;;  %v423_v27 = vpop.f32.mrf.mxu1  ;;  %v814_v28 = vpack.c.bf16 %v430_v24, %v428_v18  ;;  %v824_v29 = vpack.c.bf16 %v440_v25, %v1108_v19  ;;  %v510_v0 = vmul.f32 %v430_v24, %v430_v24  ;;  %v514_v12 = vmul.f32 %v440_v25, %v440_v25 }
  0xc8   : > { %v503_v32 = vmul.f32 %v413_v26, %v413_v26  ;;  %v481_v35 = vadd.f32 %v480_v33, %v413_v26  ;;  %v507_v51 = vmul.f32 %v423_v27, %v423_v27 }
  0xc9   : > { %834 = vst [vmem:[%s1115_s27 + $0x20] sm:$0xff] %v814_v28  }
  0xca   : > { %836 = vst [vmem:[%s1115_s27 + $0x30] sm:$0xff] %v824_v29   ;;  %v518_v38 = vadd.f32 %v517_v34, %v503_v32 }
  0xce   : > { %v433_v36 = vpop.f32.mrf.mxu2  ;;  %v443_v37 = vpop.f32.mrf.mxu3 }
  0xcf   : > { %v415_v39 = vpop.f32.mrf.mxu0  ;;  %v425_v40 = vpop.f32.mrf.mxu1  ;;  %v511_v4 = vmul.f32 %v433_v36, %v433_v36  ;;  %v515_v16 = vmul.f32 %v443_v37, %v443_v37 }
  0xd0   : > { %v799_v41 = vpack.c.bf16 %v415_v39, %v413_v26  ;;  %v482_v42 = vadd.f32 %v481_v35, %v415_v39  ;;  %v504_v43 = vmul.f32 %v415_v39, %v415_v39  ;;  %v809_v44 = vpack.c.bf16 %v425_v40, %v423_v27 }
  0xd1   : > { %v508_v59 = vmul.f32 %v425_v40, %v425_v40 }
  0xd2   : > { %831 = vst [vmem:[%s1115_s27 + $0x8] sm:$0xff] %v799_v41   ;;  %v483_v46 = vadd.f32 %v482_v42, %v418_v17  ;;  %v519_v47 = vadd.f32 %v518_v38, %v504_v43 }
  0xd3   : > { %833 = vst [vmem:[%s1115_s27 + $0x18] sm:$0xff] %v809_v44  }
  0xd4   : > { %v520_v49 = vadd.f32 %v519_v47, %v505_v45  ;;  %v484_v50 = vadd.f32 %v483_v46, %v420_v21 }
  0xd6   : > { %v485_v52 = vadd.f32 %v484_v50, %v423_v27  ;;  %v521_v53 = vadd.f32 %v520_v49, %v506_v48  ;;  %v435_v54 = vpop.f32.mrf.mxu2  ;;  %v445_v55 = vpop.f32.mrf.mxu3 }
  0xd7   : > { %v819_v56 = vpack.c.bf16 %v435_v54, %v433_v36  ;;  %v829_v57 = vpack.c.bf16 %v445_v55, %v443_v37  ;;  %v512_v8 = vmul.f32 %v435_v54, %v435_v54  ;;  %v516_v21 = vmul.f32 %v445_v55, %v445_v55 }
  0xd8   : > { %v486_v58 = vadd.f32 %v485_v52, %v425_v40  ;;  %v522_v60 = vadd.f32 %v521_v53, %v507_v51 }
  0xd9   : > { %835 = vst [vmem:[%s1115_s27 + $0x28] sm:$0xff] %v819_v56  }
  0xda   : > { %v487_v62 = vadd.f32 %v486_v58, %v428_v18  ;;  %v523_v63 = vadd.f32 %v522_v60, %v508_v59  ;;  %837 = vst [vmem:[%s1115_s27 + $0x38] sm:$0xff] %v829_v57  }
  0xdc   : > { %v524_v1 = vadd.f32 %v523_v63, %v509_v61  ;;  %v488_v2 = vadd.f32 %v487_v62, %v430_v24 }
  0xde   : > { %v489_v3 = vadd.f32 %v488_v2, %v433_v36  ;;  %v525_v5 = vadd.f32 %v524_v1, %v510_v0 }
  0xe0   : > { %v526_v6 = vadd.f32 %v525_v5, %v511_v4  ;;  %v490_v7 = vadd.f32 %v489_v3, %v435_v54 }
  0xe2   : > { %v491_v10 = vadd.f32 %v490_v7, %v1108_v19  ;;  %v527_v11 = vadd.f32 %v526_v6, %v512_v8 }
  0xe4   : > { %v528_v13 = vadd.f32 %v527_v11, %v513_v9  ;;  %v492_v14 = vadd.f32 %v491_v10, %v440_v25 }
  0xe6   : > { %v493_v15 = vadd.f32 %v492_v14, %v443_v37  ;;  %v529_v17 = vadd.f32 %v528_v13, %v514_v12 }
  0xe8   : > { %v530_v18 = vadd.f32 %v529_v17, %v515_v16  ;;  %v494_v20 = vadd.f32 %v493_v15, %v445_v55 }
  0xea   : > { %v495_v22 = vrot.slane %v494_v20, 4  ;;  %v531_v23 = vadd.f32 %v530_v18, %v516_v21 }
  0xec   : > { %v496_v24 = vadd.f32 %v495_v22, %v494_v20  ;;  %v532_v26 = vrot.slane %v531_v23, 4 }
  0xee   : > { %v497_v27 = vrot.slane %v496_v24, 2  ;;  %v533_v28 = vadd.f32 %v532_v26, %v531_v23 }
  0xf0   : > { %v498_v29 = vadd.f32 %v497_v27, %v496_v24  ;;  %v534_v30 = vrot.slane %v533_v28, 2 }
  0xf2   : > { %v499_v19 = vrot.slane %v498_v29, 1  ;;  %v535_v31 = vadd.f32 %v534_v30, %v533_v28 }
  0xf4   : > { %v536_v32 = vrot.slane %v535_v31, 1  ;;  %v500_v25 = vadd.f32 %v499_v19, %v498_v29 }
  0xf6   : > { %v537_v33 = vadd.f32 %v536_v32, %v535_v31 }
  0xf8   : > { %v539_v34 = vsel %vm538_vm0, %v500_v25, %v537_v33 }
  0xf9   : > { %540 = vst [vmem:[%s270_s4] sm:$0x3] %v539_v34 }
  0xfa PF: > { %s17_s17 = sadd.s32 1, %s999_s17   ;;  %s1157_s12 = smov %s983_s13 }
  0xfb   : > { %p14_p0 = scmp.ge.s32.totalorder %s17_s17, 6   ;;  %s1158_s13 = smov %s987_s14 }
  0xfc   : > { %s1159_s14 = smov %s1072_s24  ;;  %s1160_s15 = smov %s995_s16 }
  0xfd   : > { %s1161_s16 = smov %s1163_s19  ;;  %16 = sbr.rel (!%p14_p0) target bundleno = 4 (0x4), region = 83 }
 0x102   :  { %591 = vsyncpa [#allocation3], 1 }
 0x103   :  { %593 = vsyncpa [#allocation3 + $0x1], 1 }

// kernel: generator_forward.16
= control target key start
LH: loop header
LB: loop body
LE: loop exit
PB: predicated region body
PF: predicated region fallthrough
CT: control target
= control target key end

     0   :  { %s1186_s12 = smov 0   ;;  %s1188_s13 = smov 0   ;;  %s1432_s0 = inlined_call_operand.vmem [shape: bf16[4,512,128], index: 0, kind: input, shape index: {}]   ;;  %s1433_s1 = inlined_call_operand.vmem [shape: f32[1,128], index: 1, kind: input, shape index: {}]   ;;  %s1434_s2 = inlined_call_operand.vmem [shape: f32[1,128], index: 2, kind: input, shape index: {}]   ;;  %s1435_s3 = inlined_call_operand.vmem [shape: bf16[4,512,128], index: 3, kind: output, shape index: {}]  }
   0x1   :  { %s1190_s14 = smov 0  }
   0x2 LB: > { %s25_s15 = sadd.s32 1, %s1160_s13  ;;  %p757_p0 = scmp.ge.s32.totalorder %s1164_s14, 1  ;;  %s1164_s14 = sphi %s1190_s14, %s13_s14   ;;  %s1160_s13 = sphi %s1188_s13, %s1437_s13   ;;  %s1156_s12 = sphi %s1186_s12, %s1436_s12  }
   0x3   : > { %p27_p1 = scmp.ge.s32.totalorder %s25_s15, 4  ;;  %p158_p2 = scmp.lt.s32.totalorder %s1164_s14, 5 }
   0x5   : > { %s1439_s15 = smov (%p27_p1, %s25_s15), 0  ;;  %p159_p3 = pnand %p757_p0, %p158_p2 }
   0x6   : > { %p191_p4 = scmp.lt.s32.totalorder (!%p159_p3), %s1156_s12, 3 }
   0x7   : > { %162 = sbr.rel (%p159_p3) target bundleno = 94 (0x5e), region = 32 }
   0xc   : > { %s1441_s12 = smov (!%p191_p4, %s1156_s12), 3  ;;  %v1217_v0 = vld [vmem:[%s1433_s1] ss:$0 sm:$0xff] }
   0xd   : > { %s764_s16 = sshll.u32 %s1441_s12, 8  ;;  %v1225_v6 = vld [vmem:[%s1434_s2] ss:$0 sm:$0xff] }
   0xe   : > { %s1212_s19 = scalar_lea.vmem %s1432_s0, %s764_s16  ;;  %s1251_s26 = scalar_lea.vmem %s1435_s3, %s764_s16 }
   0xf   : > { %v767_v1 = vld [vmem:[%s1212_s19] sm:$0xff]   ;;  %v1054_v2 = vld [vmem:[%s1212_s19 + $0x8] sm:$0xff]   ;;  %v1055_v3 = vld [vmem:[%s1212_s19 + $0x10] sm:$0xff]  }
  0x10   : > { %v768_v4 = vunpack.c.l.bf16 %v767_v1  ;;  %v769_v5 = vunpack.c.h.bf16 %v767_v1  ;;  %v772_v7 = vunpack.c.l.bf16 %v1054_v2  ;;  %v773_v8 = vunpack.c.h.bf16 %v1054_v2  ;;  %v1056_v9 = vld [vmem:[%s1212_s19 + $0x18] sm:$0xff]   ;;  %v1057_v30 = vld [vmem:[%s1212_s19 + $0x20] sm:$0xff]   ;;  %v1058_v35 = vld [vmem:[%s1212_s19 + $0x28] sm:$0xff]  }
  0x11   : > { %v776_v10 = vunpack.c.l.bf16 %v1055_v3  ;;  %v777_v11 = vunpack.c.h.bf16 %v1055_v3  ;;  %v780_v12 = vunpack.c.l.bf16 %v1056_v9  ;;  %v781_v13 = vunpack.c.h.bf16 %v1056_v9  ;;  %v1059_v40 = vld [vmem:[%s1212_s19 + $0x30] sm:$0xff]   ;;  %v1060_v45 = vld [vmem:[%s1212_s19 + $0x38] sm:$0xff]   ;;  %v1061_v3 = vld [vmem:[%s1212_s19 + $0x40] sm:$0xff]  }
  0x12   : > { %v342_v14 = vmul.f32 %v1217_v0, %v768_v4  ;;  %v343_v15 = vmul.f32 %v1217_v0, %v769_v5  ;;  %v344_v16 = vmul.f32 %v1217_v0, %v772_v7  ;;  %v345_v17 = vmul.f32 %v1217_v0, %v773_v8 }
  0x13   : > { %v346_v18 = vmul.f32 %v1217_v0, %v776_v10  ;;  %v347_v19 = vmul.f32 %v1217_v0, %v777_v11  ;;  %v348_v20 = vmul.f32 %v1217_v0, %v780_v12  ;;  %v349_v21 = vmul.f32 %v1217_v0, %v781_v13  ;;  %v1062_v13 = vld [vmem:[%s1212_s19 + $0x48] sm:$0xff]  }
  0x14   : > { %v410_v22 = vadd.f32 %v1225_v6, %v342_v14  ;;  %v411_v23 = vadd.f32 %v1225_v6, %v343_v15  ;;  %v412_v24 = vadd.f32 %v1225_v6, %v344_v16  ;;  %v413_v25 = vadd.f32 %v1225_v6, %v345_v17 }
  0x15   : > { %v414_v26 = vadd.f32 %v1225_v6, %v346_v18  ;;  %v415_v27 = vadd.f32 %v1225_v6, %v347_v19  ;;  %v416_v28 = vadd.f32 %v1225_v6, %v348_v20  ;;  %v417_v29 = vadd.f32 %v1225_v6, %v349_v21  ;;  %v1063_v18 = vld [vmem:[%s1212_s19 + $0x50] sm:$0xff]  }
  0x16   : > { %v474_v31 = vmax.f32 %v410_v22, 0.0  ;;  %v475_v32 = vmax.f32 %v411_v23, 0.0  ;;  %v476_v33 = vmax.f32 %v412_v24, 0.0  ;;  %v477_v34 = vmax.f32 %v413_v25, 0.0  ;;  %v1064_v23 = vld [vmem:[%s1212_s19 + $0x58] sm:$0xff]  }
  0x17   : > { %v478_v36 = vmax.f32 %v414_v26, 0.0  ;;  %v479_v37 = vmax.f32 %v415_v27, 0.0  ;;  %v480_v38 = vmax.f32 %v416_v28, 0.0  ;;  %v481_v39 = vmax.f32 %v417_v29, 0.0 }
  0x18   : > { %v897_v41 = vpack.c.bf16 %v475_v32, %v474_v31  ;;  %v902_v42 = vpack.c.bf16 %v477_v34, %v476_v33  ;;  %v784_v43 = vunpack.c.l.bf16 %v1057_v30  ;;  %v785_v44 = vunpack.c.h.bf16 %v1057_v30 }
  0x19   : > { %v907_v46 = vpack.c.bf16 %v479_v37, %v478_v36  ;;  %v912_v47 = vpack.c.bf16 %v481_v39, %v480_v38  ;;  %v788_v48 = vunpack.c.l.bf16 %v1058_v35  ;;  %v789_v49 = vunpack.c.h.bf16 %v1058_v35 }
  0x1a   : > { %898 = vst [vmem:[%s1251_s26] sm:$0xff] %v897_v41   ;;  %v350_v50 = vmul.f32 %v1217_v0, %v784_v43  ;;  %v351_v51 = vmul.f32 %v1217_v0, %v785_v44  ;;  %v792_v52 = vunpack.c.l.bf16 %v1059_v40  ;;  %v793_v53 = vunpack.c.h.bf16 %v1059_v40  ;;  %v1065_v40 = vld [vmem:[%s1212_s19 + $0x60] sm:$0xff]  }
  0x1b   : > { %1085 = vst [vmem:[%s1251_s26 + $0x8] sm:$0xff] %v902_v42   ;;  %v352_v54 = vmul.f32 %v1217_v0, %v788_v48  ;;  %v353_v55 = vmul.f32 %v1217_v0, %v789_v49  ;;  %v796_v56 = vunpack.c.l.bf16 %v1060_v45  ;;  %v797_v57 = vunpack.c.h.bf16 %v1060_v45 }
  0x1c   : > { %1086 = vst [vmem:[%s1251_s26 + $0x10] sm:$0xff] %v907_v46   ;;  %v418_v58 = vadd.f32 %v1225_v6, %v350_v50  ;;  %v419_v59 = vadd.f32 %v1225_v6, %v351_v51  ;;  %v354_v60 = vmul.f32 %v1217_v0, %v792_v52  ;;  %v355_v61 = vmul.f32 %v1217_v0, %v793_v53  ;;  %v1066_v53 = vld [vmem:[%s1212_s19 + $0x68] sm:$0xff]  }
  0x1d   : > { %1087 = vst [vmem:[%s1251_s26 + $0x18] sm:$0xff] %v912_v47   ;;  %v420_v62 = vadd.f32 %v1225_v6, %v352_v54  ;;  %v421_v63 = vadd.f32 %v1225_v6, %v353_v55  ;;  %v356_v1 = vmul.f32 %v1217_v0, %v796_v56  ;;  %v357_v2 = vmul.f32 %v1217_v0, %v797_v57 }
  0x1e   : > { %v482_v4 = vmax.f32 %v418_v58, 0.0  ;;  %v483_v5 = vmax.f32 %v419_v59, 0.0  ;;  %v422_v7 = vadd.f32 %v1225_v6, %v354_v60  ;;  %v423_v8 = vadd.f32 %v1225_v6, %v355_v61  ;;  %v1067_v58 = vld [vmem:[%s1212_s19 + $0x70] sm:$0xff]  }
  0x1f   : > { %v484_v9 = vmax.f32 %v420_v62, 0.0  ;;  %v485_v10 = vmax.f32 %v421_v63, 0.0  ;;  %v424_v11 = vadd.f32 %v1225_v6, %v356_v1  ;;  %v425_v12 = vadd.f32 %v1225_v6, %v357_v2  ;;  %v1068_v63 = vld [vmem:[%s1212_s19 + $0x78] sm:$0xff]  }
  0x20   : > { %v917_v14 = vpack.c.bf16 %v483_v5, %v482_v4  ;;  %v486_v15 = vmax.f32 %v422_v7, 0.0  ;;  %v487_v16 = vmax.f32 %v423_v8, 0.0  ;;  %v800_v17 = vunpack.c.l.bf16 %v1061_v3 }
  0x21   : > { %v922_v19 = vpack.c.bf16 %v485_v10, %v484_v9  ;;  %v488_v20 = vmax.f32 %v424_v11, 0.0  ;;  %v489_v21 = vmax.f32 %v425_v12, 0.0  ;;  %v801_v22 = vunpack.c.h.bf16 %v1061_v3 }
  0x22   : > { %1088 = vst [vmem:[%s1251_s26 + $0x20] sm:$0xff] %v917_v14   ;;  %v927_v24 = vpack.c.bf16 %v487_v16, %v486_v15  ;;  %v358_v25 = vmul.f32 %v1217_v0, %v800_v17  ;;  %v804_v26 = vunpack.c.l.bf16 %v1062_v13  ;;  %v805_v27 = vunpack.c.h.bf16 %v1062_v13  ;;  %v1069_v14 = vld [vmem:[%s1212_s19 + $0x80] sm:$0xff]  }
  0x23   : > { %1089 = vst [vmem:[%s1251_s26 + $0x28] sm:$0xff] %v922_v19   ;;  %v932_v28 = vpack.c.bf16 %v489_v21, %v488_v20  ;;  %v359_v29 = vmul.f32 %v1217_v0, %v801_v22  ;;  %v808_v30 = vunpack.c.l.bf16 %v1063_v18  ;;  %v809_v31 = vunpack.c.h.bf16 %v1063_v18 }
  0x24   : > { %1090 = vst [vmem:[%s1251_s26 + $0x30] sm:$0xff] %v927_v24   ;;  %v426_v32 = vadd.f32 %v1225_v6, %v358_v25  ;;  %v360_v33 = vmul.f32 %v1217_v0, %v804_v26  ;;  %v361_v34 = vmul.f32 %v1217_v0, %v805_v27  ;;  %v812_v35 = vunpack.c.l.bf16 %v1064_v23 }
  0x25   : > { %1091 = vst [vmem:[%s1251_s26 + $0x38] sm:$0xff] %v932_v28   ;;  %v427_v36 = vadd.f32 %v1225_v6, %v359_v29  ;;  %v362_v37 = vmul.f32 %v1217_v0, %v808_v30  ;;  %v363_v38 = vmul.f32 %v1217_v0, %v809_v31  ;;  %v813_v39 = vunpack.c.h.bf16 %v1064_v23  ;;  %v1070_v31 = vld [vmem:[%s1212_s19 + $0x88] sm:$0xff]  }
  0x26   : > { %v490_v41 = vmax.f32 %v426_v32, 0.0  ;;  %v428_v42 = vadd.f32 %v1225_v6, %v360_v33  ;;  %v429_v43 = vadd.f32 %v1225_v6, %v361_v34  ;;  %v364_v44 = vmul.f32 %v1217_v0, %v812_v35 }
  0x27   : > { %v491_v45 = vmax.f32 %v427_v36, 0.0  ;;  %v430_v46 = vadd.f32 %v1225_v6, %v362_v37  ;;  %v431_v47 = vadd.f32 %v1225_v6, %v363_v38  ;;  %v365_v48 = vmul.f32 %v1217_v0, %v813_v39  ;;  %v1071_v36 = vld [vmem:[%s1212_s19 + $0x90] sm:$0xff]  }
  0x28   : > { %v492_v49 = vmax.f32 %v428_v42, 0.0  ;;  %v493_v50 = vmax.f32 %v429_v43, 0.0  ;;  %v432_v51 = vadd.f32 %v1225_v6, %v364_v44  ;;  %v816_v52 = vunpack.c.l.bf16 %v1065_v40 }
  0x29   : > { %v937_v54 = vpack.c.bf16 %v491_v45, %v490_v41  ;;  %v494_v55 = vmax.f32 %v430_v46, 0.0  ;;  %v495_v56 = vmax.f32 %v431_v47, 0.0  ;;  %v433_v57 = vadd.f32 %v1225_v6, %v365_v48  ;;  %v1072_v41 = vld [vmem:[%s1212_s19 + $0x98] sm:$0xff]  }
  0x2a   : > { %v942_v59 = vpack.c.bf16 %v493_v50, %v492_v49  ;;  %v496_v60 = vmax.f32 %v432_v51, 0.0  ;;  %v817_v61 = vunpack.c.h.bf16 %v1065_v40  ;;  %v366_v62 = vmul.f32 %v1217_v0, %v816_v52 }
  0x2b   : > { %1092 = vst [vmem:[%s1251_s26 + $0x40] sm:$0xff] %v937_v54   ;;  %v947_v1 = vpack.c.bf16 %v495_v56, %v494_v55  ;;  %v497_v2 = vmax.f32 %v433_v57, 0.0  ;;  %v820_v3 = vunpack.c.l.bf16 %v1066_v53  ;;  %v821_v4 = vunpack.c.h.bf16 %v1066_v53  ;;  %v1073_v54 = vld [vmem:[%s1212_s19 + $0xa0] sm:$0xff]  }
  0x2c   : > { %1093 = vst [vmem:[%s1251_s26 + $0x48] sm:$0xff] %v942_v59   ;;  %v367_v5 = vmul.f32 %v1217_v0, %v817_v61  ;;  %v434_v7 = vadd.f32 %v1225_v6, %v366_v62  ;;  %v824_v8 = vunpack.c.l.bf16 %v1067_v58  ;;  %v825_v9 = vunpack.c.h.bf16 %v1067_v58 }
  0x2d   : > { %1094 = vst [vmem:[%s1251_s26 + $0x50] sm:$0xff] %v947_v1   ;;  %v952_v10 = vpack.c.bf16 %v497_v2, %v496_v60  ;;  %v368_v11 = vmul.f32 %v1217_v0, %v820_v3  ;;  %v369_v12 = vmul.f32 %v1217_v0, %v821_v4  ;;  %v828_v13 = vunpack.c.l.bf16 %v1068_v63  ;;  %v1074_v4 = vld [vmem:[%s1212_s19 + $0xa8] sm:$0xff]  }
  0x2e   : > { %v435_v15 = vadd.f32 %v1225_v6, %v367_v5  ;;  %v498_v16 = vmax.f32 %v434_v7, 0.0  ;;  %v370_v17 = vmul.f32 %v1217_v0, %v824_v8  ;;  %v371_v18 = vmul.f32 %v1217_v0, %v825_v9 }
  0x2f   : > { %1095 = vst [vmem:[%s1251_s26 + $0x58] sm:$0xff] %v952_v10   ;;  %v436_v19 = vadd.f32 %v1225_v6, %v368_v11  ;;  %v437_v20 = vadd.f32 %v1225_v6, %v369_v12  ;;  %v829_v21 = vunpack.c.h.bf16 %v1068_v63  ;;  %v372_v22 = vmul.f32 %v1217_v0, %v828_v13 }
  0x30   : > { %v499_v23 = vmax.f32 %v435_v15, 0.0  ;;  %v438_v24 = vadd.f32 %v1225_v6, %v370_v17  ;;  %v439_v25 = vadd.f32 %v1225_v6, %v371_v18  ;;  %v832_v26 = vunpack.c.l.bf16 %v1069_v14 }
  0x31   : > { %v500_v27 = vmax.f32 %v436_v19, 0.0  ;;  %v501_v28 = vmax.f32 %v437_v20, 0.0  ;;  %v373_v29 = vmul.f32 %v1217_v0, %v829_v21  ;;  %v440_v30 = vadd.f32 %v1225_v6, %v372_v22  ;;  %v1076_v19 = vld [vmem:[%s1212_s19 + $0xb8] sm:$0xff]  }
  0x32   : > { %v957_v32 = vpack.c.bf16 %v499_v23, %v498_v16  ;;  %v502_v33 = vmax.f32 %v438_v24, 0.0  ;;  %v503_v34 = vmax.f32 %v439_v25, 0.0  ;;  %v833_v35 = vunpack.c.h.bf16 %v1069_v14  ;;  %v1075_v14 = vld [vmem:[%s1212_s19 + $0xb0] sm:$0xff]  }
  0x33   : > { %v962_v37 = vpack.c.bf16 %v501_v28, %v500_v27  ;;  %v441_v38 = vadd.f32 %v1225_v6, %v373_v29  ;;  %v504_v39 = vmax.f32 %v440_v30, 0.0  ;;  %v374_v40 = vmul.f32 %v1217_v0, %v832_v26 }
  0x34   : > { %1096 = vst [vmem:[%s1251_s26 + $0x60] sm:$0xff] %v957_v32   ;;  %v967_v42 = vpack.c.bf16 %v503_v34, %v502_v33  ;;  %v375_v43 = vmul.f32 %v1217_v0, %v833_v35  ;;  %v836_v44 = vunpack.c.l.bf16 %v1070_v31  ;;  %v837_v45 = vunpack.c.h.bf16 %v1070_v31  ;;  %v1077_v32 = vld [vmem:[%s1212_s19 + $0xc0] sm:$0xff]  }
  0x35   : > { %1097 = vst [vmem:[%s1251_s26 + $0x68] sm:$0xff] %v962_v37   ;;  %v505_v46 = vmax.f32 %v441_v38, 0.0  ;;  %v442_v47 = vadd.f32 %v1225_v6, %v374_v40  ;;  %v840_v48 = vunpack.c.l.bf16 %v1071_v36  ;;  %v841_v49 = vunpack.c.h.bf16 %v1071_v36 }
  0x36   : > { %1098 = vst [vmem:[%s1251_s26 + $0x70] sm:$0xff] %v967_v42   ;;  %v443_v50 = vadd.f32 %v1225_v6, %v375_v43  ;;  %v376_v51 = vmul.f32 %v1217_v0, %v836_v44  ;;  %v377_v52 = vmul.f32 %v1217_v0, %v837_v45  ;;  %v844_v53 = vunpack.c.l.bf16 %v1072_v41  ;;  %v1078_v45 = vld [vmem:[%s1212_s19 + $0xc8] sm:$0xff]  }
  0x37   : > { %v972_v55 = vpack.c.bf16 %v505_v46, %v504_v39  ;;  %v506_v56 = vmax.f32 %v442_v47, 0.0  ;;  %v378_v57 = vmul.f32 %v1217_v0, %v840_v48  ;;  %v379_v58 = vmul.f32 %v1217_v0, %v841_v49 }
  0x38   : > { %v507_v59 = vmax.f32 %v443_v50, 0.0  ;;  %v444_v60 = vadd.f32 %v1225_v6, %v376_v51  ;;  %v445_v61 = vadd.f32 %v1225_v6, %v377_v52  ;;  %v845_v62 = vunpack.c.h.bf16 %v1072_v41 }
  0x39   : > { %1099 = vst [vmem:[%s1251_s26 + $0x78] sm:$0xff] %v972_v55   ;;  %v446_v63 = vadd.f32 %v1225_v6, %v378_v57  ;;  %v447_v1 = vadd.f32 %v1225_v6, %v379_v58  ;;  %v380_v2 = vmul.f32 %v1217_v0, %v844_v53  ;;  %v848_v3 = vunpack.c.l.bf16 %v1073_v54 }
  0x3a   : > { %v977_v5 = vpack.c.bf16 %v507_v59, %v506_v56  ;;  %v508_v7 = vmax.f32 %v444_v60, 0.0  ;;  %v509_v8 = vmax.f32 %v445_v61, 0.0  ;;  %v381_v9 = vmul.f32 %v1217_v0, %v845_v62 }
  0x3b   : > { %v510_v10 = vmax.f32 %v446_v63, 0.0  ;;  %v511_v11 = vmax.f32 %v447_v1, 0.0  ;;  %v448_v12 = vadd.f32 %v1225_v6, %v380_v2  ;;  %v849_v13 = vunpack.c.h.bf16 %v1073_v54  ;;  %v1079_v54 = vld [vmem:[%s1212_s19 + $0xd0] sm:$0xff]   ;;  %v1080_v63 = vld [vmem:[%s1212_s19 + $0xd8] sm:$0xff]  }
  0x3c   : > { %1100 = vst [vmem:[%s1251_s26 + $0x80] sm:$0xff] %v977_v5   ;;  %v982_v15 = vpack.c.bf16 %v509_v8, %v508_v7  ;;  %v449_v16 = vadd.f32 %v1225_v6, %v381_v9  ;;  %v382_v17 = vmul.f32 %v1217_v0, %v848_v3  ;;  %v852_v18 = vunpack.c.l.bf16 %v1074_v4 }
  0x3d   : > { %v987_v20 = vpack.c.bf16 %v511_v11, %v510_v10  ;;  %v512_v21 = vmax.f32 %v448_v12, 0.0  ;;  %v383_v22 = vmul.f32 %v1217_v0, %v849_v13  ;;  %v853_v23 = vunpack.c.h.bf16 %v1074_v4  ;;  %v1081_v10 = vld [vmem:[%s1212_s19 + $0xe0] sm:$0xff]  }
  0x3e   : > { %1101 = vst [vmem:[%s1251_s26 + $0x88] sm:$0xff] %v982_v15   ;;  %v513_v24 = vmax.f32 %v449_v16, 0.0  ;;  %v450_v25 = vadd.f32 %v1225_v6, %v382_v17  ;;  %v384_v26 = vmul.f32 %v1217_v0, %v852_v18  ;;  %v856_v27 = vunpack.c.l.bf16 %v1075_v14 }
  0x3f   : > { %1102 = vst [vmem:[%s1251_s26 + $0x90] sm:$0xff] %v987_v20   ;;  %v451_v28 = vadd.f32 %v1225_v6, %v383_v22  ;;  %v385_v29 = vmul.f32 %v1217_v0, %v853_v23  ;;  %v857_v30 = vunpack.c.h.bf16 %v1075_v14  ;;  %v860_v31 = vunpack.c.l.bf16 %v1076_v19  ;;  %v1082_v23 = vld [vmem:[%s1212_s19 + $0xe8] sm:$0xff]  }
  0x40   : > { %v992_v33 = vpack.c.bf16 %v513_v24, %v512_v21  ;;  %v514_v34 = vmax.f32 %v450_v25, 0.0  ;;  %v452_v35 = vadd.f32 %v1225_v6, %v384_v26  ;;  %v386_v36 = vmul.f32 %v1217_v0, %v856_v27 }
  0x41   : > { %v515_v37 = vmax.f32 %v451_v28, 0.0  ;;  %v453_v38 = vadd.f32 %v1225_v6, %v385_v29  ;;  %v387_v39 = vmul.f32 %v1217_v0, %v857_v30  ;;  %v861_v40 = vunpack.c.h.bf16 %v1076_v19 }
  0x42   : > { %1103 = vst [vmem:[%s1251_s26 + $0x98] sm:$0xff] %v992_v33   ;;  %v516_v41 = vmax.f32 %v452_v35, 0.0  ;;  %v454_v42 = vadd.f32 %v1225_v6, %v386_v36  ;;  %v388_v43 = vmul.f32 %v1217_v0, %v860_v31  ;;  %v864_v44 = vunpack.c.l.bf16 %v1077_v32 }
  0x43   : > { %v997_v46 = vpack.c.bf16 %v515_v37, %v514_v34  ;;  %v517_v47 = vmax.f32 %v453_v38, 0.0  ;;  %v455_v48 = vadd.f32 %v1225_v6, %v387_v39  ;;  %v389_v49 = vmul.f32 %v1217_v0, %v861_v40 }
  0x44   : > { %v518_v50 = vmax.f32 %v454_v42, 0.0  ;;  %v456_v51 = vadd.f32 %v1225_v6, %v388_v43  ;;  %v865_v52 = vunpack.c.h.bf16 %v1077_v32  ;;  %v390_v53 = vmul.f32 %v1217_v0, %v864_v44  ;;  %v1083_v32 = vld [vmem:[%s1212_s19 + $0xf0] sm:$0xff]  }
  0x45   : > { %1104 = vst [vmem:[%s1251_s26 + $0xa0] sm:$0xff] %v997_v46   ;;  %v1002_v55 = vpack.c.bf16 %v517_v47, %v516_v41  ;;  %v519_v56 = vmax.f32 %v455_v48, 0.0  ;;  %v457_v57 = vadd.f32 %v1225_v6, %v389_v49  ;;  %v868_v58 = vunpack.c.l.bf16 %v1078_v45  ;;  %v1084_v41 = vld [vmem:[%s1212_s19 + $0xf8] sm:$0xff]  }
  0x46   : > { %v520_v59 = vmax.f32 %v456_v51, 0.0  ;;  %v391_v60 = vmul.f32 %v1217_v0, %v865_v52  ;;  %v458_v61 = vadd.f32 %v1225_v6, %v390_v53  ;;  %v869_v62 = vunpack.c.h.bf16 %v1078_v45 }
  0x47   : > { %1105 = vst [vmem:[%s1251_s26 + $0xa8] sm:$0xff] %v1002_v55   ;;  %v1007_v1 = vpack.c.bf16 %v519_v56, %v518_v50  ;;  %v521_v2 = vmax.f32 %v457_v57, 0.0  ;;  %v392_v3 = vmul.f32 %v1217_v0, %v868_v58  ;;  %v872_v4 = vunpack.c.l.bf16 %v1079_v54 }
  0x48   : > { %v459_v5 = vadd.f32 %v1225_v6, %v391_v60  ;;  %v522_v7 = vmax.f32 %v458_v61, 0.0  ;;  %v393_v8 = vmul.f32 %v1217_v0, %v869_v62  ;;  %v873_v9 = vunpack.c.h.bf16 %v1079_v54 }
  0x49   : > { %1106 = vst [vmem:[%s1251_s26 + $0xb0] sm:$0xff] %v1007_v1   ;;  %v1012_v11 = vpack.c.bf16 %v521_v2, %v520_v59  ;;  %v460_v12 = vadd.f32 %v1225_v6, %v392_v3  ;;  %v394_v13 = vmul.f32 %v1217_v0, %v872_v4  ;;  %v876_v14 = vunpack.c.l.bf16 %v1080_v63 }
  0x4a   : > { %v523_v15 = vmax.f32 %v459_v5, 0.0  ;;  %v461_v16 = vadd.f32 %v1225_v6, %v393_v8  ;;  %v395_v17 = vmul.f32 %v1217_v0, %v873_v9  ;;  %v877_v18 = vunpack.c.h.bf16 %v1080_v63 }
  0x4b   : > { %1107 = vst [vmem:[%s1251_s26 + $0xb8] sm:$0xff] %v1012_v11   ;;  %v524_v19 = vmax.f32 %v460_v12, 0.0  ;;  %v462_v20 = vadd.f32 %v1225_v6, %v394_v13  ;;  %v396_v21 = vmul.f32 %v1217_v0, %v876_v14  ;;  %v880_v22 = vunpack.c.l.bf16 %v1081_v10 }
  0x4c   : > { %v1017_v24 = vpack.c.bf16 %v523_v15, %v522_v7  ;;  %v525_v25 = vmax.f32 %v461_v16, 0.0  ;;  %v463_v26 = vadd.f32 %v1225_v6, %v395_v17  ;;  %v397_v27 = vmul.f32 %v1217_v0, %v877_v18 }
  0x4d   : > { %v526_v28 = vmax.f32 %v462_v20, 0.0  ;;  %v464_v29 = vadd.f32 %v1225_v6, %v396_v21  ;;  %v881_v30 = vunpack.c.h.bf16 %v1081_v10  ;;  %v398_v31 = vmul.f32 %v1217_v0, %v880_v22 }
  0x4e   : > { %1108 = vst [vmem:[%s1251_s26 + $0xc0] sm:$0xff] %v1017_v24   ;;  %v1022_v33 = vpack.c.bf16 %v525_v25, %v524_v19  ;;  %v527_v34 = vmax.f32 %v463_v26, 0.0  ;;  %v465_v35 = vadd.f32 %v1225_v6, %v397_v27  ;;  %v884_v36 = vunpack.c.l.bf16 %v1082_v23 }
  0x4f   : > { %v528_v37 = vmax.f32 %v464_v29, 0.0  ;;  %v399_v38 = vmul.f32 %v1217_v0, %v881_v30  ;;  %v466_v39 = vadd.f32 %v1225_v6, %v398_v31  ;;  %v885_v40 = vunpack.c.h.bf16 %v1082_v23 }
  0x50   : > { %1109 = vst [vmem:[%s1251_s26 + $0xc8] sm:$0xff] %v1022_v33   ;;  %v1027_v42 = vpack.c.bf16 %v527_v34, %v526_v28  ;;  %v529_v43 = vmax.f32 %v465_v35, 0.0  ;;  %v400_v44 = vmul.f32 %v1217_v0, %v884_v36  ;;  %v888_v45 = vunpack.c.l.bf16 %v1083_v32 }
  0x51   : > { %v467_v46 = vadd.f32 %v1225_v6, %v399_v38  ;;  %v530_v47 = vmax.f32 %v466_v39, 0.0  ;;  %v401_v48 = vmul.f32 %v1217_v0, %v885_v40  ;;  %v889_v49 = vunpack.c.h.bf16 %v1083_v32 }
  0x52   : > { %1110 = vst [vmem:[%s1251_s26 + $0xd0] sm:$0xff] %v1027_v42   ;;  %v1032_v50 = vpack.c.bf16 %v529_v43, %v528_v37  ;;  %v468_v51 = vadd.f32 %v1225_v6, %v400_v44  ;;  %v402_v52 = vmul.f32 %v1217_v0, %v888_v45  ;;  %v892_v53 = vunpack.c.l.bf16 %v1084_v41 }
  0x53   : > { %v531_v54 = vmax.f32 %v467_v46, 0.0  ;;  %v469_v55 = vadd.f32 %v1225_v6, %v401_v48  ;;  %v403_v56 = vmul.f32 %v1217_v0, %v889_v49  ;;  %v893_v57 = vunpack.c.h.bf16 %v1084_v41 }
  0x54   : > { %1111 = vst [vmem:[%s1251_s26 + $0xd8] sm:$0xff] %v1032_v50   ;;  %v532_v58 = vmax.f32 %v468_v51, 0.0  ;;  %v470_v59 = vadd.f32 %v1225_v6, %v402_v52  ;;  %v404_v60 = vmul.f32 %v1217_v0, %v892_v53 }
  0x55   : > { %v1037_v61 = vpack.c.bf16 %v531_v54, %v530_v47  ;;  %v533_v62 = vmax.f32 %v469_v55, 0.0  ;;  %v471_v63 = vadd.f32 %v1225_v6, %v403_v56  ;;  %v405_v1 = vmul.f32 %v1217_v0, %v893_v57 }
  0x56   : > { %v534_v2 = vmax.f32 %v470_v59, 0.0  ;;  %v472_v3 = vadd.f32 %v1225_v6, %v404_v60 }
  0x57   : > { %1112 = vst [vmem:[%s1251_s26 + $0xe0] sm:$0xff] %v1037_v61   ;;  %v1042_v4 = vpack.c.bf16 %v533_v62, %v532_v58  ;;  %v535_v5 = vmax.f32 %v471_v63, 0.0  ;;  %v473_v7 = vadd.f32 %v1225_v6, %v405_v1 }
  0x58   : > { %v536_v8 = vmax.f32 %v472_v3, 0.0 }
  0x59   : > { %1113 = vst [vmem:[%s1251_s26 + $0xe8] sm:$0xff] %v1042_v4   ;;  %v1047_v9 = vpack.c.bf16 %v535_v5, %v534_v2  ;;  %v537_v10 = vmax.f32 %v473_v7, 0.0 }
  0x5b   : > { %1114 = vst [vmem:[%s1251_s26 + $0xf0] sm:$0xff] %v1047_v9   ;;  %v1052_v11 = vpack.c.bf16 %v537_v10, %v536_v8 }
  0x5d   : > { %1115 = vst [vmem:[%s1251_s26 + $0xf8] sm:$0xff] %v1052_v11  }
  0x5e PF: > { %s13_s14 = sadd.s32 1, %s1164_s14   ;;  %s1436_s12 = smov %s1160_s13 }
  0x5f   : > { %p10_p5 = scmp.ge.s32.totalorder %s13_s14, 6   ;;  %s1437_s13 = smov %s1439_s15 }
  0x61   :  { %12 = sbr.rel (!%p10_p5) target bundleno = 2 (0x2), region = 62 }

// kernel: generator_forward.15
= control target key start
LH: loop header
LB: loop body
LE: loop exit
PB: predicated region body
PF: predicated region fallthrough
CT: control target
= control target key end

     0   :  { %s1745_s12 = smov 0   ;;  %s1747_s13 = smov 0   ;;  %s2181_s0 = inlined_call_operand.vmem [shape: bf16[4,512,64], index: 0, kind: input, shape index: {}]   ;;  %s2182_s1 = inlined_call_operand.vmem [shape: bf16[4,64,128], index: 1, kind: input, shape index: {}]   ;;  %s2183_s2 = inlined_call_operand.vmem [shape: bf16[4,512,128], index: 2, kind: output, shape index: {0}]   ;;  %s2184_s3 = inlined_call_operand.vmem [shape: f32[4,1,2,128], index: 3, kind: output, shape index: {1}]  }
   0x1   :  { %s1749_s14 = smov 0  }
   0x2 LB: > { %s26_s15 = sadd.s32 1, %s1719_s13  ;;  %p1249_p0 = scmp.ge.s32.totalorder %s1723_s14, 1  ;;  %s1723_s14 = sphi %s1749_s14, %s14_s14   ;;  %s1719_s13 = sphi %s1747_s13, %s2186_s13   ;;  %s1715_s12 = sphi %s1745_s12, %s2185_s12  }
   0x3   : > { %p28_p1 = scmp.ge.s32.totalorder %s26_s15, 4  ;;  %p173_p2 = scmp.lt.s32.totalorder %s1723_s14, 5 }
   0x5   : > { %s2188_s15 = smov (%p28_p1, %s26_s15), 0  ;;  %p174_p3 = pnand %p1249_p0, %p173_p2 }
   0x6   : > { %p218_p4 = scmp.lt.s32.totalorder (!%p174_p3), %s1715_s12, 3 }
   0x7   : > { %177 = sbr.rel (%p174_p3) target bundleno = 391 (0x187), region = 28 }
   0xc   : > { %s2190_s12 = smov (!%p218_p4, %s1715_s12), 3  ;;  %vm506_vm0 = vcmask 523264   ;;  %vm1102_vm1 = vcmask 1040384  }
   0xd   : > { %s1436_s16 = sshll.u32 %s2190_s12, 5  ;;  %s1435_s20 = sshll.u32 %s2190_s12, 8 }
   0xe   : > { %s231_s19 = scalar_lea.vmem %s2182_s1, %s1436_s16  ;;  %s1775_s23 = scalar_lea.vmem %s2181_s0, %s1435_s20 }
   0xf   : > { %v1473_v0 = vld [vmem:[%s231_s19 + $0x18] sm:$0xff]  ;;  %v1472_v1 = vld [vmem:[%s231_s19 + $0x10] sm:$0xff]  ;;  %v1471_v2 = vld [vmem:[%s231_s19 + $0x8] sm:$0xff]  ;;  %s1844_s26 = scalar_lea.vmem %s2183_s2, %s1435_s20  ;;  %s1256_s27 = sshll.u32 %s2190_s12, 1 }
  0x10   : > { %607 = vmatpush.bf16.msra.mxu0 %v1473_v0  ;;  %1665 = vmatpush.bf16.msra.mxu1 %v1473_v0  ;;  %v1470_v3 = vld [vmem:[%s231_s19] sm:$0xff]  ;;  %v1439_v6 = vld [vmem:[%s1775_s23 + $0x8] sm:$0xff]  ;;  %v1440_v9 = vld [vmem:[%s1775_s23 + $0x10] sm:$0xff]  ;;  %s248_s30 = scalar_lea.vmem %s2184_s3, %s1256_s27 }
  0x11   : > { %1666 = vmatpush.bf16.msra.mxu2 %v1473_v0  ;;  %1667 = vmatpush.bf16.msra.mxu3 %v1473_v0  ;;  %v1438_v4 = vld [vmem:[%s1775_s23] sm:$0xff]  ;;  %v1447_v7 = vld [vmem:[%s1775_s23 + $0x48] sm:$0xff]  ;;  %v1448_v10 = vld [vmem:[%s1775_s23 + $0x50] sm:$0xff] }
  0x12   : > { %v1446_v5 = vld [vmem:[%s1775_s23 + $0x40] sm:$0xff]  ;;  %v1455_v11 = vld [vmem:[%s1775_s23 + $0x88] sm:$0xff]  ;;  %v1441_v12 = vld [vmem:[%s1775_s23 + $0x18] sm:$0xff] }
  0x13   : > { %v1454_v8 = vld [vmem:[%s1775_s23 + $0x80] sm:$0xff]  ;;  %v1449_v13 = vld [vmem:[%s1775_s23 + $0x58] sm:$0xff]  ;;  %v1456_v14 = vld [vmem:[%s1775_s23 + $0x90] sm:$0xff] }
  0x14   : > { %608 = vmatpush.bf16.msra.mxu0 %v1472_v1  ;;  %1668 = vmatpush.bf16.msra.mxu1 %v1472_v1  ;;  %v1462_v15 = vld [vmem:[%s1775_s23 + $0xc0] sm:$0xff]  ;;  %v1457_v18 = vld [vmem:[%s1775_s23 + $0x98] sm:$0xff]  ;;  %v1463_v19 = vld [vmem:[%s1775_s23 + $0xc8] sm:$0xff] }
  0x15   : > { %1669 = vmatpush.bf16.msra.mxu2 %v1472_v1  ;;  %1670 = vmatpush.bf16.msra.mxu3 %v1472_v1  ;;  %v1442_v16 = vld [vmem:[%s1775_s23 + $0x20] sm:$0xff]  ;;  %v1443_v20 = vld [vmem:[%s1775_s23 + $0x28] sm:$0xff]  ;;  %v1464_v23 = vld [vmem:[%s1775_s23 + $0xd0] sm:$0xff] }
  0x16   : > { %v1450_v17 = vld [vmem:[%s1775_s23 + $0x60] sm:$0xff]  ;;  %v1451_v21 = vld [vmem:[%s1775_s23 + $0x68] sm:$0xff]  ;;  %v1444_v24 = vld [vmem:[%s1775_s23 + $0x30] sm:$0xff] }
  0x17   : > { %v1458_v22 = vld [vmem:[%s1775_s23 + $0xa0] sm:$0xff]  ;;  %v1452_v25 = vld [vmem:[%s1775_s23 + $0x70] sm:$0xff]  ;;  %v1459_v26 = vld [vmem:[%s1775_s23 + $0xa8] sm:$0xff] }
  0x18   : > { %609 = vmatpush.bf16.msra.mxu0 %v1471_v2  ;;  %1671 = vmatpush.bf16.msra.mxu1 %v1471_v2  ;;  %v1465_v27 = vld [vmem:[%s1775_s23 + $0xd8] sm:$0xff]  ;;  %v1460_v30 = vld [vmem:[%s1775_s23 + $0xb0] sm:$0xff]  ;;  %v1466_v31 = vld [vmem:[%s1775_s23 + $0xe0] sm:$0xff] }
  0x19   : > { %1672 = vmatpush.bf16.msra.mxu2 %v1471_v2  ;;  %1673 = vmatpush.bf16.msra.mxu3 %v1471_v2  ;;  %v1445_v28 = vld [vmem:[%s1775_s23 + $0x38] sm:$0xff]  ;;  %v1467_v35 = vld [vmem:[%s1775_s23 + $0xe8] sm:$0xff]  ;;  %v1468_v49 = vld [vmem:[%s1775_s23 + $0xf0] sm:$0xff] }
  0x1a   : > { %v1453_v29 = vld [vmem:[%s1775_s23 + $0x78] sm:$0xff] }
  0x1b   : > { %v1461_v34 = vld [vmem:[%s1775_s23 + $0xb8] sm:$0xff] }
  0x1c   : > { %610 = vmatpush.bf16.msra.mxu0 %v1470_v3  ;;  %1674 = vmatpush.bf16.msra.mxu1 %v1470_v3  ;;  %v1469_v1 = vld [vmem:[%s1775_s23 + $0xf8] sm:$0xff] }
  0x1d   : > { %1675 = vmatpush.bf16.msra.mxu2 %v1470_v3  ;;  %1676 = vmatpush.bf16.msra.mxu3 %v1470_v3 }
  0x1f   : > { %1401 = vmatmul.msk.bf16.vlgmr.msra.gmra.mxu0 %vm506_vm0, %v1438_v4  ;;  %1409 = vmatmul.msk.bf16.vlgmr.msra.gmra.mxu1 %vm506_vm0, %v1446_v5 }
  0x20   : > { %1417 = vmatmul.msk.bf16.vlgmr.msra.gmra.mxu2 %vm506_vm0, %v1454_v8  ;;  %1425 = vmatmul.msk.bf16.vlgmr.msra.gmra.mxu3 %vm506_vm0, %v1462_v15 }
  0x2f   : > { %1402 = vmatmul.msk.bf16.gmra.mxu0 %vm506_vm0, %v1439_v6  ;;  %1410 = vmatmul.msk.bf16.gmra.mxu1 %vm506_vm0, %v1447_v7 }
  0x30   : > { %1418 = vmatmul.msk.bf16.gmra.mxu2 %vm506_vm0, %v1455_v11  ;;  %1426 = vmatmul.msk.bf16.gmra.mxu3 %vm506_vm0, %v1463_v19 }
  0x3f   : > { %1403 = vmatmul.msk.bf16.gmra.mxu0 %vm506_vm0, %v1440_v9  ;;  %1411 = vmatmul.msk.bf16.gmra.mxu1 %vm506_vm0, %v1448_v10 }
  0x40   : > { %1419 = vmatmul.msk.bf16.gmra.mxu2 %vm506_vm0, %v1456_v14  ;;  %1427 = vmatmul.msk.bf16.gmra.mxu3 %vm506_vm0, %v1464_v23 }
  0x4f   : > { %1404 = vmatmul.msk.bf16.gmra.mxu0 %vm506_vm0, %v1441_v12  ;;  %1412 = vmatmul.msk.bf16.gmra.mxu1 %vm506_vm0, %v1449_v13 }
  0x50   : > { %1420 = vmatmul.msk.bf16.gmra.mxu2 %vm506_vm0, %v1457_v18  ;;  %1428 = vmatmul.msk.bf16.gmra.mxu3 %vm506_vm0, %v1465_v27 }
  0x5f   : > { %1405 = vmatmul.msk.bf16.gmra.mxu0 %vm506_vm0, %v1442_v16  ;;  %1413 = vmatmul.msk.bf16.gmra.mxu1 %vm506_vm0, %v1450_v17 }
  0x60   : > { %1421 = vmatmul.msk.bf16.gmra.mxu2 %vm506_vm0, %v1458_v22  ;;  %1429 = vmatmul.msk.bf16.gmra.mxu3 %vm506_vm0, %v1466_v31 }
  0x6f   : > { %1406 = vmatmul.msk.bf16.gmra.mxu0 %vm506_vm0, %v1443_v20  ;;  %1414 = vmatmul.msk.bf16.gmra.mxu1 %vm506_vm0, %v1451_v21 }
  0x70   : > { %1422 = vmatmul.msk.bf16.gmra.mxu2 %vm506_vm0, %v1459_v26  ;;  %1430 = vmatmul.msk.bf16.gmra.mxu3 %vm506_vm0, %v1467_v35 }
  0x7f   : > { %1407 = vmatmul.msk.bf16.gmra.mxu0 %vm506_vm0, %v1444_v24  ;;  %1415 = vmatmul.msk.bf16.gmra.mxu1 %vm506_vm0, %v1452_v25 }
  0x80   : > { %1423 = vmatmul.msk.bf16.gmra.mxu2 %vm506_vm0, %v1460_v30  ;;  %1431 = vmatmul.msk.bf16.gmra.mxu3 %vm506_vm0, %v1468_v49 }
  0x8f   : > { %1408 = vmatmul.msk.bf16.gmra.mxu0 %vm506_vm0, %v1445_v28  ;;  %1416 = vmatmul.msk.bf16.gmra.mxu1 %vm506_vm0, %v1453_v29 }
  0x90   : > { %1424 = vmatmul.msk.bf16.gmra.mxu2 %vm506_vm0, %v1461_v34  ;;  %1432 = vmatmul.msk.bf16.gmra.mxu3 %vm506_vm0, %v1469_v1 }
  0x9c   : > { %v612_v32 = vpop.f32.mrf.mxu0  ;;  %v1833_v33 = vpop.f32.mrf.mxu1 }
  0x9d   : > { %v969_v36 = vmul.f32 %v612_v32, %v612_v32 }
  0xa3   : > { %v1860_v56 = vpop.f32.mrf.mxu2  ;;  %v1898_v16 = vpop.f32.mrf.mxu3 }
  0xa4   : > { %v614_v37 = vpop.f32.mrf.mxu0  ;;  %v1846_v38 = vpop.f32.mrf.mxu1 }
  0xa5   : > { %v1477_v39 = vpack.c.bf16 %v614_v37, %v612_v32  ;;  %v900_v40 = vadd.f32 %v614_v37, %v612_v32  ;;  %v970_v41 = vmul.f32 %v614_v37, %v614_v37  ;;  %v1517_v42 = vpack.c.bf16 %v1846_v38, %v1833_v33 }
  0xa7   : > { %1478 = vst [vmem:[%s1844_s26] sm:$0xff] %v1477_v39   ;;  %v1033_v43 = vadd.f32 %v970_v41, %v969_v36 }
  0xa8   : > { %1641 = vst [vmem:[%s1844_s26 + $0x40] sm:$0xff] %v1517_v42  }
  0xab   : > { %v1868_v62 = vpop.f32.mrf.mxu2  ;;  %v1906_v20 = vpop.f32.mrf.mxu3 }
  0xac   : > { %v617_v44 = vpop.f32.mrf.mxu0  ;;  %v1852_v45 = vpop.f32.mrf.mxu1  ;;  %v1557_v63 = vpack.c.bf16 %v1868_v62, %v1860_v56  ;;  %v1597_v22 = vpack.c.bf16 %v1906_v20, %v1898_v16 }
  0xad   : > { %v901_v46 = vadd.f32 %v900_v40, %v617_v44  ;;  %v971_v47 = vmul.f32 %v617_v44, %v617_v44 }
  0xae   : > { %1649 = vst [vmem:[%s1844_s26 + $0x80] sm:$0xff] %v1557_v63  }
  0xaf   : > { %v1034_v48 = vadd.f32 %v1033_v43, %v971_v47  ;;  %1657 = vst [vmem:[%s1844_s26 + $0xc0] sm:$0xff] %v1597_v22  }
  0xb3   : > { %v1881_v6 = vpop.f32.mrf.mxu2  ;;  %v1920_v28 = vpop.f32.mrf.mxu3 }
  0xb4   : > { %v619_v50 = vpop.f32.mrf.mxu0  ;;  %v1856_v51 = vpop.f32.mrf.mxu1 }
  0xb5   : > { %v1482_v52 = vpack.c.bf16 %v619_v50, %v617_v44  ;;  %v902_v53 = vadd.f32 %v901_v46, %v619_v50  ;;  %v972_v54 = vmul.f32 %v619_v50, %v619_v50  ;;  %v1522_v55 = vpack.c.bf16 %v1856_v51, %v1852_v45 }
  0xb7   : > { %1634 = vst [vmem:[%s1844_s26 + $0x8] sm:$0xff] %v1482_v52   ;;  %v1035_v57 = vadd.f32 %v1034_v48, %v972_v54 }
  0xb8   : > { %1642 = vst [vmem:[%s1844_s26 + $0x48] sm:$0xff] %v1522_v55  }
  0xbb   : > { %v1887_v9 = vpop.f32.mrf.mxu2  ;;  %v1928_v32 = vpop.f32.mrf.mxu3 }
  0xbc   : > { %v622_v58 = vpop.f32.mrf.mxu0  ;;  %v1864_v59 = vpop.f32.mrf.mxu1  ;;  %v1562_v10 = vpack.c.bf16 %v1887_v9, %v1881_v6  ;;  %v1602_v35 = vpack.c.bf16 %v1928_v32, %v1920_v28 }
  0xbd   : > { %v1866_v60 = vadd.f32 %v902_v53, %v622_v58  ;;  %v973_v61 = vmul.f32 %v622_v58, %v622_v58 }
  0xbe   : > { %1650 = vst [vmem:[%s1844_s26 + $0x88] sm:$0xff] %v1562_v10  }
  0xbf   : > { %v1872_v0 = vadd.f32 %v1035_v57, %v973_v61  ;;  %1658 = vst [vmem:[%s1844_s26 + $0xc8] sm:$0xff] %v1602_v35  }
  0xc3   : > { %v1896_v15 = vpop.f32.mrf.mxu2  ;;  %v1942_v42 = vpop.f32.mrf.mxu3 }
  0xc4   : > { %v624_v2 = vpop.f32.mrf.mxu0  ;;  %v1877_v3 = vpop.f32.mrf.mxu1 }
  0xc5   : > { %v1487_v4 = vpack.c.bf16 %v624_v2, %v622_v58  ;;  %v1527_v5 = vpack.c.bf16 %v1877_v3, %v1864_v59  ;;  %v974_v48 = vmul.f32 %v624_v2, %v624_v2  ;;  %v904_v53 = vadd.f32 %v1866_v60, %v624_v2 }
  0xc7   : > { %1635 = vst [vmem:[%s1844_s26 + $0x10] sm:$0xff] %v1487_v4   ;;  %v1037_v54 = vadd.f32 %v1872_v0, %v974_v48 }
  0xc8   : > { %1643 = vst [vmem:[%s1844_s26 + $0x50] sm:$0xff] %v1527_v5  }
  0xcb   : > { %v1904_v19 = vpop.f32.mrf.mxu2  ;;  %v1950_v47 = vpop.f32.mrf.mxu3 }
  0xcc   : > { %v627_v7 = vpop.f32.mrf.mxu0  ;;  %v1885_v8 = vpop.f32.mrf.mxu1  ;;  %v1567_v21 = vpack.c.bf16 %v1904_v19, %v1896_v15  ;;  %v1607_v50 = vpack.c.bf16 %v1950_v47, %v1942_v42 }
  0xcd   : > { %v975_v52 = vmul.f32 %v627_v7, %v627_v7  ;;  %v905_v57 = vadd.f32 %v904_v53, %v627_v7 }
  0xce   : > { %1651 = vst [vmem:[%s1844_s26 + $0x90] sm:$0xff] %v1567_v21  }
  0xcf   : > { %1659 = vst [vmem:[%s1844_s26 + $0xd0] sm:$0xff] %v1607_v50   ;;  %v1038_v58 = vadd.f32 %v1037_v54, %v975_v52 }
  0xd3   : > { %v1918_v27 = vpop.f32.mrf.mxu2  ;;  %v1966_v60 = vpop.f32.mrf.mxu3 }
  0xd4   : > { %v629_v11 = vpop.f32.mrf.mxu0  ;;  %v1892_v12 = vpop.f32.mrf.mxu1 }
  0xd5   : > { %v1492_v13 = vpack.c.bf16 %v629_v11, %v627_v7  ;;  %v1532_v14 = vpack.c.bf16 %v1892_v12, %v1885_v8  ;;  %v976_v55 = vmul.f32 %v629_v11, %v629_v11  ;;  %v906_v4 = vadd.f32 %v905_v57, %v629_v11 }
  0xd7   : > { %1636 = vst [vmem:[%s1844_s26 + $0x18] sm:$0xff] %v1492_v13   ;;  %v1039_v2 = vadd.f32 %v1038_v58, %v976_v55 }
  0xd8   : > { %1644 = vst [vmem:[%s1844_s26 + $0x58] sm:$0xff] %v1532_v14  }
  0xdb   : > { %v1926_v31 = vpop.f32.mrf.mxu2  ;;  %v1974_v50 = vpop.f32.mrf.mxu3 }
  0xdc   : > { %v632_v17 = vpop.f32.mrf.mxu0  ;;  %v1902_v18 = vpop.f32.mrf.mxu1  ;;  %v1572_v34 = vpack.c.bf16 %v1926_v31, %v1918_v27  ;;  %v1612_v53 = vpack.c.bf16 %v1974_v50, %v1966_v60 }
  0xdd   : > { %v977_v61 = vmul.f32 %v632_v17, %v632_v17  ;;  %v907_v0 = vadd.f32 %v906_v4, %v632_v17 }
  0xde   : > { %1652 = vst [vmem:[%s1844_s26 + $0x98] sm:$0xff] %v1572_v34  }
  0xdf   : > { %v1040_v7 = vadd.f32 %v1039_v2, %v977_v61  ;;  %1660 = vst [vmem:[%s1844_s26 + $0xd8] sm:$0xff] %v1612_v53  }
  0xe3   : > { %v1940_v41 = vpop.f32.mrf.mxu2 }
  0xe4   : > { %v634_v23 = vpop.f32.mrf.mxu0  ;;  %v1914_v24 = vpop.f32.mrf.mxu1 }
  0xe5   : > { %v1497_v25 = vpack.c.bf16 %v634_v23, %v632_v17  ;;  %v1537_v26 = vpack.c.bf16 %v1914_v24, %v1902_v18  ;;  %v978_v14 = vmul.f32 %v634_v23, %v634_v23  ;;  %v908_v22 = vadd.f32 %v907_v0, %v634_v23 }
  0xe7   : > { %1637 = vst [vmem:[%s1844_s26 + $0x20] sm:$0xff] %v1497_v25   ;;  %v1041_v25 = vadd.f32 %v1040_v7, %v978_v14  ;;  %v1988_v7 = vpop.f32.mrf.mxu3 }
  0xe8   : > { %1645 = vst [vmem:[%s1844_s26 + $0x60] sm:$0xff] %v1537_v26  }
  0xeb   : > { %v1948_v46 = vpop.f32.mrf.mxu2 }
  0xec   : > { %v637_v29 = vpop.f32.mrf.mxu0  ;;  %v1924_v30 = vpop.f32.mrf.mxu1  ;;  %v1577_v49 = vpack.c.bf16 %v1948_v46, %v1940_v41 }
  0xed   : > { %v979_v21 = vmul.f32 %v637_v29, %v637_v29  ;;  %v909_v11 = vadd.f32 %v908_v22, %v637_v29 }
  0xee   : > { %1653 = vst [vmem:[%s1844_s26 + $0xa0] sm:$0xff] %v1577_v49  }
  0xef   : > { %v1042_v34 = vadd.f32 %v1041_v25, %v979_v21  ;;  %v986_v25 = vmul.f32 %v1846_v38, %v1846_v38 }
  0xf3   : > { %v1964_v13 = vpop.f32.mrf.mxu2 }
  0xf4   : > { %v639_v36 = vpop.f32.mrf.mxu0  ;;  %v1936_v37 = vpop.f32.mrf.mxu1 }
  0xf5   : > { %v1502_v39 = vpack.c.bf16 %v639_v36, %v637_v29  ;;  %v1542_v40 = vpack.c.bf16 %v1936_v37, %v1924_v30  ;;  %v980_v26 = vmul.f32 %v639_v36, %v639_v36  ;;  %v910_v48 = vadd.f32 %v909_v11, %v639_v36 }
  0xf7   : > { %1638 = vst [vmem:[%s1844_s26 + $0x28] sm:$0xff] %v1502_v39   ;;  %v1043_v17 = vadd.f32 %v1042_v34, %v980_v26  ;;  %v987_v34 = vmul.f32 %v1852_v45, %v1852_v45 }
  0xf8   : > { %1646 = vst [vmem:[%s1844_s26 + $0x68] sm:$0xff] %v1542_v40  }
  0xfb   : > { %v1972_v49 = vpop.f32.mrf.mxu2 }
  0xfc   : > { %v642_v43 = vpop.f32.mrf.mxu0  ;;  %v1946_v44 = vpop.f32.mrf.mxu1  ;;  %v1582_v23 = vpack.c.bf16 %v1972_v49, %v1964_v13 }
  0xfd   : > { %v981_v35 = vmul.f32 %v642_v43, %v642_v43  ;;  %v911_v29 = vadd.f32 %v910_v48, %v642_v43  ;;  %v988_v48 = vmul.f32 %v1856_v51, %v1856_v51 }
  0xfe   : > { %1654 = vst [vmem:[%s1844_s26 + $0xa8] sm:$0xff] %v1582_v23   ;;  %v2006_v23 = vpop.f32.mrf.mxu3 }
  0xff   : > { %v1044_v54 = vadd.f32 %v1043_v17, %v981_v35  ;;  %v1617_v53 = vpack.c.bf16 %v2006_v23, %v1988_v7 }
 0x101   : > { %1661 = vst [vmem:[%s1844_s26 + $0xe0] sm:$0xff] %v1617_v53  }
 0x104   : > { %v644_v63 = vpop.f32.mrf.mxu0  ;;  %v1960_v1 = vpop.f32.mrf.mxu1 }
 0x105   : > { %v1507_v5 = vpack.c.bf16 %v644_v63, %v642_v43  ;;  %v1547_v10 = vpack.c.bf16 %v1960_v1, %v1946_v44  ;;  %v982_v52 = vmul.f32 %v644_v63, %v644_v63  ;;  %v912_v57 = vadd.f32 %v911_v29, %v644_v63  ;;  %v1986_v43 = vpop.f32.mrf.mxu2 }
 0x106   : > { %v985_v63 = vmul.f32 %v1833_v33, %v1833_v33  ;;  %v998_v53 = vmul.f32 %v1960_v1, %v1960_v1 }
 0x107   : > { %1639 = vst [vmem:[%s1844_s26 + $0x30] sm:$0xff] %v1507_v5   ;;  %v1045_v36 = vadd.f32 %v1044_v54, %v982_v52 }
 0x108   : > { %1647 = vst [vmem:[%s1844_s26 + $0x70] sm:$0xff] %v1547_v10  }
 0x10c   : > { %v647_v39 = vpop.f32.mrf.mxu0  ;;  %v1970_v40 = vpop.f32.mrf.mxu1 }
 0x10d   : > { %v983_v55 = vmul.f32 %v647_v39, %v647_v39  ;;  %v913_v58 = vadd.f32 %v912_v57, %v647_v39  ;;  %v2004_v52 = vpop.f32.mrf.mxu2 }
 0x10f   : > { %v1046_v61 = vadd.f32 %v1045_v36, %v983_v55  ;;  %v991_v36 = vmul.f32 %v1885_v8, %v1885_v8 }
 0x114   : > { %v649_v4 = vpop.f32.mrf.mxu0  ;;  %v1982_v5 = vpop.f32.mrf.mxu1 }
 0x115   : > { %v1512_v10 = vpack.c.bf16 %v649_v4, %v647_v39  ;;  %v914_v2 = vadd.f32 %v913_v58, %v649_v4  ;;  %v984_v14 = vmul.f32 %v649_v4, %v649_v4  ;;  %v1552_v0 = vpack.c.bf16 %v1982_v5, %v1970_v40 }
 0x116   : > { %v992_v4 = vmul.f32 %v1892_v12, %v1892_v12 }
 0x117   : > { %1640 = vst [vmem:[%s1844_s26 + $0x38] sm:$0xff] %v1512_v10   ;;  %v915_v21 = vadd.f32 %v914_v2, %v1833_v33  ;;  %v1047_v22 = vadd.f32 %v1046_v61, %v984_v14  ;;  %v2026_v2 = vpop.f32.mrf.mxu2  ;;  %v2028_v14 = vpop.f32.mrf.mxu3 }
 0x118   : > { %1648 = vst [vmem:[%s1844_s26 + $0x78] sm:$0xff] %v1552_v0  }
 0x119   : > { %v916_v26 = vadd.f32 %v915_v21, %v1846_v38  ;;  %v1048_v11 = vadd.f32 %v1047_v22, %v985_v63  ;;  %v1587_v38 = vpack.c.bf16 %v2004_v52, %v1986_v43  ;;  %v994_v21 = vmul.f32 %v1914_v24, %v1914_v24 }
 0x11b   : > { %v917_v35 = vadd.f32 %v916_v26, %v1852_v45  ;;  %v1049_v39 = vadd.f32 %v1048_v11, %v986_v25  ;;  %v989_v45 = vmul.f32 %v1864_v59, %v1864_v59  ;;  %1655 = vst [vmem:[%s1844_s26 + $0xb0] sm:$0xff] %v1587_v38   ;;  %v996_v11 = vmul.f32 %v1936_v37, %v1936_v37 }
 0x11d   : > { %v918_v33 = vadd.f32 %v917_v35, %v1856_v51  ;;  %v1050_v17 = vadd.f32 %v1049_v39, %v987_v34  ;;  %v990_v51 = vmul.f32 %v1877_v3, %v1877_v3 }
 0x11f   : > { %v919_v29 = vadd.f32 %v918_v33, %v1864_v59  ;;  %v1051_v54 = vadd.f32 %v1050_v17, %v988_v48  ;;  %v2042_v35 = vpop.f32.mrf.mxu2  ;;  %v2044_v39 = vpop.f32.mrf.mxu3  ;;  %v997_v33 = vmul.f32 %v1946_v44, %v1946_v44 }
 0x120   : > { %v1622_v48 = vpack.c.bf16 %v2044_v39, %v2028_v14 }
 0x121   : > { %v920_v55 = vadd.f32 %v919_v29, %v1877_v3  ;;  %v1052_v57 = vadd.f32 %v1051_v54, %v989_v45  ;;  %v993_v3 = vmul.f32 %v1902_v18, %v1902_v18  ;;  %v999_v54 = vmul.f32 %v1970_v40, %v1970_v40 }
 0x122   : > { %1662 = vst [vmem:[%s1844_s26 + $0xe8] sm:$0xff] %v1622_v48   ;;  %v1009_v48 = vmul.f32 %v1940_v41, %v1940_v41 }
 0x123   : > { %v1053_v58 = vadd.f32 %v1052_v57, %v990_v51  ;;  %v921_v61 = vadd.f32 %v920_v55, %v1885_v8 }
 0x125   : > { %v922_v59 = vadd.f32 %v921_v61, %v1892_v12  ;;  %v1054_v10 = vadd.f32 %v1053_v58, %v991_v36  ;;  %v995_v12 = vmul.f32 %v1924_v30, %v1924_v30  ;;  %v1001_v36 = vmul.f32 %v1860_v56, %v1860_v56 }
 0x126   : > { %v1002_v61 = vmul.f32 %v1868_v62, %v1868_v62 }
 0x127   : > { %v923_v0 = vadd.f32 %v922_v59, %v1902_v18  ;;  %v1055_v63 = vadd.f32 %v1054_v10, %v992_v4  ;;  %v2064_v57 = vpop.f32.mrf.mxu3  ;;  %v1003_v59 = vmul.f32 %v1881_v6, %v1881_v6 }
 0x129   : > { %v924_v8 = vadd.f32 %v923_v0, %v1914_v24  ;;  %v1056_v22 = vadd.f32 %v1055_v63, %v993_v3  ;;  %v1592_v24 = vpack.c.bf16 %v2042_v35, %v2026_v2  ;;  %v1004_v3 = vmul.f32 %v1887_v9, %v1887_v9 }
 0x12b   : > { %v925_v25 = vadd.f32 %v924_v8, %v1924_v30  ;;  %v1057_v26 = vadd.f32 %v1056_v22, %v994_v21  ;;  %1656 = vst [vmem:[%s1844_s26 + $0xb8] sm:$0xff] %v1592_v24  }
 0x12d   : > { %v926_v18 = vadd.f32 %v925_v25, %v1936_v37  ;;  %v1058_v34 = vadd.f32 %v1057_v26, %v995_v12 }
 0x12f   : > { %v927_v30 = vadd.f32 %v926_v18, %v1946_v44  ;;  %v1059_v17 = vadd.f32 %v1058_v34, %v996_v11  ;;  %v1000_v44 = vmul.f32 %v1982_v5, %v1982_v5  ;;  %v2078_v63 = vpop.f32.mrf.mxu3  ;;  %v1008_v18 = vmul.f32 %v1926_v31, %v1926_v31 }
 0x130   : > { %v1627_v21 = vpack.c.bf16 %v2078_v63, %v2064_v57 }
 0x131   : > { %v1060_v38 = vadd.f32 %v1059_v17, %v997_v33  ;;  %v928_v37 = vadd.f32 %v927_v30, %v1960_v1  ;;  %v1010_v33 = vmul.f32 %v1948_v46, %v1948_v46 }
 0x132   : > { %1663 = vst [vmem:[%s1844_s26 + $0xf0] sm:$0xff] %v1627_v21  }
 0x133   : > { %v1061_v45 = vadd.f32 %v1060_v38, %v998_v53  ;;  %v929_v29 = vadd.f32 %v928_v37, %v1970_v40  ;;  %v1011_v38 = vmul.f32 %v1964_v13, %v1964_v13 }
 0x135   : > { %v1062_v51 = vadd.f32 %v1061_v45, %v999_v54  ;;  %v930_v55 = vadd.f32 %v929_v29, %v1982_v5  ;;  %v1012_v45 = vmul.f32 %v1972_v49, %v1972_v49 }
 0x137   : > { %v931_v1 = vadd.f32 %v930_v55, %v1860_v56  ;;  %v1063_v58 = vadd.f32 %v1062_v51, %v1000_v44  ;;  %v2095_v24 = vpop.f32.mrf.mxu3 }
 0x139   : > { %v932_v40 = vadd.f32 %v931_v1, %v1868_v62  ;;  %v1064_v4 = vadd.f32 %v1063_v58, %v1001_v36  ;;  %v1005_v62 = vmul.f32 %v1896_v15, %v1896_v15  ;;  %v1014_v36 = vmul.f32 %v2004_v52, %v2004_v52 }
 0x13a   : > { %v1015_v58 = vmul.f32 %v2026_v2, %v2026_v2 }
 0x13b   : > { %v933_v5 = vadd.f32 %v932_v40, %v1881_v6  ;;  %v1065_v10 = vadd.f32 %v1064_v4, %v1002_v61  ;;  %v1006_v6 = vmul.f32 %v1904_v19, %v1904_v19  ;;  %v1016_v4 = vmul.f32 %v2042_v35, %v2042_v35 }
 0x13d   : > { %v934_v0 = vadd.f32 %v933_v5, %v1887_v9  ;;  %v1066_v56 = vadd.f32 %v1065_v10, %v1003_v59  ;;  %v1007_v9 = vmul.f32 %v1918_v27, %v1918_v27 }
 0x13f   : > { %v935_v8 = vadd.f32 %v934_v0, %v1896_v15  ;;  %v1067_v22 = vadd.f32 %v1066_v56, %v1004_v3  ;;  %v769_v29 = vpop.f32.mrf.mxu3 }
 0x140   : > { %v1632_v54 = vpack.c.bf16 %v769_v29, %v2095_v24 }
 0x141   : > { %v936_v12 = vadd.f32 %v935_v8, %v1904_v19  ;;  %v1068_v25 = vadd.f32 %v1067_v22, %v1005_v62 }
 0x142   : > { %1664 = vst [vmem:[%s1844_s26 + $0xf8] sm:$0xff] %v1632_v54   ;;  %v1032_v54 = vmul.f32 %v769_v29, %v769_v29 }
 0x143   : > { %v1069_v26 = vadd.f32 %v1068_v25, %v1006_v6  ;;  %v937_v11 = vadd.f32 %v936_v12, %v1918_v27 }
 0x145   : > { %v938_v34 = vadd.f32 %v937_v11, %v1926_v31  ;;  %v1070_v15 = vadd.f32 %v1069_v26, %v1007_v9 }
 0x147   : > { %v939_v19 = vadd.f32 %v938_v34, %v1940_v41  ;;  %v1071_v30 = vadd.f32 %v1070_v15, %v1008_v18 }
 0x149   : > { %v940_v27 = vadd.f32 %v939_v19, %v1948_v46  ;;  %v1072_v17 = vadd.f32 %v1071_v30, %v1009_v48  ;;  %v1013_v46 = vmul.f32 %v1986_v43, %v1986_v43 }
 0x14b   : > { %v941_v31 = vadd.f32 %v940_v27, %v1964_v13  ;;  %v1073_v37 = vadd.f32 %v1072_v17, %v1010_v33  ;;  %v1028_v33 = vmul.f32 %v2044_v39, %v2044_v39 }
 0x14d   : > { %v942_v53 = vadd.f32 %v941_v31, %v1972_v49  ;;  %v1074_v41 = vadd.f32 %v1073_v37, %v1011_v38  ;;  %v1029_v38 = vmul.f32 %v2064_v57, %v2064_v57  ;;  %v1030_v37 = vmul.f32 %v2078_v63, %v2078_v63 }
 0x14f   : > { %v1075_v51 = vadd.f32 %v1074_v41, %v1012_v45  ;;  %v943_v55 = vadd.f32 %v942_v53, %v1986_v43  ;;  %v1017_v43 = vmul.f32 %v1898_v16, %v1898_v16 }
 0x151   : > { %v1076_v44 = vadd.f32 %v1075_v51, %v1013_v46  ;;  %v944_v13 = vadd.f32 %v943_v55, %v2004_v52  ;;  %v1018_v52 = vmul.f32 %v1906_v20, %v1906_v20 }
 0x153   : > { %v1077_v1 = vadd.f32 %v1076_v44, %v1014_v36  ;;  %v945_v49 = vadd.f32 %v944_v13, %v2026_v2  ;;  %v1019_v2 = vmul.f32 %v1920_v28, %v1920_v28 }
 0x155   : > { %v1078_v61 = vadd.f32 %v1077_v1, %v1015_v58  ;;  %v946_v40 = vadd.f32 %v945_v49, %v2042_v35  ;;  %v1020_v35 = vmul.f32 %v1928_v32, %v1928_v32 }
 0x157   : > { %v947_v59 = vadd.f32 %v946_v40, %v1898_v16  ;;  %v1079_v5 = vadd.f32 %v1078_v61, %v1016_v4  ;;  %v1021_v16 = vmul.f32 %v1942_v42, %v1942_v42 }
 0x159   : > { %v948_v10 = vadd.f32 %v947_v59, %v1906_v20  ;;  %v1080_v3 = vadd.f32 %v1079_v5, %v1017_v43  ;;  %v1022_v20 = vmul.f32 %v1950_v47, %v1950_v47 }
 0x15b   : > { %v949_v0 = vadd.f32 %v948_v10, %v1920_v28  ;;  %v1081_v56 = vadd.f32 %v1080_v3, %v1018_v52  ;;  %v1023_v28 = vmul.f32 %v1966_v60, %v1966_v60 }
 0x15d   : > { %v950_v21 = vadd.f32 %v949_v0, %v1928_v32  ;;  %v1082_v62 = vadd.f32 %v1081_v56, %v1019_v2  ;;  %v1024_v32 = vmul.f32 %v1974_v50, %v1974_v50 }
 0x15f   : > { %v951_v8 = vadd.f32 %v950_v21, %v1942_v42  ;;  %v1083_v22 = vadd.f32 %v1082_v62, %v1020_v35  ;;  %v1025_v42 = vmul.f32 %v1988_v7, %v1988_v7 }
 0x161   : > { %v952_v6 = vadd.f32 %v951_v8, %v1950_v47  ;;  %v1084_v12 = vadd.f32 %v1083_v22, %v1021_v16  ;;  %v1026_v47 = vmul.f32 %v2006_v23, %v2006_v23 }
 0x163   : > { %v1085_v25 = vadd.f32 %v1084_v12, %v1022_v20  ;;  %v953_v9 = vadd.f32 %v952_v6, %v1966_v60  ;;  %v1027_v60 = vmul.f32 %v2028_v14, %v2028_v14 }
 0x165   : > { %v954_v26 = vadd.f32 %v953_v9, %v1974_v50  ;;  %v1086_v11 = vadd.f32 %v1085_v25, %v1023_v28 }
 0x167   : > { %v955_v18 = vadd.f32 %v954_v26, %v1988_v7  ;;  %v1087_v34 = vadd.f32 %v1086_v11, %v1024_v32 }
 0x169   : > { %v956_v15 = vadd.f32 %v955_v18, %v2006_v23  ;;  %v1088_v48 = vadd.f32 %v1087_v34, %v1025_v42 }
 0x16b   : > { %v957_v19 = vadd.f32 %v956_v15, %v2028_v14  ;;  %v1089_v30 = vadd.f32 %v1088_v48, %v1026_v47 }
 0x16d   : > { %v958_v50 = vadd.f32 %v957_v19, %v2044_v39  ;;  %v1090_v27 = vadd.f32 %v1089_v30, %v1027_v60  ;;  %v1031_v39 = vmul.f32 %v2095_v24, %v2095_v24 }
 0x16f   : > { %v1091_v7 = vadd.f32 %v1090_v27, %v1028_v33  ;;  %v959_v17 = vadd.f32 %v958_v50, %v2064_v57 }
 0x171   : > { %v1092_v23 = vadd.f32 %v1091_v7, %v1029_v38  ;;  %v960_v31 = vadd.f32 %v959_v17, %v2078_v63 }
 0x173   : > { %v1093_v14 = vadd.f32 %v1092_v23, %v1030_v37  ;;  %v961_v53 = vadd.f32 %v960_v31, %v2095_v24 }
 0x175   : > { %v1094_v45 = vadd.f32 %v1093_v14, %v1031_v39  ;;  %v962_v41 = vadd.f32 %v961_v53, %v769_v29 }
 0x177   : > { %v963_v51 = vrot.slane %v962_v41, 4  ;;  %v1095_v55 = vadd.f32 %v1094_v45, %v1032_v54 }
 0x179   : > { %v964_v46 = vadd.f32 %v963_v51, %v962_v41  ;;  %v1096_v57 = vrot.slane %v1095_v55, 4 }
 0x17b   : > { %v965_v44 = vrot.slane %v964_v46, 2  ;;  %v1097_v13 = vadd.f32 %v1096_v57, %v1095_v55 }
 0x17d   : > { %v966_v36 = vadd.f32 %v965_v44, %v964_v46  ;;  %v1098_v1 = vrot.slane %v1097_v13, 2 }
 0x17f   : > { %v967_v49 = vrot.slane %v966_v36, 1  ;;  %v1099_v63 = vadd.f32 %v1098_v1, %v1097_v13 }
 0x181   : > { %v1100_v58 = vrot.slane %v1099_v63, 1  ;;  %v968_v24 = vadd.f32 %v967_v49, %v966_v36 }
 0x183   : > { %v1101_v61 = vadd.f32 %v1100_v58, %v1099_v63 }
 0x185   : > { %v1103_v29 = vsel %vm1102_vm1, %v968_v24, %v1101_v61 }
 0x186   : > { %1104 = vst [vmem:[%s248_s30] sm:$0x3] %v1103_v29 }
 0x187 PF: > { %s14_s14 = sadd.s32 1, %s1723_s14   ;;  %s2185_s12 = smov %s1719_s13 }
 0x188   : > { %p11_p5 = scmp.ge.s32.totalorder %s14_s14, 6   ;;  %s2186_s13 = smov %s2188_s15 }
 0x18a   :  { %13 = sbr.rel (!%p11_p5) target bundleno = 2 (0x2), region = 73 }

// kernel: generator_forward.17
= control target key start
LH: loop header
LB: loop body
LE: loop exit
PB: predicated region body
PF: predicated region fallthrough
CT: control target
= control target key end

     0   :  { %s1387_s9 = smov 0   ;;  %s1389_s10 = smov 0   ;;  %s1577_s0 = inlined_call_operand.vmem [shape: bf16[4,2048,32], index: 0, kind: input, shape index: {}]   ;;  %s1578_s1 = inlined_call_operand.vmem [shape: bf16[4,32,128], index: 1, kind: input, shape index: {}]   ;;  %s1579_s2 = inlined_call_operand.vmem [shape: f32[4,2048,128], index: 2, kind: output, shape index: {}]  }
   0x1   :  { %s1391_s11 = smov 0   ;;  %s1393_s12 = smov 0  }
   0x2   :  { %s1395_s13 = smov 0  }
   0x3 LB: > { %s21_s14 = sadd.s32 1, %s1362_s11  ;;  %s24_s15 = sadd.s32 1, %s1366_s12  ;;  %s1370_s13 = sphi %s1395_s13, %s12_s13   ;;  %s1366_s12 = sphi %s1393_s12, %s1583_s12   ;;  %s1362_s11 = sphi %s1391_s11, %s1582_s11   ;;  %s1358_s10 = sphi %s1389_s10, %s1581_s10   ;;  %s1354_s9 = sphi %s1387_s9, %s1580_s9  }
   0x4   : > { %p22_p0 = scmp.ge.s32.totalorder %s21_s14, 4  ;;  %p944_p1 = scmp.ge.s32.totalorder %s1370_s13, 1 }
   0x5   : > { %p143_p2 = scmp.lt.s32.totalorder %s1370_s13, 17 }
   0x6   : > { %s1585_s14 = smov (%p22_p0, %s21_s14), 0  ;;  %s1587_s15 = smov (!%p22_p0, %s24_s15), %s1366_s12 }
   0x7   : > { %p144_p3 = pnand %p944_p1, %p143_p2  ;;  %p26_p4 = scmp.ge.s32.totalorder %s1587_s15, 4 }
   0x8   : > { %s945_s16 = sshll.u32 (!%p144_p3), %s1354_s9, 6  ;;  %p179_p5 = scmp.lt.s32.totalorder (!%p144_p3), %s1358_s10, 3 }
   0x9   : > { %s1589_s15 = smov (%p26_p4, %s1587_s15), 0  ;;  %147 = sbr.rel (%p144_p3) target bundleno = 287 (0x11f), region = 28 }
   0xa   : > { %p181_p6 = scmp.lt.s32.totalorder (!%p144_p3), %s945_s16, 255 }
   0xe   : > { %s1591_s10 = smov (!%p179_p5, %s1358_s10), 3  ;;  %s1593_s16 = smov (!%p181_p6, %s945_s16), 255  ;;  %vm444_vm0 = vcmask 261120  }
   0xf   : > { %s946_s17 = sshll.u32 %s1591_s10, 8  ;;  %s1123_s18 = sshll.u32 %s1591_s10, 4 }
  0x10   : > { %s1417_s19 = sadd.s32 %s946_s17, %s1593_s16  ;;  %s192_s22 = scalar_lea.vmem %s1578_s1, %s1123_s18 }
  0x11   : > { %s947_s23 = sshll.u32 %s1417_s19, 2  ;;  %v1157_v0 = vld [vmem:[%s192_s22 + $0x8] sm:$0xff]  ;;  %v1156_v1 = vld [vmem:[%s192_s22] sm:$0xff]  ;;  %s952_s27 = sshll.u32 %s1417_s19, 3 }
  0x12   : > { %s1426_s26 = scalar_lea.vmem %s1577_s0, %s947_s23  ;;  %547 = vmatpush.bf16.msra.mxu0 %v1157_v0  ;;  %1158 = vmatpush.bf16.msra.mxu1 %v1157_v0  ;;  %s1496_s30 = scalar_lea.vmem %s1579_s2, %s952_s27 }
  0x13   : > { %1159 = vmatpush.bf16.msra.mxu2 %v1157_v0  ;;  %1160 = vmatpush.bf16.msra.mxu3 %v1157_v0  ;;  %v1124_v2 = vld [vmem:[%s1426_s26] sm:$0xff]  ;;  %v1125_v6 = vld [vmem:[%s1426_s26 + $0x8] sm:$0xff]  ;;  %v1126_v10 = vld [vmem:[%s1426_s26 + $0x10] sm:$0xff] }
  0x14   : > { %v1132_v3 = vld [vmem:[%s1426_s26 + $0x40] sm:$0xff]  ;;  %v1133_v7 = vld [vmem:[%s1426_s26 + $0x48] sm:$0xff]  ;;  %v1134_v11 = vld [vmem:[%s1426_s26 + $0x50] sm:$0xff] }
  0x15   : > { %v1140_v4 = vld [vmem:[%s1426_s26 + $0x80] sm:$0xff]  ;;  %v1141_v8 = vld [vmem:[%s1426_s26 + $0x88] sm:$0xff]  ;;  %v1142_v12 = vld [vmem:[%s1426_s26 + $0x90] sm:$0xff] }
  0x16   : > { %548 = vmatpush.bf16.msra.mxu0 %v1156_v1  ;;  %1161 = vmatpush.bf16.msra.mxu1 %v1156_v1  ;;  %v1148_v5 = vld [vmem:[%s1426_s26 + $0xc0] sm:$0xff]  ;;  %v1149_v9 = vld [vmem:[%s1426_s26 + $0xc8] sm:$0xff]  ;;  %v1150_v13 = vld [vmem:[%s1426_s26 + $0xd0] sm:$0xff] }
  0x17   : > { %1162 = vmatpush.bf16.msra.mxu2 %v1156_v1  ;;  %1163 = vmatpush.bf16.msra.mxu3 %v1156_v1  ;;  %v1127_v14 = vld [vmem:[%s1426_s26 + $0x18] sm:$0xff]  ;;  %v1128_v18 = vld [vmem:[%s1426_s26 + $0x20] sm:$0xff]  ;;  %v1129_v22 = vld [vmem:[%s1426_s26 + $0x28] sm:$0xff] }
  0x18   : > { %v1135_v15 = vld [vmem:[%s1426_s26 + $0x58] sm:$0xff]  ;;  %v1136_v19 = vld [vmem:[%s1426_s26 + $0x60] sm:$0xff]  ;;  %v1137_v23 = vld [vmem:[%s1426_s26 + $0x68] sm:$0xff] }
  0x19   : > { %1089 = vmatmul.msk.bf16.vlgmr.msra.gmra.mxu0 %vm444_vm0, %v1124_v2  ;;  %1097 = vmatmul.msk.bf16.vlgmr.msra.gmra.mxu1 %vm444_vm0, %v1132_v3  ;;  %v1143_v16 = vld [vmem:[%s1426_s26 + $0x98] sm:$0xff]  ;;  %v1144_v20 = vld [vmem:[%s1426_s26 + $0xa0] sm:$0xff]  ;;  %v1145_v24 = vld [vmem:[%s1426_s26 + $0xa8] sm:$0xff] }
  0x1a   : > { %1105 = vmatmul.msk.bf16.vlgmr.msra.gmra.mxu2 %vm444_vm0, %v1140_v4  ;;  %1113 = vmatmul.msk.bf16.vlgmr.msra.gmra.mxu3 %vm444_vm0, %v1148_v5  ;;  %v1151_v17 = vld [vmem:[%s1426_s26 + $0xd8] sm:$0xff]  ;;  %v1152_v21 = vld [vmem:[%s1426_s26 + $0xe0] sm:$0xff]  ;;  %v1153_v25 = vld [vmem:[%s1426_s26 + $0xe8] sm:$0xff] }
  0x1b   : > { %v1130_v26 = vld [vmem:[%s1426_s26 + $0x30] sm:$0xff]  ;;  %v1131_v30 = vld [vmem:[%s1426_s26 + $0x38] sm:$0xff] }
  0x1c   : > { %v1138_v27 = vld [vmem:[%s1426_s26 + $0x70] sm:$0xff]  ;;  %v1139_v31 = vld [vmem:[%s1426_s26 + $0x78] sm:$0xff] }
  0x1d   : > { %v1146_v28 = vld [vmem:[%s1426_s26 + $0xb0] sm:$0xff]  ;;  %v1147_v32 = vld [vmem:[%s1426_s26 + $0xb8] sm:$0xff] }
  0x1e   : > { %v1154_v29 = vld [vmem:[%s1426_s26 + $0xf0] sm:$0xff]  ;;  %v1155_v33 = vld [vmem:[%s1426_s26 + $0xf8] sm:$0xff] }
  0x29   : > { %1090 = vmatmul.msk.bf16.gmra.mxu0 %vm444_vm0, %v1125_v6  ;;  %1098 = vmatmul.msk.bf16.gmra.mxu1 %vm444_vm0, %v1133_v7 }
  0x2a   : > { %1106 = vmatmul.msk.bf16.gmra.mxu2 %vm444_vm0, %v1141_v8  ;;  %1114 = vmatmul.msk.bf16.gmra.mxu3 %vm444_vm0, %v1149_v9 }
  0x39   : > { %1091 = vmatmul.msk.bf16.gmra.mxu0 %vm444_vm0, %v1126_v10  ;;  %1099 = vmatmul.msk.bf16.gmra.mxu1 %vm444_vm0, %v1134_v11 }
  0x3a   : > { %1107 = vmatmul.msk.bf16.gmra.mxu2 %vm444_vm0, %v1142_v12  ;;  %1115 = vmatmul.msk.bf16.gmra.mxu3 %vm444_vm0, %v1150_v13 }
  0x49   : > { %1092 = vmatmul.msk.bf16.gmra.mxu0 %vm444_vm0, %v1127_v14  ;;  %1100 = vmatmul.msk.bf16.gmra.mxu1 %vm444_vm0, %v1135_v15 }
  0x4a   : > { %1108 = vmatmul.msk.bf16.gmra.mxu2 %vm444_vm0, %v1143_v16  ;;  %1116 = vmatmul.msk.bf16.gmra.mxu3 %vm444_vm0, %v1151_v17 }
  0x59   : > { %1093 = vmatmul.msk.bf16.gmra.mxu0 %vm444_vm0, %v1128_v18  ;;  %1101 = vmatmul.msk.bf16.gmra.mxu1 %vm444_vm0, %v1136_v19 }
  0x5a   : > { %1109 = vmatmul.msk.bf16.gmra.mxu2 %vm444_vm0, %v1144_v20  ;;  %1117 = vmatmul.msk.bf16.gmra.mxu3 %vm444_vm0, %v1152_v21 }
  0x69   : > { %1094 = vmatmul.msk.bf16.gmra.mxu0 %vm444_vm0, %v1129_v22  ;;  %1102 = vmatmul.msk.bf16.gmra.mxu1 %vm444_vm0, %v1137_v23 }
  0x6a   : > { %1110 = vmatmul.msk.bf16.gmra.mxu2 %vm444_vm0, %v1145_v24  ;;  %1118 = vmatmul.msk.bf16.gmra.mxu3 %vm444_vm0, %v1153_v25 }
  0x79   : > { %1095 = vmatmul.msk.bf16.gmra.mxu0 %vm444_vm0, %v1130_v26  ;;  %1103 = vmatmul.msk.bf16.gmra.mxu1 %vm444_vm0, %v1138_v27 }
  0x7a   : > { %1111 = vmatmul.msk.bf16.gmra.mxu2 %vm444_vm0, %v1146_v28  ;;  %1119 = vmatmul.msk.bf16.gmra.mxu3 %vm444_vm0, %v1154_v29 }
  0x89   : > { %1096 = vmatmul.msk.bf16.gmra.mxu0 %vm444_vm0, %v1131_v30  ;;  %1104 = vmatmul.msk.bf16.gmra.mxu1 %vm444_vm0, %v1139_v31 }
  0x8a   : > { %1112 = vmatmul.msk.bf16.gmra.mxu2 %vm444_vm0, %v1147_v32  ;;  %1120 = vmatmul.msk.bf16.gmra.mxu3 %vm444_vm0, %v1155_v33 }
  0x96   : > { %v550_v34 = vpop.f32.mrf.mxu0  ;;  %v590_v35 = vpop.f32.mrf.mxu1 }
  0x97   : > { %1204 = vtanh.f32 %v550_v34 }
  0x98   : > { %1206 = vtanh.f32 %v590_v35 }
  0x9d   : > { %v1205_v36 = vpop.eup %1204  ;;  %v630_v37 = vpop.f32.mrf.mxu2 }
  0x9e   : > { %v670_v38 = vpop.f32.mrf.mxu3  ;;  %v1207_v39 = vpop.eup %1206  ;;  %774 = vst [vmem:[%s1496_s30] sm:$0xff] %v1205_v36  ;;  %1208 = vtanh.f32 %v630_v37 }
  0x9f   : > { %v552_v40 = vpop.f32.mrf.mxu0  ;;  %v592_v41 = vpop.f32.mrf.mxu1  ;;  %790 = vst [vmem:[%s1496_s30 + $0x80] sm:$0xff] %v1207_v39  ;;  %1210 = vtanh.f32 %v670_v38 }
  0xa0   : > { %1212 = vtanh.f32 %v552_v40 }
  0xa1   : > { %1214 = vtanh.f32 %v592_v41 }
  0xa4   : > { %v1209_v42 = vpop.eup %1208 }
  0xa5   : > { %v1211_v43 = vpop.eup %1210  ;;  %806 = vst [vmem:[%s1496_s30 + $0x100] sm:$0xff] %v1209_v42  ;;  %v632_v44 = vpop.f32.mrf.mxu2 }
  0xa6   : > { %v672_v45 = vpop.f32.mrf.mxu3  ;;  %v1213_v46 = vpop.eup %1212  ;;  %822 = vst [vmem:[%s1496_s30 + $0x180] sm:$0xff] %v1211_v43  ;;  %1216 = vtanh.f32 %v632_v44 }
  0xa7   : > { %v555_v47 = vpop.f32.mrf.mxu0  ;;  %v595_v48 = vpop.f32.mrf.mxu1  ;;  %775 = vst [vmem:[%s1496_s30 + $0x8] sm:$0xff] %v1213_v46  ;;  %1218 = vtanh.f32 %v672_v45 }
  0xa8   : > { %v1215_v49 = vpop.eup %1214  ;;  %1220 = vtanh.f32 %v555_v47 }
  0xa9   : > { %791 = vst [vmem:[%s1496_s30 + $0x88] sm:$0xff] %v1215_v49  ;;  %1222 = vtanh.f32 %v595_v48 }
  0xac   : > { %v1217_v50 = vpop.eup %1216 }
  0xad   : > { %v1219_v51 = vpop.eup %1218  ;;  %807 = vst [vmem:[%s1496_s30 + $0x108] sm:$0xff] %v1217_v50  ;;  %v635_v52 = vpop.f32.mrf.mxu2 }
  0xae   : > { %v675_v53 = vpop.f32.mrf.mxu3  ;;  %v1221_v54 = vpop.eup %1220  ;;  %823 = vst [vmem:[%s1496_s30 + $0x188] sm:$0xff] %v1219_v51  ;;  %1224 = vtanh.f32 %v635_v52 }
  0xaf   : > { %v557_v55 = vpop.f32.mrf.mxu0  ;;  %v597_v56 = vpop.f32.mrf.mxu1  ;;  %776 = vst [vmem:[%s1496_s30 + $0x10] sm:$0xff] %v1221_v54  ;;  %1226 = vtanh.f32 %v675_v53 }
  0xb0   : > { %v1223_v57 = vpop.eup %1222  ;;  %1228 = vtanh.f32 %v557_v55 }
  0xb1   : > { %792 = vst [vmem:[%s1496_s30 + $0x90] sm:$0xff] %v1223_v57  ;;  %1230 = vtanh.f32 %v597_v56 }
  0xb4   : > { %v1225_v58 = vpop.eup %1224 }
  0xb5   : > { %v1227_v59 = vpop.eup %1226  ;;  %808 = vst [vmem:[%s1496_s30 + $0x110] sm:$0xff] %v1225_v58  ;;  %v637_v60 = vpop.f32.mrf.mxu2 }
  0xb6   : > { %v677_v61 = vpop.f32.mrf.mxu3  ;;  %v1229_v62 = vpop.eup %1228  ;;  %824 = vst [vmem:[%s1496_s30 + $0x190] sm:$0xff] %v1227_v59  ;;  %1232 = vtanh.f32 %v637_v60 }
  0xb7   : > { %v560_v63 = vpop.f32.mrf.mxu0  ;;  %v600_v0 = vpop.f32.mrf.mxu1  ;;  %777 = vst [vmem:[%s1496_s30 + $0x18] sm:$0xff] %v1229_v62  ;;  %1234 = vtanh.f32 %v677_v61 }
  0xb8   : > { %v1231_v1 = vpop.eup %1230  ;;  %1236 = vtanh.f32 %v560_v63 }
  0xb9   : > { %793 = vst [vmem:[%s1496_s30 + $0x98] sm:$0xff] %v1231_v1  ;;  %1238 = vtanh.f32 %v600_v0 }
  0xbc   : > { %v1233_v2 = vpop.eup %1232 }
  0xbd   : > { %v1235_v3 = vpop.eup %1234  ;;  %809 = vst [vmem:[%s1496_s30 + $0x118] sm:$0xff] %v1233_v2  ;;  %v640_v4 = vpop.f32.mrf.mxu2 }
  0xbe   : > { %v680_v5 = vpop.f32.mrf.mxu3  ;;  %v1237_v6 = vpop.eup %1236  ;;  %825 = vst [vmem:[%s1496_s30 + $0x198] sm:$0xff] %v1235_v3  ;;  %1240 = vtanh.f32 %v640_v4 }
  0xbf   : > { %v562_v7 = vpop.f32.mrf.mxu0  ;;  %v602_v8 = vpop.f32.mrf.mxu1  ;;  %778 = vst [vmem:[%s1496_s30 + $0x20] sm:$0xff] %v1237_v6  ;;  %1242 = vtanh.f32 %v680_v5 }
  0xc0   : > { %v1239_v9 = vpop.eup %1238  ;;  %1244 = vtanh.f32 %v562_v7 }
  0xc1   : > { %794 = vst [vmem:[%s1496_s30 + $0xa0] sm:$0xff] %v1239_v9  ;;  %1246 = vtanh.f32 %v602_v8 }
  0xc4   : > { %v1241_v10 = vpop.eup %1240 }
  0xc5   : > { %v1243_v11 = vpop.eup %1242  ;;  %810 = vst [vmem:[%s1496_s30 + $0x120] sm:$0xff] %v1241_v10  ;;  %v642_v12 = vpop.f32.mrf.mxu2 }
  0xc6   : > { %v682_v13 = vpop.f32.mrf.mxu3  ;;  %v1245_v14 = vpop.eup %1244  ;;  %826 = vst [vmem:[%s1496_s30 + $0x1a0] sm:$0xff] %v1243_v11  ;;  %1248 = vtanh.f32 %v642_v12 }
  0xc7   : > { %v565_v15 = vpop.f32.mrf.mxu0  ;;  %v605_v16 = vpop.f32.mrf.mxu1  ;;  %779 = vst [vmem:[%s1496_s30 + $0x28] sm:$0xff] %v1245_v14  ;;  %1250 = vtanh.f32 %v682_v13 }
  0xc8   : > { %v1247_v17 = vpop.eup %1246  ;;  %1252 = vtanh.f32 %v565_v15 }
  0xc9   : > { %795 = vst [vmem:[%s1496_s30 + $0xa8] sm:$0xff] %v1247_v17  ;;  %1254 = vtanh.f32 %v605_v16 }
  0xcc   : > { %v1249_v18 = vpop.eup %1248 }
  0xcd   : > { %v1251_v19 = vpop.eup %1250  ;;  %811 = vst [vmem:[%s1496_s30 + $0x128] sm:$0xff] %v1249_v18  ;;  %v645_v20 = vpop.f32.mrf.mxu2 }
  0xce   : > { %v685_v21 = vpop.f32.mrf.mxu3  ;;  %v1253_v22 = vpop.eup %1252  ;;  %827 = vst [vmem:[%s1496_s30 + $0x1a8] sm:$0xff] %v1251_v19  ;;  %1256 = vtanh.f32 %v645_v20 }
  0xcf   : > { %v567_v23 = vpop.f32.mrf.mxu0  ;;  %v607_v24 = vpop.f32.mrf.mxu1  ;;  %780 = vst [vmem:[%s1496_s30 + $0x30] sm:$0xff] %v1253_v22  ;;  %1258 = vtanh.f32 %v685_v21 }
  0xd0   : > { %v1255_v25 = vpop.eup %1254  ;;  %1260 = vtanh.f32 %v567_v23 }
  0xd1   : > { %796 = vst [vmem:[%s1496_s30 + $0xb0] sm:$0xff] %v1255_v25  ;;  %1262 = vtanh.f32 %v607_v24 }
  0xd4   : > { %v1257_v26 = vpop.eup %1256 }
  0xd5   : > { %v1259_v27 = vpop.eup %1258  ;;  %812 = vst [vmem:[%s1496_s30 + $0x130] sm:$0xff] %v1257_v26  ;;  %v647_v28 = vpop.f32.mrf.mxu2 }
  0xd6   : > { %v687_v29 = vpop.f32.mrf.mxu3  ;;  %v1261_v30 = vpop.eup %1260  ;;  %828 = vst [vmem:[%s1496_s30 + $0x1b0] sm:$0xff] %v1259_v27  ;;  %1264 = vtanh.f32 %v647_v28 }
  0xd7   : > { %v570_v31 = vpop.f32.mrf.mxu0  ;;  %v610_v32 = vpop.f32.mrf.mxu1  ;;  %781 = vst [vmem:[%s1496_s30 + $0x38] sm:$0xff] %v1261_v30  ;;  %1266 = vtanh.f32 %v687_v29 }
  0xd8   : > { %v1263_v33 = vpop.eup %1262  ;;  %1268 = vtanh.f32 %v570_v31 }
  0xd9   : > { %797 = vst [vmem:[%s1496_s30 + $0xb8] sm:$0xff] %v1263_v33  ;;  %1270 = vtanh.f32 %v610_v32 }
  0xdc   : > { %v1265_v34 = vpop.eup %1264 }
  0xdd   : > { %v1267_v35 = vpop.eup %1266  ;;  %813 = vst [vmem:[%s1496_s30 + $0x138] sm:$0xff] %v1265_v34  ;;  %v650_v36 = vpop.f32.mrf.mxu2 }
  0xde   : > { %v690_v37 = vpop.f32.mrf.mxu3  ;;  %v1269_v38 = vpop.eup %1268  ;;  %829 = vst [vmem:[%s1496_s30 + $0x1b8] sm:$0xff] %v1267_v35  ;;  %1272 = vtanh.f32 %v650_v36 }
  0xdf   : > { %v572_v39 = vpop.f32.mrf.mxu0  ;;  %v612_v40 = vpop.f32.mrf.mxu1  ;;  %782 = vst [vmem:[%s1496_s30 + $0x40] sm:$0xff] %v1269_v38  ;;  %1274 = vtanh.f32 %v690_v37 }
  0xe0   : > { %v1271_v41 = vpop.eup %1270  ;;  %1276 = vtanh.f32 %v572_v39 }
  0xe1   : > { %798 = vst [vmem:[%s1496_s30 + $0xc0] sm:$0xff] %v1271_v41  ;;  %1278 = vtanh.f32 %v612_v40 }
  0xe4   : > { %v1273_v42 = vpop.eup %1272 }
  0xe5   : > { %v1275_v43 = vpop.eup %1274  ;;  %814 = vst [vmem:[%s1496_s30 + $0x140] sm:$0xff] %v1273_v42  ;;  %v652_v44 = vpop.f32.mrf.mxu2 }
  0xe6   : > { %v692_v45 = vpop.f32.mrf.mxu3  ;;  %v1277_v46 = vpop.eup %1276  ;;  %830 = vst [vmem:[%s1496_s30 + $0x1c0] sm:$0xff] %v1275_v43  ;;  %1280 = vtanh.f32 %v652_v44 }
  0xe7   : > { %v575_v47 = vpop.f32.mrf.mxu0  ;;  %v615_v48 = vpop.f32.mrf.mxu1  ;;  %783 = vst [vmem:[%s1496_s30 + $0x48] sm:$0xff] %v1277_v46  ;;  %1282 = vtanh.f32 %v692_v45 }
  0xe8   : > { %v1279_v49 = vpop.eup %1278  ;;  %1284 = vtanh.f32 %v575_v47 }
  0xe9   : > { %799 = vst [vmem:[%s1496_s30 + $0xc8] sm:$0xff] %v1279_v49  ;;  %1286 = vtanh.f32 %v615_v48 }
  0xec   : > { %v1281_v50 = vpop.eup %1280 }
  0xed   : > { %v1283_v51 = vpop.eup %1282  ;;  %815 = vst [vmem:[%s1496_s30 + $0x148] sm:$0xff] %v1281_v50  ;;  %v655_v52 = vpop.f32.mrf.mxu2 }
  0xee   : > { %v695_v53 = vpop.f32.mrf.mxu3  ;;  %v1285_v54 = vpop.eup %1284  ;;  %831 = vst [vmem:[%s1496_s30 + $0x1c8] sm:$0xff] %v1283_v51  ;;  %1288 = vtanh.f32 %v655_v52 }
  0xef   : > { %v577_v55 = vpop.f32.mrf.mxu0  ;;  %v617_v56 = vpop.f32.mrf.mxu1  ;;  %784 = vst [vmem:[%s1496_s30 + $0x50] sm:$0xff] %v1285_v54  ;;  %1290 = vtanh.f32 %v695_v53 }
  0xf0   : > { %v1287_v57 = vpop.eup %1286  ;;  %1292 = vtanh.f32 %v577_v55 }
  0xf1   : > { %800 = vst [vmem:[%s1496_s30 + $0xd0] sm:$0xff] %v1287_v57  ;;  %1294 = vtanh.f32 %v617_v56 }
  0xf4   : > { %v1289_v58 = vpop.eup %1288 }
  0xf5   : > { %v1291_v59 = vpop.eup %1290  ;;  %816 = vst [vmem:[%s1496_s30 + $0x150] sm:$0xff] %v1289_v58  ;;  %v657_v60 = vpop.f32.mrf.mxu2 }
  0xf6   : > { %v697_v61 = vpop.f32.mrf.mxu3  ;;  %v1293_v62 = vpop.eup %1292  ;;  %832 = vst [vmem:[%s1496_s30 + $0x1d0] sm:$0xff] %v1291_v59  ;;  %1296 = vtanh.f32 %v657_v60 }
  0xf7   : > { %v580_v63 = vpop.f32.mrf.mxu0  ;;  %v620_v0 = vpop.f32.mrf.mxu1  ;;  %785 = vst [vmem:[%s1496_s30 + $0x58] sm:$0xff] %v1293_v62  ;;  %1298 = vtanh.f32 %v697_v61 }
  0xf8   : > { %v1295_v1 = vpop.eup %1294  ;;  %1300 = vtanh.f32 %v580_v63 }
  0xf9   : > { %801 = vst [vmem:[%s1496_s30 + $0xd8] sm:$0xff] %v1295_v1  ;;  %1302 = vtanh.f32 %v620_v0 }
  0xfc   : > { %v1297_v2 = vpop.eup %1296 }
  0xfd   : > { %v1299_v3 = vpop.eup %1298  ;;  %817 = vst [vmem:[%s1496_s30 + $0x158] sm:$0xff] %v1297_v2  ;;  %v660_v4 = vpop.f32.mrf.mxu2 }
  0xfe   : > { %v700_v5 = vpop.f32.mrf.mxu3  ;;  %v1301_v6 = vpop.eup %1300  ;;  %833 = vst [vmem:[%s1496_s30 + $0x1d8] sm:$0xff] %v1299_v3  ;;  %1304 = vtanh.f32 %v660_v4 }
  0xff   : > { %v582_v7 = vpop.f32.mrf.mxu0  ;;  %v622_v8 = vpop.f32.mrf.mxu1  ;;  %786 = vst [vmem:[%s1496_s30 + $0x60] sm:$0xff] %v1301_v6  ;;  %1306 = vtanh.f32 %v700_v5 }
 0x100   : > { %v1303_v9 = vpop.eup %1302  ;;  %1308 = vtanh.f32 %v582_v7 }
 0x101   : > { %802 = vst [vmem:[%s1496_s30 + $0xe0] sm:$0xff] %v1303_v9  ;;  %1310 = vtanh.f32 %v622_v8 }
 0x104   : > { %v1305_v10 = vpop.eup %1304 }
 0x105   : > { %v1307_v11 = vpop.eup %1306  ;;  %818 = vst [vmem:[%s1496_s30 + $0x160] sm:$0xff] %v1305_v10  ;;  %v662_v12 = vpop.f32.mrf.mxu2 }
 0x106   : > { %v702_v13 = vpop.f32.mrf.mxu3  ;;  %v1309_v14 = vpop.eup %1308  ;;  %834 = vst [vmem:[%s1496_s30 + $0x1e0] sm:$0xff] %v1307_v11  ;;  %1312 = vtanh.f32 %v662_v12 }
 0x107   : > { %v585_v15 = vpop.f32.mrf.mxu0  ;;  %v625_v16 = vpop.f32.mrf.mxu1  ;;  %787 = vst [vmem:[%s1496_s30 + $0x68] sm:$0xff] %v1309_v14  ;;  %1314 = vtanh.f32 %v702_v13 }
 0x108   : > { %v1311_v17 = vpop.eup %1310  ;;  %1316 = vtanh.f32 %v585_v15 }
 0x109   : > { %803 = vst [vmem:[%s1496_s30 + $0xe8] sm:$0xff] %v1311_v17  ;;  %1318 = vtanh.f32 %v625_v16 }
 0x10c   : > { %v1313_v18 = vpop.eup %1312 }
 0x10d   : > { %v1315_v19 = vpop.eup %1314  ;;  %819 = vst [vmem:[%s1496_s30 + $0x168] sm:$0xff] %v1313_v18  ;;  %v665_v20 = vpop.f32.mrf.mxu2 }
 0x10e   : > { %v705_v21 = vpop.f32.mrf.mxu3  ;;  %v1317_v22 = vpop.eup %1316  ;;  %835 = vst [vmem:[%s1496_s30 + $0x1e8] sm:$0xff] %v1315_v19  ;;  %1320 = vtanh.f32 %v665_v20 }
 0x10f   : > { %v587_v23 = vpop.f32.mrf.mxu0  ;;  %v627_v24 = vpop.f32.mrf.mxu1  ;;  %788 = vst [vmem:[%s1496_s30 + $0x70] sm:$0xff] %v1317_v22  ;;  %1322 = vtanh.f32 %v705_v21 }
 0x110   : > { %v1319_v25 = vpop.eup %1318  ;;  %1324 = vtanh.f32 %v587_v23 }
 0x111   : > { %804 = vst [vmem:[%s1496_s30 + $0xf0] sm:$0xff] %v1319_v25  ;;  %1326 = vtanh.f32 %v627_v24 }
 0x114   : > { %v1321_v26 = vpop.eup %1320 }
 0x115   : > { %v1323_v27 = vpop.eup %1322  ;;  %820 = vst [vmem:[%s1496_s30 + $0x170] sm:$0xff] %v1321_v26  ;;  %v667_v28 = vpop.f32.mrf.mxu2 }
 0x116   : > { %v707_v29 = vpop.f32.mrf.mxu3  ;;  %v1325_v30 = vpop.eup %1324  ;;  %836 = vst [vmem:[%s1496_s30 + $0x1f0] sm:$0xff] %v1323_v27  ;;  %1328 = vtanh.f32 %v667_v28 }
 0x117   : > { %v1327_v31 = vpop.eup %1326  ;;  %789 = vst [vmem:[%s1496_s30 + $0x78] sm:$0xff] %v1325_v30  ;;  %1330 = vtanh.f32 %v707_v29 }
 0x118   : > { %805 = vst [vmem:[%s1496_s30 + $0xf8] sm:$0xff] %v1327_v31 }
 0x11c   : > { %v1329_v32 = vpop.eup %1328 }
 0x11d   : > { %v1331_v33 = vpop.eup %1330  ;;  %821 = vst [vmem:[%s1496_s30 + $0x178] sm:$0xff] %v1329_v32 }
 0x11e   : > { %837 = vst [vmem:[%s1496_s30 + $0x1f8] sm:$0xff] %v1331_v33 }
 0x11f PF: > { %s12_s13 = sadd.s32 1, %s1370_s13   ;;  %s1580_s9 = smov %s1362_s11 }
 0x120   : > { %p9_p7 = scmp.ge.s32.totalorder %s12_s13, 18   ;;  %s1581_s10 = smov %s1366_s12 }
 0x121   : > { %s1582_s11 = smov %s1585_s14  ;;  %s1583_s12 = smov %s1589_s15 }
 0x122   :  { %11 = sbr.rel (!%p9_p7) target bundleno = 3 (0x3), region = 61 }

</bundles_post_ra>
